<compile_context>
chip_gen: v6e
topology: v6e:2x2x1
jax: 0.10.0
libtpu: 0.0.40
codegen_flags: <defaults>
</compile_context>

<pallas_src>
import math

import jax
import jax.numpy as jnp
from jax.experimental import pallas as pl
from jax.experimental.pallas import tpu as pltpu


def _lstm_fused_kernel(x_ref, wih_ref, bih_ref, bhh_ref, whh_ref,
                       out_ref, hn_ref, cn_ref, xg_ref):
    """Fused input projection + LSTM recurrence, single kernel invocation.

    x_ref  : (B*T, D)   flattened batch-major input (row index = b*T + t)
    wih_ref: (D, 4H)    W_ih^T
    bih_ref: (1, 4H)    b_ih
    bhh_ref: (1, 4H)    b_hh
    whh_ref: (H, 4H)    W_hh^T
    out_ref: (B, T, H)  per-timestep hidden states (batch_first, like nn.LSTM)
    hn_ref : (1, B, H)  final hidden state  (nn.LSTM layout, num_layers=1)
    cn_ref : (1, B, H)  final cell state
    xg_ref : (B, T, 4H) VMEM scratch: precomputed input projection
    """
    B, T, H4 = xg_ref.shape
    H = H4 // 4

    # ---- Hoisted input projection: one MXU matmul over all timesteps. ----
    bias = bih_ref[...] + bhh_ref[...]                                 # (1, 4H)
    xg = jnp.dot(x_ref[...], wih_ref[...],
                 preferred_element_type=jnp.float32) + bias            # (B*T, 4H)
    # Minor (lane) dim unchanged -> layout no-op reshape into the scratch.
    xg_ref[...] = xg.reshape(B, T, H4)

    whh = whh_ref[...]                                                 # (H, 4H)

    # ---- Per-lane activation constants (single-tanh trick). ----
    # PyTorch gate order along the 4H axis is (i, f, g, o).
    #   sigmoid(x) = 0.5 * tanh(0.5 * x) + 0.5
    #   i/f/o lanes: s = 0.5, a = 0.5   (sigmoid)
    #   g lanes    : s = 1.0, a = 0.0   (tanh)
    lane = jax.lax.broadcasted_iota(jnp.int32, (1, H4), 1)
    is_g = jnp.logical_and(lane >= 2 * H, lane < 3 * H)
    s = jnp.where(is_g, 1.0, 0.5).astype(jnp.float32)
    a = jnp.where(is_g, 0.0, 0.5).astype(jnp.float32)

    h = jnp.zeros((B, H), jnp.float32)
    c = jnp.zeros((B, H), jnp.float32)

    # Static Python loop: T is small & static; all slice indices are constants,
    # h/c stay in vregs, only the tiny per-step store touches VMEM.
    for t in range(T):
        gates = xg_ref[:, t, :] + jnp.dot(h, whh,
                                          preferred_element_type=jnp.float32)
        act = jnp.tanh(gates * s) * s + a                              # (B, 4H)
        i_g = act[:, 0 * H:1 * H]
        f_g = act[:, 1 * H:2 * H]
        g_g = act[:, 2 * H:3 * H]
        o_g = act[:, 3 * H:4 * H]
        c = f_g * c + i_g * g_g
        h = o_g * jnp.tanh(c)
        out_ref[:, t, :] = h.astype(out_ref.dtype)

    hn_ref[0] = h.astype(hn_ref.dtype)
    cn_ref[0] = c.astype(cn_ref.dtype)


def lotka_summary_forward(Y, params):
    """Y: (B, T, D) float32.  Returns (out, (h_n, c_n)) like nn.LSTM."""
    B, T, D = Y.shape
    H = params["w_hh"].shape[1]

    # Metadata-only / parameter-only preps.  No data transpose, no einsum, no
    # bias-add in the wrapper — all fused into the kernel.
    x_flat = Y.astype(jnp.float32).reshape(B * T, D)               # (B*T, D)
    wih_t = params["w_ih"].T.astype(jnp.float32)                   # (D, 4H)
    whh_t = params["w_hh"].T.astype(jnp.float32)                   # (H, 4H)
    bih = params["b_ih"].astype(jnp.float32).reshape(1, 4 * H)     # (1, 4H)
    bhh = params["b_hh"].astype(jnp.float32).reshape(1, 4 * H)     # (1, 4H)

    vmem = pl.BlockSpec(memory_space=pltpu.MemorySpace.VMEM)
    out, h_n, c_n = pl.pallas_call(
        _lstm_fused_kernel,
        out_shape=(
            jax.ShapeDtypeStruct((B, T, H), jnp.float32),
            jax.ShapeDtypeStruct((1, B, H), jnp.float32),
            jax.ShapeDtypeStruct((1, B, H), jnp.float32),
        ),
        in_specs=[vmem, vmem, vmem, vmem, vmem],
        out_specs=(vmem, vmem, vmem),
        scratch_shapes=[pltpu.VMEM((B, T, 4 * H), jnp.float32)],
    )(x_flat, wih_t, bih, bhh, whh_t)

    return out, (h_n, c_n)


def lstm_reference(Y, params):
    """Pure-JAX reference matching torch.nn.LSTM (1 layer, batch_first)."""
    B, T, D = Y.shape
    w_ih, w_hh = params["w_ih"], params["w_hh"]
    b = params["b_ih"] + params["b_hh"]

    def step(carry, x_t):
        h, c = carry
        gates = x_t @ w_ih.T + h @ w_hh.T + b
        i, f, g, o = jnp.split(gates, 4, axis=-1)
        i, f, o = jax.nn.sigmoid(i), jax.nn.sigmoid(f), jax.nn.sigmoid(o)
        g = jnp.tanh(g)
        c = f * c + i * g
        h = o * jnp.tanh(c)
        return (h, c), h

    H = w_hh.shape[1]
    init = (jnp.zeros((B, H), jnp.float32), jnp.zeros((B, H), jnp.float32))
    (h_n, c_n), outs = jax.lax.scan(step, init, jnp.transpose(Y, (1, 0, 2)))
    return jnp.transpose(outs, (1, 0, 2)), h_n, c_n


def init_params(key, input_size, hidden_dim):
    """Deterministic init matching nn.LSTM shapes: U(-1/sqrt(H), 1/sqrt(H))."""
    bound = 1.0 / math.sqrt(hidden_dim)
    k1, k2, k3, k4 = jax.random.split(key, 4)
    return {
        "w_ih": jax.random.uniform(k1, (4 * hidden_dim, input_size),
                                   jnp.float32, -bound, bound),
        "w_hh": jax.random.uniform(k2, (4 * hidden_dim, hidden_dim),
                                   jnp.float32, -bound, bound),
        "b_ih": jax.random.uniform(k3, (4 * hidden_dim,),
                                   jnp.float32, -bound, bound),
        "b_hh": jax.random.uniform(k4, (4 * hidden_dim,),
                                   jnp.float32, -bound, bound),
    }


# TODO(synk): self.conv (Conv1d stack + AvgPool1d) is never invoked in the
# original forward(), so it is intentionally not implemented here.

if __name__ == "__main__":
    input_size = 2      # Lotka-Volterra: 2-species time series
    hidden_dim = 32     # 4H = 128 -> lane-dense gate tile
    batch, seq = 4, 16

    key = jax.random.PRNGKey(0)
    k_params, k_data = jax.random.split(key)
    params = init_params(k_params, input_size, hidden_dim)
    Y = jax.random.normal(k_data, (batch, seq, input_size), jnp.float32)

    out, (h_n, c_n) = lotka_summary_forward(Y, params)
    jax.block_until_ready((out, h_n, c_n))

    # Sanity-check against a pure-JAX reference LSTM.
    out_ref, h_ref, c_ref = lstm_reference(Y, params)
    assert out.shape == (batch, seq, hidden_dim)
    assert h_n.shape == (1, batch, hidden_dim)
    assert c_n.shape == (1, batch, hidden_dim)
    assert jnp.allclose(out, out_ref, atol=1e-2, rtol=1e-2)
    assert jnp.allclose(h_n[0], h_ref, atol=1e-2, rtol=1e-2)
    assert jnp.allclose(c_n[0], c_ref, atol=1e-2, rtol=1e-2)

    print("KERNEL_OK")
</pallas_src>

<mosaic_0001>
module attributes {stable_mosaic.version = 11 : i64} {
  func.func @_lstm_fused_kernel(%arg0: memref<64x2xf32, #tpu.memory_space<vmem>>, %arg1: memref<2x128xf32, #tpu.memory_space<vmem>>, %arg2: memref<1x128xf32, #tpu.memory_space<vmem>>, %arg3: memref<1x128xf32, #tpu.memory_space<vmem>>, %arg4: memref<32x128xf32, #tpu.memory_space<vmem>>, %arg5: memref<4x16x32xf32, #tpu.memory_space<vmem>>, %arg6: memref<1x4x32xf32, #tpu.memory_space<vmem>>, %arg7: memref<1x4x32xf32, #tpu.memory_space<vmem>>, %arg8: memref<4x16x128xf32, #tpu.memory_space<vmem>>) attributes {dimension_semantics = [], scalar_prefetch = 0 : i64, scratch_operands = 1 : i64, tpu.core_type = #tpu.core_type<tc>} {
    %c0 = arith.constant 0 : index
    %c0_0 = arith.constant 0 : index
    %0 = vector.load %arg2[%c0, %c0_0] : memref<1x128xf32, #tpu.memory_space<vmem>>, vector<1x128xf32>
    %c0_1 = arith.constant 0 : index
    %c0_2 = arith.constant 0 : index
    %1 = vector.load %arg3[%c0_1, %c0_2] : memref<1x128xf32, #tpu.memory_space<vmem>>, vector<1x128xf32>
    %2 = arith.addf %0, %1 : vector<1x128xf32>
    %c0_3 = arith.constant 0 : index
    %c0_4 = arith.constant 0 : index
    %3 = vector.load %arg0[%c0_3, %c0_4] : memref<64x2xf32, #tpu.memory_space<vmem>>, vector<64x2xf32>
    %c0_5 = arith.constant 0 : index
    %c0_6 = arith.constant 0 : index
    %4 = vector.load %arg1[%c0_5, %c0_6] : memref<2x128xf32, #tpu.memory_space<vmem>>, vector<2x128xf32>
    %cst = arith.constant dense<0.000000e+00> : vector<64x128xf32>
    %5 = tpu.matmul %3, %4, %cst {dimension_numbers = #tpu.dot_dimension_numbers<[1], [0], [0], [1], [0, 0, 1, 1], [], []>} : vector<64x2xf32>, vector<2x128xf32>, vector<64x128xf32> -> vector<64x128xf32>
    %6 = vector.broadcast %2 : vector<1x128xf32> to vector<64x128xf32>
    %7 = arith.addf %5, %6 : vector<64x128xf32>
    %8 = vector.shape_cast %7 : vector<64x128xf32> to vector<4x16x128xf32>
    %c0_7 = arith.constant 0 : index
    %c0_8 = arith.constant 0 : index
    %c0_9 = arith.constant 0 : index
    %9 = vector.load %arg8[%c0_7, %c0_8, %c0_9] : memref<4x16x128xf32, #tpu.memory_space<vmem>>, vector<4x16x128xf32>
    tpu.vector_store %arg8[%c0_7, %c0_8, %c0_9], %8 {strides = array<i32>} : memref<4x16x128xf32, #tpu.memory_space<vmem>>, vector<4x16x128xf32>,
    %c0_10 = arith.constant 0 : index
    %c0_11 = arith.constant 0 : index
    %10 = vector.load %arg4[%c0_10, %c0_11] : memref<32x128xf32, #tpu.memory_space<vmem>>, vector<32x128xf32>
    %11 = tpu.iota {dimensions = array<i32: 1>} : vector<1x128xi32>
    %c64_i32 = arith.constant 64 : i32
    %12 = vector.broadcast %c64_i32 : i32 to vector<1x128xi32>
    %13 = arith.cmpi sge, %11, %12 : vector<1x128xi32>
    %c96_i32 = arith.constant 96 : i32
    %14 = vector.broadcast %c96_i32 : i32 to vector<1x128xi32>
    %15 = arith.cmpi slt, %11, %14 : vector<1x128xi32>
    %16 = arith.andi %13, %15 : vector<1x128xi1>
    %cst_12 = arith.constant 1.000000e+00 : f32
    %cst_13 = arith.constant 5.000000e-01 : f32
    %17 = vector.broadcast %cst_12 : f32 to vector<1x128xf32>
    %18 = vector.broadcast %cst_13 : f32 to vector<1x128xf32>
    %19 = arith.select %16, %17, %18 : vector<1x128xi1>, vector<1x128xf32>
    %cst_14 = arith.constant 0.000000e+00 : f32
    %cst_15 = arith.constant 5.000000e-01 : f32
    %20 = vector.broadcast %cst_14 : f32 to vector<1x128xf32>
    %21 = vector.broadcast %cst_15 : f32 to vector<1x128xf32>
    %22 = arith.select %16, %20, %21 : vector<1x128xi1>, vector<1x128xf32>
    %cst_16 = arith.constant 0.000000e+00 : f32
    %23 = vector.broadcast %cst_16 : f32 to vector<4x32xf32>
    %cst_17 = arith.constant 0.000000e+00 : f32
    %24 = vector.broadcast %cst_17 : f32 to vector<4x32xf32>
    %c0_18 = arith.constant 0 : index
    %c0_19 = arith.constant 0 : index
    %c0_20 = arith.constant 0 : index
    %25 = vector.load %arg8[%c0_18, %c0_19, %c0_20] : memref<4x16x128xf32, #tpu.memory_space<vmem>>, vector<4x1x128xf32>
    %26 = vector.shape_cast %25 : vector<4x1x128xf32> to vector<4x128xf32>
    %cst_21 = arith.constant dense<0.000000e+00> : vector<4x128xf32>
    %27 = tpu.matmul %23, %10, %cst_21 {dimension_numbers = #tpu.dot_dimension_numbers<[1], [0], [0], [1], [0, 0, 1, 1], [], []>} : vector<4x32xf32>, vector<32x128xf32>, vector<4x128xf32> -> vector<4x128xf32>
    %28 = arith.addf %26, %27 : vector<4x128xf32>
    %29 = vector.broadcast %19 : vector<1x128xf32> to vector<4x128xf32>
    %30 = arith.mulf %28, %29 : vector<4x128xf32>
    %31 = math.tanh %30 : vector<4x128xf32>
    %32 = vector.broadcast %19 : vector<1x128xf32> to vector<4x128xf32>
    %33 = arith.mulf %31, %32 : vector<4x128xf32>
    %34 = vector.broadcast %22 : vector<1x128xf32> to vector<4x128xf32>
    %35 = arith.addf %33, %34 : vector<4x128xf32>
    %36 = vector.extract_strided_slice %35 {offsets = [0, 0], sizes = [4, 32], strides = [1, 1]} : vector<4x128xf32> to vector<4x32xf32>
    %37 = vector.extract_strided_slice %35 {offsets = [0, 32], sizes = [4, 32], strides = [1, 1]} : vector<4x128xf32> to vector<4x32xf32>
    %38 = vector.extract_strided_slice %35 {offsets = [0, 64], sizes = [4, 32], strides = [1, 1]} : vector<4x128xf32> to vector<4x32xf32>
    %39 = vector.extract_strided_slice %35 {offsets = [0, 96], sizes = [4, 32], strides = [1, 1]} : vector<4x128xf32> to vector<4x32xf32>
    %40 = arith.mulf %37, %24 : vector<4x32xf32>
    %41 = arith.mulf %36, %38 : vector<4x32xf32>
    %42 = arith.addf %40, %41 : vector<4x32xf32>
    %43 = math.tanh %42 : vector<4x32xf32>
    %44 = arith.mulf %39, %43 : vector<4x32xf32>
    %c0_22 = arith.constant 0 : index
    %c0_23 = arith.constant 0 : index
    %c0_24 = arith.constant 0 : index
    %45 = vector.load %arg5[%c0_22, %c0_23, %c0_24] : memref<4x16x32xf32, #tpu.memory_space<vmem>>, vector<4x1x32xf32>
    %46 = vector.shape_cast %45 : vector<4x1x32xf32> to vector<4x32xf32>
    %47 = vector.shape_cast %44 : vector<4x32xf32> to vector<4x1x32xf32>
    tpu.vector_store %arg5[%c0_22, %c0_23, %c0_24], %47 {strides = array<i32>} : memref<4x16x32xf32, #tpu.memory_space<vmem>>, vector<4x1x32xf32>,
    %c0_25 = arith.constant 0 : index
    %c1 = arith.constant 1 : index
    %c0_26 = arith.constant 0 : index
    %48 = vector.load %arg8[%c0_25, %c1, %c0_26] : memref<4x16x128xf32, #tpu.memory_space<vmem>>, vector<4x1x128xf32>
    %49 = vector.shape_cast %48 : vector<4x1x128xf32> to vector<4x128xf32>
    %cst_27 = arith.constant dense<0.000000e+00> : vector<4x128xf32>
    %50 = tpu.matmul %44, %10, %cst_27 {dimension_numbers = #tpu.dot_dimension_numbers<[1], [0], [0], [1], [0, 0, 1, 1], [], []>} : vector<4x32xf32>, vector<32x128xf32>, vector<4x128xf32> -> vector<4x128xf32>
    %51 = arith.addf %49, %50 : vector<4x128xf32>
    %52 = vector.broadcast %19 : vector<1x128xf32> to vector<4x128xf32>
    %53 = arith.mulf %51, %52 : vector<4x128xf32>
    %54 = math.tanh %53 : vector<4x128xf32>
    %55 = vector.broadcast %19 : vector<1x128xf32> to vector<4x128xf32>
    %56 = arith.mulf %54, %55 : vector<4x128xf32>
    %57 = vector.broadcast %22 : vector<1x128xf32> to vector<4x128xf32>
    %58 = arith.addf %56, %57 : vector<4x128xf32>
    %59 = vector.extract_strided_slice %58 {offsets = [0, 0], sizes = [4, 32], strides = [1, 1]} : vector<4x128xf32> to vector<4x32xf32>
    %60 = vector.extract_strided_slice %58 {offsets = [0, 32], sizes = [4, 32], strides = [1, 1]} : vector<4x128xf32> to vector<4x32xf32>
    %61 = vector.extract_strided_slice %58 {offsets = [0, 64], sizes = [4, 32], strides = [1, 1]} : vector<4x128xf32> to vector<4x32xf32>
    %62 = vector.extract_strided_slice %58 {offsets = [0, 96], sizes = [4, 32], strides = [1, 1]} : vector<4x128xf32> to vector<4x32xf32>
    %63 = arith.mulf %60, %42 : vector<4x32xf32>
    %64 = arith.mulf %59, %61 : vector<4x32xf32>
    %65 = arith.addf %63, %64 : vector<4x32xf32>
    %66 = math.tanh %65 : vector<4x32xf32>
    %67 = arith.mulf %62, %66 : vector<4x32xf32>
    %c0_28 = arith.constant 0 : index
    %c1_29 = arith.constant 1 : index
    %c0_30 = arith.constant 0 : index
    %68 = vector.load %arg5[%c0_28, %c1_29, %c0_30] : memref<4x16x32xf32, #tpu.memory_space<vmem>>, vector<4x1x32xf32>
    %69 = vector.shape_cast %68 : vector<4x1x32xf32> to vector<4x32xf32>
    %70 = vector.shape_cast %67 : vector<4x32xf32> to vector<4x1x32xf32>
    tpu.vector_store %arg5[%c0_28, %c1_29, %c0_30], %70 {strides = array<i32>} : memref<4x16x32xf32, #tpu.memory_space<vmem>>, vector<4x1x32xf32>,
    %c0_31 = arith.constant 0 : index
    %c2 = arith.constant 2 : index
    %c0_32 = arith.constant 0 : index
    %71 = vector.load %arg8[%c0_31, %c2, %c0_32] : memref<4x16x128xf32, #tpu.memory_space<vmem>>, vector<4x1x128xf32>
    %72 = vector.shape_cast %71 : vector<4x1x128xf32> to vector<4x128xf32>
    %cst_33 = arith.constant dense<0.000000e+00> : vector<4x128xf32>
    %73 = tpu.matmul %67, %10, %cst_33 {dimension_numbers = #tpu.dot_dimension_numbers<[1], [0], [0], [1], [0, 0, 1, 1], [], []>} : vector<4x32xf32>, vector<32x128xf32>, vector<4x128xf32> -> vector<4x128xf32>
    %74 = arith.addf %72, %73 : vector<4x128xf32>
    %75 = vector.broadcast %19 : vector<1x128xf32> to vector<4x128xf32>
    %76 = arith.mulf %74, %75 : vector<4x128xf32>
    %77 = math.tanh %76 : vector<4x128xf32>
    %78 = vector.broadcast %19 : vector<1x128xf32> to vector<4x128xf32>
    %79 = arith.mulf %77, %78 : vector<4x128xf32>
    %80 = vector.broadcast %22 : vector<1x128xf32> to vector<4x128xf32>
    %81 = arith.addf %79, %80 : vector<4x128xf32>
    %82 = vector.extract_strided_slice %81 {offsets = [0, 0], sizes = [4, 32], strides = [1, 1]} : vector<4x128xf32> to vector<4x32xf32>
    %83 = vector.extract_strided_slice %81 {offsets = [0, 32], sizes = [4, 32], strides = [1, 1]} : vector<4x128xf32> to vector<4x32xf32>
    %84 = vector.extract_strided_slice %81 {offsets = [0, 64], sizes = [4, 32], strides = [1, 1]} : vector<4x128xf32> to vector<4x32xf32>
    %85 = vector.extract_strided_slice %81 {offsets = [0, 96], sizes = [4, 32], strides = [1, 1]} : vector<4x128xf32> to vector<4x32xf32>
    %86 = arith.mulf %83, %65 : vector<4x32xf32>
    %87 = arith.mulf %82, %84 : vector<4x32xf32>
    %88 = arith.addf %86, %87 : vector<4x32xf32>
    %89 = math.tanh %88 : vector<4x32xf32>
    %90 = arith.mulf %85, %89 : vector<4x32xf32>
    %c0_34 = arith.constant 0 : index
    %c2_35 = arith.constant 2 : index
    %c0_36 = arith.constant 0 : index
    %91 = vector.load %arg5[%c0_34, %c2_35, %c0_36] : memref<4x16x32xf32, #tpu.memory_space<vmem>>, vector<4x1x32xf32>
    %92 = vector.shape_cast %91 : vector<4x1x32xf32> to vector<4x32xf32>
    %93 = vector.shape_cast %90 : vector<4x32xf32> to vector<4x1x32xf32>
    tpu.vector_store %arg5[%c0_34, %c2_35, %c0_36], %93 {strides = array<i32>} : memref<4x16x32xf32, #tpu.memory_space<vmem>>, vector<4x1x32xf32>,
    %c0_37 = arith.constant 0 : index
    %c3 = arith.constant 3 : index
    %c0_38 = arith.constant 0 : index
    %94 = vector.load %arg8[%c0_37, %c3, %c0_38] : memref<4x16x128xf32, #tpu.memory_space<vmem>>, vector<4x1x128xf32>
    %95 = vector.shape_cast %94 : vector<4x1x128xf32> to vector<4x128xf32>
    %cst_39 = arith.constant dense<0.000000e+00> : vector<4x128xf32>
    %96 = tpu.matmul %90, %10, %cst_39 {dimension_numbers = #tpu.dot_dimension_numbers<[1], [0], [0], [1], [0, 0, 1, 1], [], []>} : vector<4x32xf32>, vector<32x128xf32>, vector<4x128xf32> -> vector<4x128xf32>
    %97 = arith.addf %95, %96 : vector<4x128xf32>
    %98 = vector.broadcast %19 : vector<1x128xf32> to vector<4x128xf32>
    %99 = arith.mulf %97, %98 : vector<4x128xf32>
    %100 = math.tanh %99 : vector<4x128xf32>
    %101 = vector.broadcast %19 : vector<1x128xf32> to vector<4x128xf32>
    %102 = arith.mulf %100, %101 : vector<4x128xf32>
    %103 = vector.broadcast %22 : vector<1x128xf32> to vector<4x128xf32>
    %104 = arith.addf %102, %103 : vector<4x128xf32>
    %105 = vector.extract_strided_slice %104 {offsets = [0, 0], sizes = [4, 32], strides = [1, 1]} : vector<4x128xf32> to vector<4x32xf32>
    %106 = vector.extract_strided_slice %104 {offsets = [0, 32], sizes = [4, 32], strides = [1, 1]} : vector<4x128xf32> to vector<4x32xf32>
    %107 = vector.extract_strided_slice %104 {offsets = [0, 64], sizes = [4, 32], strides = [1, 1]} : vector<4x128xf32> to vector<4x32xf32>
    %108 = vector.extract_strided_slice %104 {offsets = [0, 96], sizes = [4, 32], strides = [1, 1]} : vector<4x128xf32> to vector<4x32xf32>
    %109 = arith.mulf %106, %88 : vector<4x32xf32>
    %110 = arith.mulf %105, %107 : vector<4x32xf32>
    %111 = arith.addf %109, %110 : vector<4x32xf32>
    %112 = math.tanh %111 : vector<4x32xf32>
    %113 = arith.mulf %108, %112 : vector<4x32xf32>
    %c0_40 = arith.constant 0 : index
    %c3_41 = arith.constant 3 : index
    %c0_42 = arith.constant 0 : index
    %114 = vector.load %arg5[%c0_40, %c3_41, %c0_42] : memref<4x16x32xf32, #tpu.memory_space<vmem>>, vector<4x1x32xf32>
    %115 = vector.shape_cast %114 : vector<4x1x32xf32> to vector<4x32xf32>
    %116 = vector.shape_cast %113 : vector<4x32xf32> to vector<4x1x32xf32>
    tpu.vector_store %arg5[%c0_40, %c3_41, %c0_42], %116 {strides = array<i32>} : memref<4x16x32xf32, #tpu.memory_space<vmem>>, vector<4x1x32xf32>,
    %c0_43 = arith.constant 0 : index
    %c4 = arith.constant 4 : index
    %c0_44 = arith.constant 0 : index
    %117 = vector.load %arg8[%c0_43, %c4, %c0_44] : memref<4x16x128xf32, #tpu.memory_space<vmem>>, vector<4x1x128xf32>
    %118 = vector.shape_cast %117 : vector<4x1x128xf32> to vector<4x128xf32>
    %cst_45 = arith.constant dense<0.000000e+00> : vector<4x128xf32>
    %119 = tpu.matmul %113, %10, %cst_45 {dimension_numbers = #tpu.dot_dimension_numbers<[1], [0], [0], [1], [0, 0, 1, 1], [], []>} : vector<4x32xf32>, vector<32x128xf32>, vector<4x128xf32> -> vector<4x128xf32>
    %120 = arith.addf %118, %119 : vector<4x128xf32>
    %121 = vector.broadcast %19 : vector<1x128xf32> to vector<4x128xf32>
    %122 = arith.mulf %120, %121 : vector<4x128xf32>
    %123 = math.tanh %122 : vector<4x128xf32>
    %124 = vector.broadcast %19 : vector<1x128xf32> to vector<4x128xf32>
    %125 = arith.mulf %123, %124 : vector<4x128xf32>
    %126 = vector.broadcast %22 : vector<1x128xf32> to vector<4x128xf32>
    %127 = arith.addf %125, %126 : vector<4x128xf32>
    %128 = vector.extract_strided_slice %127 {offsets = [0, 0], sizes = [4, 32], strides = [1, 1]} : vector<4x128xf32> to vector<4x32xf32>
    %129 = vector.extract_strided_slice %127 {offsets = [0, 32], sizes = [4, 32], strides = [1, 1]} : vector<4x128xf32> to vector<4x32xf32>
    %130 = vector.extract_strided_slice %127 {offsets = [0, 64], sizes = [4, 32], strides = [1, 1]} : vector<4x128xf32> to vector<4x32xf32>
    %131 = vector.extract_strided_slice %127 {offsets = [0, 96], sizes = [4, 32], strides = [1, 1]} : vector<4x128xf32> to vector<4x32xf32>
    %132 = arith.mulf %129, %111 : vector<4x32xf32>
    %133 = arith.mulf %128, %130 : vector<4x32xf32>
    %134 = arith.addf %132, %133 : vector<4x32xf32>
    %135 = math.tanh %134 : vector<4x32xf32>
    %136 = arith.mulf %131, %135 : vector<4x32xf32>
    %c0_46 = arith.constant 0 : index
    %c4_47 = arith.constant 4 : index
    %c0_48 = arith.constant 0 : index
    %137 = vector.load %arg5[%c0_46, %c4_47, %c0_48] : memref<4x16x32xf32, #tpu.memory_space<vmem>>, vector<4x1x32xf32>
    %138 = vector.shape_cast %137 : vector<4x1x32xf32> to vector<4x32xf32>
    %139 = vector.shape_cast %136 : vector<4x32xf32> to vector<4x1x32xf32>
    tpu.vector_store %arg5[%c0_46, %c4_47, %c0_48], %139 {strides = array<i32>} : memref<4x16x32xf32, #tpu.memory_space<vmem>>, vector<4x1x32xf32>,
    %c0_49 = arith.constant 0 : index
    %c5 = arith.constant 5 : index
    %c0_50 = arith.constant 0 : index
    %140 = vector.load %arg8[%c0_49, %c5, %c0_50] : memref<4x16x128xf32, #tpu.memory_space<vmem>>, vector<4x1x128xf32>
    %141 = vector.shape_cast %140 : vector<4x1x128xf32> to vector<4x128xf32>
    %cst_51 = arith.constant dense<0.000000e+00> : vector<4x128xf32>
    %142 = tpu.matmul %136, %10, %cst_51 {dimension_numbers = #tpu.dot_dimension_numbers<[1], [0], [0], [1], [0, 0, 1, 1], [], []>} : vector<4x32xf32>, vector<32x128xf32>, vector<4x128xf32> -> vector<4x128xf32>
    %143 = arith.addf %141, %142 : vector<4x128xf32>
    %144 = vector.broadcast %19 : vector<1x128xf32> to vector<4x128xf32>
    %145 = arith.mulf %143, %144 : vector<4x128xf32>
    %146 = math.tanh %145 : vector<4x128xf32>
    %147 = vector.broadcast %19 : vector<1x128xf32> to vector<4x128xf32>
    %148 = arith.mulf %146, %147 : vector<4x128xf32>
    %149 = vector.broadcast %22 : vector<1x128xf32> to vector<4x128xf32>
    %150 = arith.addf %148, %149 : vector<4x128xf32>
    %151 = vector.extract_strided_slice %150 {offsets = [0, 0], sizes = [4, 32], strides = [1, 1]} : vector<4x128xf32> to vector<4x32xf32>
    %152 = vector.extract_strided_slice %150 {offsets = [0, 32], sizes = [4, 32], strides = [1, 1]} : vector<4x128xf32> to vector<4x32xf32>
    %153 = vector.extract_strided_slice %150 {offsets = [0, 64], sizes = [4, 32], strides = [1, 1]} : vector<4x128xf32> to vector<4x32xf32>
    %154 = vector.extract_strided_slice %150 {offsets = [0, 96], sizes = [4, 32], strides = [1, 1]} : vector<4x128xf32> to vector<4x32xf32>
    %155 = arith.mulf %152, %134 : vector<4x32xf32>
    %156 = arith.mulf %151, %153 : vector<4x32xf32>
    %157 = arith.addf %155, %156 : vector<4x32xf32>
    %158 = math.tanh %157 : vector<4x32xf32>
    %159 = arith.mulf %154, %158 : vector<4x32xf32>
    %c0_52 = arith.constant 0 : index
    %c5_53 = arith.constant 5 : index
    %c0_54 = arith.constant 0 : index
    %160 = vector.load %arg5[%c0_52, %c5_53, %c0_54] : memref<4x16x32xf32, #tpu.memory_space<vmem>>, vector<4x1x32xf32>
    %161 = vector.shape_cast %160 : vector<4x1x32xf32> to vector<4x32xf32>
    %162 = vector.shape_cast %159 : vector<4x32xf32> to vector<4x1x32xf32>
    tpu.vector_store %arg5[%c0_52, %c5_53, %c0_54], %162 {strides = array<i32>} : memref<4x16x32xf32, #tpu.memory_space<vmem>>, vector<4x1x32xf32>,
    %c0_55 = arith.constant 0 : index
    %c6 = arith.constant 6 : index
    %c0_56 = arith.constant 0 : index
    %163 = vector.load %arg8[%c0_55, %c6, %c0_56] : memref<4x16x128xf32, #tpu.memory_space<vmem>>, vector<4x1x128xf32>
    %164 = vector.shape_cast %163 : vector<4x1x128xf32> to vector<4x128xf32>
    %cst_57 = arith.constant dense<0.000000e+00> : vector<4x128xf32>
    %165 = tpu.matmul %159, %10, %cst_57 {dimension_numbers = #tpu.dot_dimension_numbers<[1], [0], [0], [1], [0, 0, 1, 1], [], []>} : vector<4x32xf32>, vector<32x128xf32>, vector<4x128xf32> -> vector<4x128xf32>
    %166 = arith.addf %164, %165 : vector<4x128xf32>
    %167 = vector.broadcast %19 : vector<1x128xf32> to vector<4x128xf32>
    %168 = arith.mulf %166, %167 : vector<4x128xf32>
    %169 = math.tanh %168 : vector<4x128xf32>
    %170 = vector.broadcast %19 : vector<1x128xf32> to vector<4x128xf32>
    %171 = arith.mulf %169, %170 : vector<4x128xf32>
    %172 = vector.broadcast %22 : vector<1x128xf32> to vector<4x128xf32>
    %173 = arith.addf %171, %172 : vector<4x128xf32>
    %174 = vector.extract_strided_slice %173 {offsets = [0, 0], sizes = [4, 32], strides = [1, 1]} : vector<4x128xf32> to vector<4x32xf32>
    %175 = vector.extract_strided_slice %173 {offsets = [0, 32], sizes = [4, 32], strides = [1, 1]} : vector<4x128xf32> to vector<4x32xf32>
    %176 = vector.extract_strided_slice %173 {offsets = [0, 64], sizes = [4, 32], strides = [1, 1]} : vector<4x128xf32> to vector<4x32xf32>
    %177 = vector.extract_strided_slice %173 {offsets = [0, 96], sizes = [4, 32], strides = [1, 1]} : vector<4x128xf32> to vector<4x32xf32>
    %178 = arith.mulf %175, %157 : vector<4x32xf32>
    %179 = arith.mulf %174, %176 : vector<4x32xf32>
    %180 = arith.addf %178, %179 : vector<4x32xf32>
    %181 = math.tanh %180 : vector<4x32xf32>
    %182 = arith.mulf %177, %181 : vector<4x32xf32>
    %c0_58 = arith.constant 0 : index
    %c6_59 = arith.constant 6 : index
    %c0_60 = arith.constant 0 : index
    %183 = vector.load %arg5[%c0_58, %c6_59, %c0_60] : memref<4x16x32xf32, #tpu.memory_space<vmem>>, vector<4x1x32xf32>
    %184 = vector.shape_cast %183 : vector<4x1x32xf32> to vector<4x32xf32>
    %185 = vector.shape_cast %182 : vector<4x32xf32> to vector<4x1x32xf32>
    tpu.vector_store %arg5[%c0_58, %c6_59, %c0_60], %185 {strides = array<i32>} : memref<4x16x32xf32, #tpu.memory_space<vmem>>, vector<4x1x32xf32>,
    %c0_61 = arith.constant 0 : index
    %c7 = arith.constant 7 : index
    %c0_62 = arith.constant 0 : index
    %186 = vector.load %arg8[%c0_61, %c7, %c0_62] : memref<4x16x128xf32, #tpu.memory_space<vmem>>, vector<4x1x128xf32>
    %187 = vector.shape_cast %186 : vector<4x1x128xf32> to vector<4x128xf32>
    %cst_63 = arith.constant dense<0.000000e+00> : vector<4x128xf32>
    %188 = tpu.matmul %182, %10, %cst_63 {dimension_numbers = #tpu.dot_dimension_numbers<[1], [0], [0], [1], [0, 0, 1, 1], [], []>} : vector<4x32xf32>, vector<32x128xf32>, vector<4x128xf32> -> vector<4x128xf32>
    %189 = arith.addf %187, %188 : vector<4x128xf32>
    %190 = vector.broadcast %19 : vector<1x128xf32> to vector<4x128xf32>
    %191 = arith.mulf %189, %190 : vector<4x128xf32>
    %192 = math.tanh %191 : vector<4x128xf32>
    %193 = vector.broadcast %19 : vector<1x128xf32> to vector<4x128xf32>
    %194 = arith.mulf %192, %193 : vector<4x128xf32>
    %195 = vector.broadcast %22 : vector<1x128xf32> to vector<4x128xf32>
    %196 = arith.addf %194, %195 : vector<4x128xf32>
    %197 = vector.extract_strided_slice %196 {offsets = [0, 0], sizes = [4, 32], strides = [1, 1]} : vector<4x128xf32> to vector<4x32xf32>
    %198 = vector.extract_strided_slice %196 {offsets = [0, 32], sizes = [4, 32], strides = [1, 1]} : vector<4x128xf32> to vector<4x32xf32>
    %199 = vector.extract_strided_slice %196 {offsets = [0, 64], sizes = [4, 32], strides = [1, 1]} : vector<4x128xf32> to vector<4x32xf32>
    %200 = vector.extract_strided_slice %196 {offsets = [0, 96], sizes = [4, 32], strides = [1, 1]} : vector<4x128xf32> to vector<4x32xf32>
    %201 = arith.mulf %198, %180 : vector<4x32xf32>
    %202 = arith.mulf %197, %199 : vector<4x32xf32>
    %203 = arith.addf %201, %202 : vector<4x32xf32>
    %204 = math.tanh %203 : vector<4x32xf32>
    %205 = arith.mulf %200, %204 : vector<4x32xf32>
    %c0_64 = arith.constant 0 : index
    %c7_65 = arith.constant 7 : index
    %c0_66 = arith.constant 0 : index
    %206 = vector.load %arg5[%c0_64, %c7_65, %c0_66] : memref<4x16x32xf32, #tpu.memory_space<vmem>>, vector<4x1x32xf32>
    %207 = vector.shape_cast %206 : vector<4x1x32xf32> to vector<4x32xf32>
    %208 = vector.shape_cast %205 : vector<4x32xf32> to vector<4x1x32xf32>
    tpu.vector_store %arg5[%c0_64, %c7_65, %c0_66], %208 {strides = array<i32>} : memref<4x16x32xf32, #tpu.memory_space<vmem>>, vector<4x1x32xf32>,
    %c0_67 = arith.constant 0 : index
    %c8 = arith.constant 8 : index
    %c0_68 = arith.constant 0 : index
    %209 = vector.load %arg8[%c0_67, %c8, %c0_68] : memref<4x16x128xf32, #tpu.memory_space<vmem>>, vector<4x1x128xf32>
    %210 = vector.shape_cast %209 : vector<4x1x128xf32> to vector<4x128xf32>
    %cst_69 = arith.constant dense<0.000000e+00> : vector<4x128xf32>
    %211 = tpu.matmul %205, %10, %cst_69 {dimension_numbers = #tpu.dot_dimension_numbers<[1], [0], [0], [1], [0, 0, 1, 1], [], []>} : vector<4x32xf32>, vector<32x128xf32>, vector<4x128xf32> -> vector<4x128xf32>
    %212 = arith.addf %210, %211 : vector<4x128xf32>
    %213 = vector.broadcast %19 : vector<1x128xf32> to vector<4x128xf32>
    %214 = arith.mulf %212, %213 : vector<4x128xf32>
    %215 = math.tanh %214 : vector<4x128xf32>
    %216 = vector.broadcast %19 : vector<1x128xf32> to vector<4x128xf32>
    %217 = arith.mulf %215, %216 : vector<4x128xf32>
    %218 = vector.broadcast %22 : vector<1x128xf32> to vector<4x128xf32>
    %219 = arith.addf %217, %218 : vector<4x128xf32>
    %220 = vector.extract_strided_slice %219 {offsets = [0, 0], sizes = [4, 32], strides = [1, 1]} : vector<4x128xf32> to vector<4x32xf32>
    %221 = vector.extract_strided_slice %219 {offsets = [0, 32], sizes = [4, 32], strides = [1, 1]} : vector<4x128xf32> to vector<4x32xf32>
    %222 = vector.extract_strided_slice %219 {offsets = [0, 64], sizes = [4, 32], strides = [1, 1]} : vector<4x128xf32> to vector<4x32xf32>
    %223 = vector.extract_strided_slice %219 {offsets = [0, 96], sizes = [4, 32], strides = [1, 1]} : vector<4x128xf32> to vector<4x32xf32>
    %224 = arith.mulf %221, %203 : vector<4x32xf32>
    %225 = arith.mulf %220, %222 : vector<4x32xf32>
    %226 = arith.addf %224, %225 : vector<4x32xf32>
    %227 = math.tanh %226 : vector<4x32xf32>
    %228 = arith.mulf %223, %227 : vector<4x32xf32>
    %c0_70 = arith.constant 0 : index
    %c8_71 = arith.constant 8 : index
    %c0_72 = arith.constant 0 : index
    %229 = vector.load %arg5[%c0_70, %c8_71, %c0_72] : memref<4x16x32xf32, #tpu.memory_space<vmem>>, vector<4x1x32xf32>
    %230 = vector.shape_cast %229 : vector<4x1x32xf32> to vector<4x32xf32>
    %231 = vector.shape_cast %228 : vector<4x32xf32> to vector<4x1x32xf32>
    tpu.vector_store %arg5[%c0_70, %c8_71, %c0_72], %231 {strides = array<i32>} : memref<4x16x32xf32, #tpu.memory_space<vmem>>, vector<4x1x32xf32>,
    %c0_73 = arith.constant 0 : index
    %c9 = arith.constant 9 : index
    %c0_74 = arith.constant 0 : index
    %232 = vector.load %arg8[%c0_73, %c9, %c0_74] : memref<4x16x128xf32, #tpu.memory_space<vmem>>, vector<4x1x128xf32>
    %233 = vector.shape_cast %232 : vector<4x1x128xf32> to vector<4x128xf32>
    %cst_75 = arith.constant dense<0.000000e+00> : vector<4x128xf32>
    %234 = tpu.matmul %228, %10, %cst_75 {dimension_numbers = #tpu.dot_dimension_numbers<[1], [0], [0], [1], [0, 0, 1, 1], [], []>} : vector<4x32xf32>, vector<32x128xf32>, vector<4x128xf32> -> vector<4x128xf32>
    %235 = arith.addf %233, %234 : vector<4x128xf32>
    %236 = vector.broadcast %19 : vector<1x128xf32> to vector<4x128xf32>
    %237 = arith.mulf %235, %236 : vector<4x128xf32>
    %238 = math.tanh %237 : vector<4x128xf32>
    %239 = vector.broadcast %19 : vector<1x128xf32> to vector<4x128xf32>
    %240 = arith.mulf %238, %239 : vector<4x128xf32>
    %241 = vector.broadcast %22 : vector<1x128xf32> to vector<4x128xf32>
    %242 = arith.addf %240, %241 : vector<4x128xf32>
    %243 = vector.extract_strided_slice %242 {offsets = [0, 0], sizes = [4, 32], strides = [1, 1]} : vector<4x128xf32> to vector<4x32xf32>
    %244 = vector.extract_strided_slice %242 {offsets = [0, 32], sizes = [4, 32], strides = [1, 1]} : vector<4x128xf32> to vector<4x32xf32>
    %245 = vector.extract_strided_slice %242 {offsets = [0, 64], sizes = [4, 32], strides = [1, 1]} : vector<4x128xf32> to vector<4x32xf32>
    %246 = vector.extract_strided_slice %242 {offsets = [0, 96], sizes = [4, 32], strides = [1, 1]} : vector<4x128xf32> to vector<4x32xf32>
    %247 = arith.mulf %244, %226 : vector<4x32xf32>
    %248 = arith.mulf %243, %245 : vector<4x32xf32>
    %249 = arith.addf %247, %248 : vector<4x32xf32>
    %250 = math.tanh %249 : vector<4x32xf32>
    %251 = arith.mulf %246, %250 : vector<4x32xf32>
    %c0_76 = arith.constant 0 : index
    %c9_77 = arith.constant 9 : index
    %c0_78 = arith.constant 0 : index
    %252 = vector.load %arg5[%c0_76, %c9_77, %c0_78] : memref<4x16x32xf32, #tpu.memory_space<vmem>>, vector<4x1x32xf32>
    %253 = vector.shape_cast %252 : vector<4x1x32xf32> to vector<4x32xf32>
    %254 = vector.shape_cast %251 : vector<4x32xf32> to vector<4x1x32xf32>
    tpu.vector_store %arg5[%c0_76, %c9_77, %c0_78], %254 {strides = array<i32>} : memref<4x16x32xf32, #tpu.memory_space<vmem>>, vector<4x1x32xf32>,
    %c0_79 = arith.constant 0 : index
    %c10 = arith.constant 10 : index
    %c0_80 = arith.constant 0 : index
    %255 = vector.load %arg8[%c0_79, %c10, %c0_80] : memref<4x16x128xf32, #tpu.memory_space<vmem>>, vector<4x1x128xf32>
    %256 = vector.shape_cast %255 : vector<4x1x128xf32> to vector<4x128xf32>
    %cst_81 = arith.constant dense<0.000000e+00> : vector<4x128xf32>
    %257 = tpu.matmul %251, %10, %cst_81 {dimension_numbers = #tpu.dot_dimension_numbers<[1], [0], [0], [1], [0, 0, 1, 1], [], []>} : vector<4x32xf32>, vector<32x128xf32>, vector<4x128xf32> -> vector<4x128xf32>
    %258 = arith.addf %256, %257 : vector<4x128xf32>
    %259 = vector.broadcast %19 : vector<1x128xf32> to vector<4x128xf32>
    %260 = arith.mulf %258, %259 : vector<4x128xf32>
    %261 = math.tanh %260 : vector<4x128xf32>
    %262 = vector.broadcast %19 : vector<1x128xf32> to vector<4x128xf32>
    %263 = arith.mulf %261, %262 : vector<4x128xf32>
    %264 = vector.broadcast %22 : vector<1x128xf32> to vector<4x128xf32>
    %265 = arith.addf %263, %264 : vector<4x128xf32>
    %266 = vector.extract_strided_slice %265 {offsets = [0, 0], sizes = [4, 32], strides = [1, 1]} : vector<4x128xf32> to vector<4x32xf32>
    %267 = vector.extract_strided_slice %265 {offsets = [0, 32], sizes = [4, 32], strides = [1, 1]} : vector<4x128xf32> to vector<4x32xf32>
    %268 = vector.extract_strided_slice %265 {offsets = [0, 64], sizes = [4, 32], strides = [1, 1]} : vector<4x128xf32> to vector<4x32xf32>
    %269 = vector.extract_strided_slice %265 {offsets = [0, 96], sizes = [4, 32], strides = [1, 1]} : vector<4x128xf32> to vector<4x32xf32>
    %270 = arith.mulf %267, %249 : vector<4x32xf32>
    %271 = arith.mulf %266, %268 : vector<4x32xf32>
    %272 = arith.addf %270, %271 : vector<4x32xf32>
    %273 = math.tanh %272 : vector<4x32xf32>
    %274 = arith.mulf %269, %273 : vector<4x32xf32>
    %c0_82 = arith.constant 0 : index
    %c10_83 = arith.constant 10 : index
    %c0_84 = arith.constant 0 : index
    %275 = vector.load %arg5[%c0_82, %c10_83, %c0_84] : memref<4x16x32xf32, #tpu.memory_space<vmem>>, vector<4x1x32xf32>
    %276 = vector.shape_cast %275 : vector<4x1x32xf32> to vector<4x32xf32>
    %277 = vector.shape_cast %274 : vector<4x32xf32> to vector<4x1x32xf32>
    tpu.vector_store %arg5[%c0_82, %c10_83, %c0_84], %277 {strides = array<i32>} : memref<4x16x32xf32, #tpu.memory_space<vmem>>, vector<4x1x32xf32>,
    %c0_85 = arith.constant 0 : index
    %c11 = arith.constant 11 : index
    %c0_86 = arith.constant 0 : index
    %278 = vector.load %arg8[%c0_85, %c11, %c0_86] : memref<4x16x128xf32, #tpu.memory_space<vmem>>, vector<4x1x128xf32>
    %279 = vector.shape_cast %278 : vector<4x1x128xf32> to vector<4x128xf32>
    %cst_87 = arith.constant dense<0.000000e+00> : vector<4x128xf32>
    %280 = tpu.matmul %274, %10, %cst_87 {dimension_numbers = #tpu.dot_dimension_numbers<[1], [0], [0], [1], [0, 0, 1, 1], [], []>} : vector<4x32xf32>, vector<32x128xf32>, vector<4x128xf32> -> vector<4x128xf32>
    %281 = arith.addf %279, %280 : vector<4x128xf32>
    %282 = vector.broadcast %19 : vector<1x128xf32> to vector<4x128xf32>
    %283 = arith.mulf %281, %282 : vector<4x128xf32>
    %284 = math.tanh %283 : vector<4x128xf32>
    %285 = vector.broadcast %19 : vector<1x128xf32> to vector<4x128xf32>
    %286 = arith.mulf %284, %285 : vector<4x128xf32>
    %287 = vector.broadcast %22 : vector<1x128xf32> to vector<4x128xf32>
    %288 = arith.addf %286, %287 : vector<4x128xf32>
    %289 = vector.extract_strided_slice %288 {offsets = [0, 0], sizes = [4, 32], strides = [1, 1]} : vector<4x128xf32> to vector<4x32xf32>
    %290 = vector.extract_strided_slice %288 {offsets = [0, 32], sizes = [4, 32], strides = [1, 1]} : vector<4x128xf32> to vector<4x32xf32>
    %291 = vector.extract_strided_slice %288 {offsets = [0, 64], sizes = [4, 32], strides = [1, 1]} : vector<4x128xf32> to vector<4x32xf32>
    %292 = vector.extract_strided_slice %288 {offsets = [0, 96], sizes = [4, 32], strides = [1, 1]} : vector<4x128xf32> to vector<4x32xf32>
    %293 = arith.mulf %290, %272 : vector<4x32xf32>
    %294 = arith.mulf %289, %291 : vector<4x32xf32>
    %295 = arith.addf %293, %294 : vector<4x32xf32>
    %296 = math.tanh %295 : vector<4x32xf32>
    %297 = arith.mulf %292, %296 : vector<4x32xf32>
    %c0_88 = arith.constant 0 : index
    %c11_89 = arith.constant 11 : index
    %c0_90 = arith.constant 0 : index
    %298 = vector.load %arg5[%c0_88, %c11_89, %c0_90] : memref<4x16x32xf32, #tpu.memory_space<vmem>>, vector<4x1x32xf32>
    %299 = vector.shape_cast %298 : vector<4x1x32xf32> to vector<4x32xf32>
    %300 = vector.shape_cast %297 : vector<4x32xf32> to vector<4x1x32xf32>
    tpu.vector_store %arg5[%c0_88, %c11_89, %c0_90], %300 {strides = array<i32>} : memref<4x16x32xf32, #tpu.memory_space<vmem>>, vector<4x1x32xf32>,
    %c0_91 = arith.constant 0 : index
    %c12 = arith.constant 12 : index
    %c0_92 = arith.constant 0 : index
    %301 = vector.load %arg8[%c0_91, %c12, %c0_92] : memref<4x16x128xf32, #tpu.memory_space<vmem>>, vector<4x1x128xf32>
    %302 = vector.shape_cast %301 : vector<4x1x128xf32> to vector<4x128xf32>
    %cst_93 = arith.constant dense<0.000000e+00> : vector<4x128xf32>
    %303 = tpu.matmul %297, %10, %cst_93 {dimension_numbers = #tpu.dot_dimension_numbers<[1], [0], [0], [1], [0, 0, 1, 1], [], []>} : vector<4x32xf32>, vector<32x128xf32>, vector<4x128xf32> -> vector<4x128xf32>
    %304 = arith.addf %302, %303 : vector<4x128xf32>
    %305 = vector.broadcast %19 : vector<1x128xf32> to vector<4x128xf32>
    %306 = arith.mulf %304, %305 : vector<4x128xf32>
    %307 = math.tanh %306 : vector<4x128xf32>
    %308 = vector.broadcast %19 : vector<1x128xf32> to vector<4x128xf32>
    %309 = arith.mulf %307, %308 : vector<4x128xf32>
    %310 = vector.broadcast %22 : vector<1x128xf32> to vector<4x128xf32>
    %311 = arith.addf %309, %310 : vector<4x128xf32>
    %312 = vector.extract_strided_slice %311 {offsets = [0, 0], sizes = [4, 32], strides = [1, 1]} : vector<4x128xf32> to vector<4x32xf32>
    %313 = vector.extract_strided_slice %311 {offsets = [0, 32], sizes = [4, 32], strides = [1, 1]} : vector<4x128xf32> to vector<4x32xf32>
    %314 = vector.extract_strided_slice %311 {offsets = [0, 64], sizes = [4, 32], strides = [1, 1]} : vector<4x128xf32> to vector<4x32xf32>
    %315 = vector.extract_strided_slice %311 {offsets = [0, 96], sizes = [4, 32], strides = [1, 1]} : vector<4x128xf32> to vector<4x32xf32>
    %316 = arith.mulf %313, %295 : vector<4x32xf32>
    %317 = arith.mulf %312, %314 : vector<4x32xf32>
    %318 = arith.addf %316, %317 : vector<4x32xf32>
    %319 = math.tanh %318 : vector<4x32xf32>
    %320 = arith.mulf %315, %319 : vector<4x32xf32>
    %c0_94 = arith.constant 0 : index
    %c12_95 = arith.constant 12 : index
    %c0_96 = arith.constant 0 : index
    %321 = vector.load %arg5[%c0_94, %c12_95, %c0_96] : memref<4x16x32xf32, #tpu.memory_space<vmem>>, vector<4x1x32xf32>
    %322 = vector.shape_cast %321 : vector<4x1x32xf32> to vector<4x32xf32>
    %323 = vector.shape_cast %320 : vector<4x32xf32> to vector<4x1x32xf32>
    tpu.vector_store %arg5[%c0_94, %c12_95, %c0_96], %323 {strides = array<i32>} : memref<4x16x32xf32, #tpu.memory_space<vmem>>, vector<4x1x32xf32>,
    %c0_97 = arith.constant 0 : index
    %c13 = arith.constant 13 : index
    %c0_98 = arith.constant 0 : index
    %324 = vector.load %arg8[%c0_97, %c13, %c0_98] : memref<4x16x128xf32, #tpu.memory_space<vmem>>, vector<4x1x128xf32>
    %325 = vector.shape_cast %324 : vector<4x1x128xf32> to vector<4x128xf32>
    %cst_99 = arith.constant dense<0.000000e+00> : vector<4x128xf32>
    %326 = tpu.matmul %320, %10, %cst_99 {dimension_numbers = #tpu.dot_dimension_numbers<[1], [0], [0], [1], [0, 0, 1, 1], [], []>} : vector<4x32xf32>, vector<32x128xf32>, vector<4x128xf32> -> vector<4x128xf32>
    %327 = arith.addf %325, %326 : vector<4x128xf32>
    %328 = vector.broadcast %19 : vector<1x128xf32> to vector<4x128xf32>
    %329 = arith.mulf %327, %328 : vector<4x128xf32>
    %330 = math.tanh %329 : vector<4x128xf32>
    %331 = vector.broadcast %19 : vector<1x128xf32> to vector<4x128xf32>
    %332 = arith.mulf %330, %331 : vector<4x128xf32>
    %333 = vector.broadcast %22 : vector<1x128xf32> to vector<4x128xf32>
    %334 = arith.addf %332, %333 : vector<4x128xf32>
    %335 = vector.extract_strided_slice %334 {offsets = [0, 0], sizes = [4, 32], strides = [1, 1]} : vector<4x128xf32> to vector<4x32xf32>
    %336 = vector.extract_strided_slice %334 {offsets = [0, 32], sizes = [4, 32], strides = [1, 1]} : vector<4x128xf32> to vector<4x32xf32>
    %337 = vector.extract_strided_slice %334 {offsets = [0, 64], sizes = [4, 32], strides = [1, 1]} : vector<4x128xf32> to vector<4x32xf32>
    %338 = vector.extract_strided_slice %334 {offsets = [0, 96], sizes = [4, 32], strides = [1, 1]} : vector<4x128xf32> to vector<4x32xf32>
    %339 = arith.mulf %336, %318 : vector<4x32xf32>
    %340 = arith.mulf %335, %337 : vector<4x32xf32>
    %341 = arith.addf %339, %340 : vector<4x32xf32>
    %342 = math.tanh %341 : vector<4x32xf32>
    %343 = arith.mulf %338, %342 : vector<4x32xf32>
    %c0_100 = arith.constant 0 : index
    %c13_101 = arith.constant 13 : index
    %c0_102 = arith.constant 0 : index
    %344 = vector.load %arg5[%c0_100, %c13_101, %c0_102] : memref<4x16x32xf32, #tpu.memory_space<vmem>>, vector<4x1x32xf32>
    %345 = vector.shape_cast %344 : vector<4x1x32xf32> to vector<4x32xf32>
    %346 = vector.shape_cast %343 : vector<4x32xf32> to vector<4x1x32xf32>
    tpu.vector_store %arg5[%c0_100, %c13_101, %c0_102], %346 {strides = array<i32>} : memref<4x16x32xf32, #tpu.memory_space<vmem>>, vector<4x1x32xf32>,
    %c0_103 = arith.constant 0 : index
    %c14 = arith.constant 14 : index
    %c0_104 = arith.constant 0 : index
    %347 = vector.load %arg8[%c0_103, %c14, %c0_104] : memref<4x16x128xf32, #tpu.memory_space<vmem>>, vector<4x1x128xf32>
    %348 = vector.shape_cast %347 : vector<4x1x128xf32> to vector<4x128xf32>
    %cst_105 = arith.constant dense<0.000000e+00> : vector<4x128xf32>
    %349 = tpu.matmul %343, %10, %cst_105 {dimension_numbers = #tpu.dot_dimension_numbers<[1], [0], [0], [1], [0, 0, 1, 1], [], []>} : vector<4x32xf32>, vector<32x128xf32>, vector<4x128xf32> -> vector<4x128xf32>
    %350 = arith.addf %348, %349 : vector<4x128xf32>
    %351 = vector.broadcast %19 : vector<1x128xf32> to vector<4x128xf32>
    %352 = arith.mulf %350, %351 : vector<4x128xf32>
    %353 = math.tanh %352 : vector<4x128xf32>
    %354 = vector.broadcast %19 : vector<1x128xf32> to vector<4x128xf32>
    %355 = arith.mulf %353, %354 : vector<4x128xf32>
    %356 = vector.broadcast %22 : vector<1x128xf32> to vector<4x128xf32>
    %357 = arith.addf %355, %356 : vector<4x128xf32>
    %358 = vector.extract_strided_slice %357 {offsets = [0, 0], sizes = [4, 32], strides = [1, 1]} : vector<4x128xf32> to vector<4x32xf32>
    %359 = vector.extract_strided_slice %357 {offsets = [0, 32], sizes = [4, 32], strides = [1, 1]} : vector<4x128xf32> to vector<4x32xf32>
    %360 = vector.extract_strided_slice %357 {offsets = [0, 64], sizes = [4, 32], strides = [1, 1]} : vector<4x128xf32> to vector<4x32xf32>
    %361 = vector.extract_strided_slice %357 {offsets = [0, 96], sizes = [4, 32], strides = [1, 1]} : vector<4x128xf32> to vector<4x32xf32>
    %362 = arith.mulf %359, %341 : vector<4x32xf32>
    %363 = arith.mulf %358, %360 : vector<4x32xf32>
    %364 = arith.addf %362, %363 : vector<4x32xf32>
    %365 = math.tanh %364 : vector<4x32xf32>
    %366 = arith.mulf %361, %365 : vector<4x32xf32>
    %c0_106 = arith.constant 0 : index
    %c14_107 = arith.constant 14 : index
    %c0_108 = arith.constant 0 : index
    %367 = vector.load %arg5[%c0_106, %c14_107, %c0_108] : memref<4x16x32xf32, #tpu.memory_space<vmem>>, vector<4x1x32xf32>
    %368 = vector.shape_cast %367 : vector<4x1x32xf32> to vector<4x32xf32>
    %369 = vector.shape_cast %366 : vector<4x32xf32> to vector<4x1x32xf32>
    tpu.vector_store %arg5[%c0_106, %c14_107, %c0_108], %369 {strides = array<i32>} : memref<4x16x32xf32, #tpu.memory_space<vmem>>, vector<4x1x32xf32>,
    %c0_109 = arith.constant 0 : index
    %c15 = arith.constant 15 : index
    %c0_110 = arith.constant 0 : index
    %370 = vector.load %arg8[%c0_109, %c15, %c0_110] : memref<4x16x128xf32, #tpu.memory_space<vmem>>, vector<4x1x128xf32>
    %371 = vector.shape_cast %370 : vector<4x1x128xf32> to vector<4x128xf32>
    %cst_111 = arith.constant dense<0.000000e+00> : vector<4x128xf32>
    %372 = tpu.matmul %366, %10, %cst_111 {dimension_numbers = #tpu.dot_dimension_numbers<[1], [0], [0], [1], [0, 0, 1, 1], [], []>} : vector<4x32xf32>, vector<32x128xf32>, vector<4x128xf32> -> vector<4x128xf32>
    %373 = arith.addf %371, %372 : vector<4x128xf32>
    %374 = vector.broadcast %19 : vector<1x128xf32> to vector<4x128xf32>
    %375 = arith.mulf %373, %374 : vector<4x128xf32>
    %376 = math.tanh %375 : vector<4x128xf32>
    %377 = vector.broadcast %19 : vector<1x128xf32> to vector<4x128xf32>
    %378 = arith.mulf %376, %377 : vector<4x128xf32>
    %379 = vector.broadcast %22 : vector<1x128xf32> to vector<4x128xf32>
    %380 = arith.addf %378, %379 : vector<4x128xf32>
    %381 = vector.extract_strided_slice %380 {offsets = [0, 0], sizes = [4, 32], strides = [1, 1]} : vector<4x128xf32> to vector<4x32xf32>
    %382 = vector.extract_strided_slice %380 {offsets = [0, 32], sizes = [4, 32], strides = [1, 1]} : vector<4x128xf32> to vector<4x32xf32>
    %383 = vector.extract_strided_slice %380 {offsets = [0, 64], sizes = [4, 32], strides = [1, 1]} : vector<4x128xf32> to vector<4x32xf32>
    %384 = vector.extract_strided_slice %380 {offsets = [0, 96], sizes = [4, 32], strides = [1, 1]} : vector<4x128xf32> to vector<4x32xf32>
    %385 = arith.mulf %382, %364 : vector<4x32xf32>
    %386 = arith.mulf %381, %383 : vector<4x32xf32>
    %387 = arith.addf %385, %386 : vector<4x32xf32>
    %388 = math.tanh %387 : vector<4x32xf32>
    %389 = arith.mulf %384, %388 : vector<4x32xf32>
    %c0_112 = arith.constant 0 : index
    %c15_113 = arith.constant 15 : index
    %c0_114 = arith.constant 0 : index
    %390 = vector.load %arg5[%c0_112, %c15_113, %c0_114] : memref<4x16x32xf32, #tpu.memory_space<vmem>>, vector<4x1x32xf32>
    %391 = vector.shape_cast %390 : vector<4x1x32xf32> to vector<4x32xf32>
    %392 = vector.shape_cast %389 : vector<4x32xf32> to vector<4x1x32xf32>
    tpu.vector_store %arg5[%c0_112, %c15_113, %c0_114], %392 {strides = array<i32>} : memref<4x16x32xf32, #tpu.memory_space<vmem>>, vector<4x1x32xf32>,
    %c0_115 = arith.constant 0 : index
    %c0_116 = arith.constant 0 : index
    %c0_117 = arith.constant 0 : index
    %393 = vector.load %arg6[%c0_115, %c0_116, %c0_117] : memref<1x4x32xf32, #tpu.memory_space<vmem>>, vector<1x4x32xf32>
    %394 = vector.shape_cast %393 : vector<1x4x32xf32> to vector<4x32xf32>
    %395 = vector.shape_cast %389 : vector<4x32xf32> to vector<1x4x32xf32>
    tpu.vector_store %arg6[%c0_115, %c0_116, %c0_117], %395 {strides = array<i32>} : memref<1x4x32xf32, #tpu.memory_space<vmem>>, vector<1x4x32xf32>,
    %c0_118 = arith.constant 0 : index
    %c0_119 = arith.constant 0 : index
    %c0_120 = arith.constant 0 : index
    %396 = vector.load %arg7[%c0_118, %c0_119, %c0_120] : memref<1x4x32xf32, #tpu.memory_space<vmem>>, vector<1x4x32xf32>
    %397 = vector.shape_cast %396 : vector<1x4x32xf32> to vector<4x32xf32>
    %398 = vector.shape_cast %387 : vector<4x32xf32> to vector<1x4x32xf32>
    tpu.vector_store %arg7[%c0_118, %c0_119, %c0_120], %398 {strides = array<i32>} : memref<1x4x32xf32, #tpu.memory_space<vmem>>, vector<1x4x32xf32>,
    return
  }
}

</mosaic_0001>

<bundles_post_ra>
// kernel: tpu_custom_call.1
= control target key start
LH: loop header
LB: loop body
LE: loop exit
PB: predicated region body
PF: predicated region fallthrough
CT: control target
= control target key end

     0   :  { %13 = vsyncpa [#allocation4], 0  ;;  %vm68_vm0 = vcmask 1041408   ;;  %vm43_vm1 = vcmask 15360   ;;  %v5554_v5 = vmov 0.0   ;;  %vm4105_vm2 = vmmov 0   ;;  %s5546_s0 = inlined_call_operand.vmem [shape: f32[64,2], index: 0, kind: input, shape index: {}]   ;;  %s5547_s1 = inlined_call_operand.vmem [shape: f32[2,128], index: 1, kind: input, shape index: {}]   ;;  %s5548_s2 = inlined_call_operand.vmem [shape: f32[1,128], index: 2, kind: input, shape index: {}]   ;;  %s5549_s3 = inlined_call_operand.vmem [shape: f32[1,128], index: 3, kind: input, shape index: {}]   ;;  %s5550_s4 = inlined_call_operand.vmem [shape: f32[32,128], index: 4, kind: input, shape index: {}]   ;;  %s5551_s5 = inlined_call_operand.hbm [shape: f32[4,16,32], index: 5, kind: output, shape index: {0}]   ;;  %s5552_s6 = inlined_call_operand.hbm [shape: f32[1,4,32], index: 6, kind: output, shape index: {1}]   ;;  %s5553_s7 = inlined_call_operand.hbm [shape: f32[1,4,32], index: 7, kind: output, shape index: {2}]  }
   0x1   :  { %v36_v0 = vld [vmem:[%s5547_s1] sm:$0x3]  ;;  %v29_v2 = vld [vmem:[%s5546_s0 + $0x8] sm:$0xff]  ;;  %v30_v3 = vld [vmem:[%s5546_s0 + $0x10] sm:$0xff]  ;;  %3589 = vmatprep.subr.mxu1 %v5554_v5  ;;  %3597 = vmatprep.mubr.msk.f32.mxu1 %vm4105_vm2, %v5554_v5 }
   0x2   :  { %v28_v1 = vld [vmem:[%s5546_s0] sm:$0xff]  ;;  %3575 = vmatprep.subr.msk.mxu0 %vm68_vm0, %v36_v0  ;;  %v4171_v4 = vld [vmem:[%s5550_s4 + $0x18] sm:$0xff]  ;;  %v4177_v6 = vld [vmem:[%s5550_s4 + $0x10] sm:$0xff] }
   0x3   :  { %3577 = vmatprep.mubr.msk.f32.mxu0 %vm43_vm1, %v28_v1  ;;  %3576 = vmatpush3.msk.msra.mxu0 %vm68_vm0, %v36_v0  ;;  %v31_v7 = vld [vmem:[%s5546_s0 + $0x18] sm:$0xff]  ;;  %v4189_v8 = vld [vmem:[%s5550_s4 + $0x8] sm:$0xff]  ;;  %v32_v9 = vld [vmem:[%s5546_s0 + $0x20] sm:$0xff] }
   0x4   :  { %3578 = vmatmul.mubr.msk.f32.vlgmr.msra.gmra.mxu0 %vm43_vm1, %v29_v2  ;;  %3590 = vmatpush3.msra.mxu1 %v4171_v4 }
   0x5   :  { %3580 = vmatprep.mubr.msk.f32.mxu0 %vm43_vm1, %v30_v3  ;;  %3591 = vmatprep.subr.mxu1 %v5554_v5 }
   0x6   :  { %3592 = vmatpush3.msra.mxu1 %v4177_v6 }
   0x7   :  { %14 = vsyncpa [#allocation6], 0  ;;  %3593 = vmatprep.subr.mxu1 %v5554_v5  ;;  %v4201_v10 = vld [vmem:[%s5550_s4] sm:$0xff]  ;;  %3611 = vmatprep.subr.mxu0 %v5554_v5  ;;  %v33_v11 = vld [vmem:[%s5546_s0 + $0x28] sm:$0xff]  ;;  %v38_v14 = vlaneseq  ;;  %v4106_v37 = vmov 0.5   ;;  %vm396_vm6 = vcmask 1041409  }
   0x8   :  { %3581 = vmatmul.mubr.msk.f32.gmra.mxu0 %vm43_vm1, %v31_v7  ;;  %3594 = vmatpush3.msra.mxu1 %v4189_v8  ;;  %v34_v12 = vld [vmem:[%s5546_s0 + $0x30] sm:$0xff]  ;;  %v35_v13 = vld [vmem:[%s5546_s0 + $0x38] sm:$0xff]  ;;  %v25_v16 = vld [vmem:[%s5548_s2] sm:$0x1]  ;;  %s4107_s2 = smov 64   ;;  %vm399_vm7 = vcmask 1042434  }
   0x9   :  { %3583 = vmatprep.mubr.msk.f32.mxu0 %vm43_vm1, %v32_v9  ;;  %3595 = vmatprep.subr.mxu1 %v5554_v5  ;;  %v39_v15 = vshrl.u32 %v38_v14, 7  ;;  %v26_v17 = vld [vmem:[%s5549_s3] sm:$0x1]  ;;  %v190_v23 = vand.u32 127, %v38_v14  ;;  %s4108_s3 = smov 32   ;;  %vm402_vm8 = vcmask 1043459  }
   0xa   :  { %3596 = vmatpush3.msra.mxu1 %v4201_v10  ;;  %3612 = vmatpush3.msra.mxu0 %v4171_v4  ;;  %v27_v18 = vadd.f32 %v26_v17, %v25_v16  ;;  %vm200_vm9 = vcmask 261120   ;;  %vm386_vm10 = vcmask 253952   ;;  %s4110_s21 = smov [#allocation5]   ;;  %vm3403_vm11 = vcmask 257024   ;;  %s4111_s23 = smov [#allocation3]  }
   0xb   :  { %3598 = vmatmul.mubr.f32.vlgmr.msra.gmra.mxu1 %v5554_v5  ;;  %3600 = vmatprep.subr.mxu1 %v5554_v5  ;;  %v40_v19 = vsub.s32 0, %v39_v15  ;;  %vm191_vm3 = vcmp.ge.s32.totalorder %v190_v23, 64  ;;  %vm192_vm4 = vcmp.lt.s32.totalorder %v190_v23, 96  ;;  %s3437_s22 = sshll.u32 %s4110_s21, 4  ;;  %s3424_s24 = sshll.u32 %s4111_s23, 4  ;;  %s3438_s22 = int_to_ptr.vmem [resolvable:$true] %s3437_s22  ;;  %s5529_s24 = int_to_ptr.vmem [resolvable:$true] %s3424_s24 }
   0xc   :  { %3584 = vmatmul.mubr.msk.f32.gmra.mxu0 %vm43_vm1, %v33_v11  ;;  %3601 = vmatpush3.msra.mxu1 %v4171_v4  ;;  %vm4249_vm5 = vmand %vm191_vm3, %vm192_vm4  ;;  %s4112_s25 = smov [#allocation7]   ;;  %s4040_s26 = scalar_lea.vmem %s3438_s22, 64 }
   0xd   :  { %3586 = vmatprep.mubr.msk.f32.mxu0 %vm43_vm1, %v34_v12  ;;  %3602 = vmatprep.subr.mxu1 %v5554_v5  ;;  %v41_v20 = vrot.slane %v27_v18, %v40_v19  ;;  %v4255_v38 = vsel %vm4249_vm5, 1.0, %v4106_v37  ;;  %v4263_v59 = vsel %vm4249_vm5, 0.0, %v4106_v37  ;;  %s3447_s0 = sshll.u32 %s4112_s25, 4  ;;  %p4041_p0 = scmp.ne.s32.totalorder %s3438_s22, %s4040_s26  ;;  %s3448_s0 = int_to_ptr.vmem [resolvable:$true] %s3447_s0 }
   0xe   :  { %3603 = vmatpush3.msra.mxu1 %v4177_v6  ;;  %3608 = vmatprep.mubr.msk.f32.mxu1 %vm4105_vm2, %v5554_v5  ;;  %p4045_p1 = scmp.lt.s32.totalorder %s3438_s22, %s3438_s22  ;;  %p4046_p2 = scmp.lt.s32.totalorder %s4040_s26, %s4040_s26 }
   0xf   :  { %3604 = vmatprep.subr.mxu1 %v5554_v5  ;;  %3613 = vmatprep.subr.mxu0 %v5554_v5 }
  0x10   :  { %3587 = vmatmul.mubr.msk.f32.gmra.mxu0 %vm43_vm1, %v35_v13  ;;  %3605 = vmatpush3.msra.mxu1 %v4189_v8  ;;  %p4047_p3 = por %p4046_p2, %p4045_p1 }
  0x11   :  { %3606 = vmatprep.subr.mxu1 %v5554_v5  ;;  %3614 = vmatpush3.msra.mxu0 %v4177_v6 }
  0x12   :  { %3607 = vmatpush3.msra.mxu1 %v4201_v10  ;;  %3615 = vmatprep.subr.mxu0 %v5554_v5  ;;  %p4048_p4 = pnand %p4047_p3, %p4041_p0 }
  0x13   :  { %3616 = vmatpush3.msra.mxu0 %v4189_v8  ;;  %3619 = vmatprep.mubr.msk.f32.mxu0 %vm4105_vm2, %v5554_v5 }
  0x14   :  { %3617 = vmatprep.subr.mxu0 %v5554_v5  ;;  %3622 = vmatprep.subr.mxu1 %v5554_v5 }
  0x15   :  { %3618 = vmatpush3.msra.mxu0 %v4201_v10 }
  0x16   :  { %3633 = vmatprep.subr.mxu0 %v5554_v5 }
  0xc4   :  { %v3579_v21 = vpop.f32.mrf.mxu0 }
  0xc5   :  { %v144_v22 = vadd.f32 %v3579_v21, %v41_v20 }
  0xc6   :  { %v138_v24 = vpop.f32.mrf.mxu0 }
  0xc7   :  { %178 = vst [vmem:[#allocation2 + $0x8] sm:$0xff] %v144_v22  ;;  %v139_v25 = vadd.f32 %v138_v24, %v41_v20 }
  0xc8   :  { %v3582_v26 = vpop.f32.mrf.mxu0 }
  0xc9   :  { %177 = vst [vmem:[#allocation2] sm:$0xff] %v139_v25  ;;  %v154_v27 = vadd.f32 %v3582_v26, %v41_v20 }
  0xca   :  { %v148_v28 = vpop.f32.mrf.mxu0 }
  0xcb   :  { %180 = vst [vmem:[#allocation2 + $0x18] sm:$0xff] %v154_v27  ;;  %v149_v29 = vadd.f32 %v148_v28, %v41_v20  ;;  %v270_v30 = vpop.f32.mrf.mxu1 }
  0xcc   :  { %v3585_v31 = vpop.f32.mrf.mxu0  ;;  %v275_v42 = vrot.slane %v270_v30, 1  ;;  %v276_v49 = vrot.slane %v270_v30, 2  ;;  %v277_v53 = vrot.slane %v270_v30, 3 }
  0xcd   :  { %179 = vst [vmem:[#allocation2 + $0x10] sm:$0xff] %v149_v29  ;;  %v164_v33 = vadd.f32 %v3585_v31, %v41_v20  ;;  %v3599_v34 = vpop.f32.mrf.mxu1 }
  0xce   :  { %v158_v35 = vpop.f32.mrf.mxu0 }
  0xcf   :  { %182 = vst [vmem:[#allocation2 + $0x28] sm:$0xff] %v164_v33  ;;  %v159_v36 = vadd.f32 %v158_v35, %v41_v20 }
  0xd0   :  { %v3588_v39 = vpop.f32.mrf.mxu0  ;;  %v196_v40 = vld [vmem:[#allocation2] sm:$0x1] }
  0xd1   :  { %181 = vst [vmem:[#allocation2 + $0x20] sm:$0xff] %v159_v36  ;;  %v174_v41 = vadd.f32 %v3588_v39, %v41_v20  ;;  %v282_v43 = vadd.f32 %v270_v30, %v196_v40 }
  0xd2   :  { %v168_v44 = vpop.f32.mrf.mxu0 }
  0xd3   :  { %184 = vst [vmem:[#allocation2 + $0x38] sm:$0xff] %v174_v41  ;;  %v286_v45 = vmul.f32 %v282_v43, %v4255_v38  ;;  %v169_v46 = vadd.f32 %v168_v44, %v41_v20 }
  0xd4   :  { %v197_v47 = vld [vmem:[#allocation2 + $0x10] sm:$0x1] }
  0xd5   :  { %v283_v48 = vadd.f32 %v275_v42, %v197_v47  ;;  %3776 = vtanh.f32 %v286_v45  ;;  %183 = vst [vmem:[#allocation2 + $0x30] sm:$0xff] %v169_v46 }
  0xd7   :  { %v287_v50 = vmul.f32 %v283_v48, %v4255_v38 }
  0xd8   :  { %v198_v51 = vld [vmem:[#allocation2 + $0x20] sm:$0x1] }
  0xd9   :  { %v284_v52 = vadd.f32 %v276_v49, %v198_v51  ;;  %3778 = vtanh.f32 %v287_v50 }
  0xdb   :  { %v288_v54 = vmul.f32 %v284_v52, %v4255_v38  ;;  %v391_v52 = vld [vmem:[#allocation2 + $0x1] sm:$0x1] }
  0xdc   :  { %v199_v55 = vld [vmem:[#allocation2 + $0x30] sm:$0x1] }
  0xdd   :  { %3780 = vtanh.f32 %v288_v54  ;;  %v285_v56 = vadd.f32 %v277_v53, %v199_v55 }
  0xdf   :  { %v289_v57 = vmul.f32 %v285_v56, %v4255_v38 }
  0xe1   :  { %3782 = vtanh.f32 %v289_v57 }
  0xe2   :  { %v3777_v58 = vpop.eup %3776 }
  0xe3   :  { %v294_v60 = vmul.f32 %v3777_v58, %v4255_v38  ;;  %v392_v58 = vld [vmem:[#allocation2 + $0x11] sm:$0x1] }
  0xe5   :  { %v298_v61 = vadd.f32 %v294_v60, %v4263_v59  ;;  %v393_v60 = vld [vmem:[#allocation2 + $0x21] sm:$0x1] }
  0xe6   :  { %v3779_v62 = vpop.eup %3778 }
  0xe7   :  { %310 = vrot.lane.b32.xlu1 %v298_v61, %s4107_s2  ;;  %v295_v63 = vmul.f32 %v3779_v62, %v4255_v38  ;;  %v302_v23 = vmul.f32 0.0, %v298_v61 }
  0xe9   :  { %v299_v0 = vadd.f32 %v295_v63, %v4263_v59 }
  0xea   :  { %v3781_v1 = vpop.eup %3780 }
  0xeb   :  { %312 = vrot.lane.b32.xlu0 %v299_v0, %s4107_s2  ;;  %v296_v2 = vmul.f32 %v3781_v1, %v4255_v38  ;;  %v303_v20 = vmul.f32 0.0, %v299_v0 }
  0xed   :  { %v300_v3 = vadd.f32 %v296_v2, %v4263_v59 }
  0xee   :  { %v3783_v7 = vpop.eup %3782 }
  0xef   :  { %314 = vrot.lane.b32.xlu0 %v300_v3, %s4107_s2  ;;  %v297_v9 = vmul.f32 %v3783_v7, %v4255_v38  ;;  %v304_v24 = vmul.f32 0.0, %v300_v3 }
  0xf1   :  { %v301_v11 = vadd.f32 %v297_v9, %v4263_v59 }
  0xf3   :  { %316 = vrot.lane.b32.xlu1 %v301_v11, %s4107_s2  ;;  %v305_v29 = vmul.f32 0.0, %v301_v11 }
 0x159   :  { %v311_v14 = vpop.permute.xlu1 %310 }
 0x15a   :  { %v322_v16 = vmul.f32 %v311_v14, %v298_v61 }
 0x15d   :  { %v313_v12 = vpop.permute.xlu0 %312 }
 0x15e   :  { %v323_v13 = vmul.f32 %v313_v12, %v299_v0 }
 0x160   :  { %332 = vrot.lane.b32.xlu0 %v323_v13, %s4108_s3 }
 0x161   :  { %v315_v15 = vpop.permute.xlu0 %314 }
 0x162   :  { %v324_v17 = vmul.f32 %v315_v15, %v300_v3 }
 0x164   :  { %334 = vrot.lane.b32.xlu1 %v324_v17, %s4108_s3  ;;  %330 = vrot.lane.b32.xlu0 %v322_v16, %s4108_s3 }
 0x165   :  { %v317_v18 = vpop.permute.xlu1 %316 }
 0x166   :  { %v325_v19 = vmul.f32 %v317_v18, %v301_v11 }
 0x168   :  { %336 = vrot.lane.b32.xlu1 %v325_v19, %s4108_s3 }
 0x1d2   :  { %v333_v21 = vpop.permute.xlu0 %332 }
 0x1d3   :  { %v4281_v22 = vadd.f32 %v333_v21, %v303_v20 }
 0x1d5   :  { %3784 = vtanh.f32 %v4281_v22 }
 0x1d6   :  { %v331_v25 = vpop.permute.xlu0 %330  ;;  %v335_v26 = vpop.permute.xlu1 %334 }
 0x1d7   :  { %v4284_v27 = vadd.f32 %v331_v25, %v302_v23  ;;  %v4286_v28 = vadd.f32 %v335_v26, %v304_v24 }
 0x1d9   :  { %3786 = vtanh.f32 %v4284_v27 }
 0x1da   :  { %3788 = vtanh.f32 %v4286_v28  ;;  %v337_v30 = vpop.permute.xlu1 %336 }
 0x1db   :  { %v4290_v31 = vadd.f32 %v337_v30, %v305_v29 }
 0x1dd   :  { %3790 = vtanh.f32 %v4290_v31 }
 0x1e2   :  { %v3785_v32 = vpop.eup %3784 }
 0x1e3   :  { %356 = vrot.lane.b32.xlu0 %v3785_v32, %s4107_s2 }
 0x1e6   :  { %v3787_v33 = vpop.eup %3786 }
 0x1e7   :  { %v3789_v34 = vpop.eup %3788  ;;  %354 = vrot.lane.b32.xlu0 %v3787_v33, %s4107_s2 }
 0x1e8   :  { %358 = vrot.lane.b32.xlu1 %v3789_v34, %s4107_s2 }
 0x1ea   :  { %v3791_v35 = vpop.eup %3790 }
 0x1ec   :  { %360 = vrot.lane.b32.xlu1 %v3791_v35, %s4107_s2 }
 0x255   :  { %v357_v36 = vpop.permute.xlu0 %356 }
 0x256   :  { %v4297_v37 = vmul.f32 %v357_v36, %v299_v0 }
 0x258   :  { %v395_v43 = vrot.slane %v4297_v37, 7 }
 0x259   :  { %v355_v39 = vpop.permute.xlu0 %354 }
 0x25a   :  { %v359_v40 = vpop.permute.xlu1 %358  ;;  %v4301_v42 = vmul.f32 %v355_v39, %v298_v61  ;;  %v394_v61 = vld [vmem:[#allocation2 + $0x31] sm:$0x1] }
 0x25b   :  { %v4299_v41 = vmul.f32 %v359_v40, %v300_v3 }
 0x25c   :  { %v397_v47 = vsel %vm396_vm6, %v395_v43, %v4301_v42 }
 0x25d   :  { %v398_v44 = vrot.slane %v4299_v41, 6 }
 0x25e   :  { %v361_v45 = vpop.permute.xlu1 %360 }
 0x25f   :  { %v4305_v46 = vmul.f32 %v361_v45, %v301_v11  ;;  %v400_v49 = vsel %vm399_vm7, %v398_v44, %v397_v47 }
 0x261   :  { %v401_v48 = vrot.slane %v4305_v46, 5 }
 0x263   :  { %v403_v50 = vsel %vm402_vm8, %v401_v48, %v400_v49 }
 0x264   :  { %404 = vrot.lane.b32.xlu0 %v403_v50, %s4108_s3 }
 0x2d6   :  { %v405_v51 = vpop.permute.xlu0 %404 }
 0x2d7   :  { %3609 = vmatmul.mubr.msk.f32.vlgmr.msra.gmra.mxu1 %vm200_vm9, %v405_v51 }
 0x2d8   :  { %3623 = vmatpush3.msra.mxu1 %v4171_v4  ;;  %3630 = vmatprep.mubr.msk.f32.mxu1 %vm4105_vm2, %v5554_v5 }
 0x2d9   :  { %3624 = vmatprep.subr.mxu1 %v5554_v5 }
 0x2da   :  { %3625 = vmatpush3.msra.mxu1 %v4177_v6 }
 0x2db   :  { %3626 = vmatprep.subr.mxu1 %v5554_v5 }
 0x2dc   :  { %3627 = vmatpush3.msra.mxu1 %v4189_v8 }
 0x2dd   :  { %3628 = vmatprep.subr.mxu1 %v5554_v5 }
 0x2de   :  { %3629 = vmatpush3.msra.mxu1 %v4201_v10 }
 0x2df   :  { %3644 = vmatprep.subr.mxu1 %v5554_v5 }
 0x397   :  { %v474_v53 = vpop.f32.mrf.mxu1 }
 0x398   :  { %v479_v54 = vrot.slane %v474_v53, 1  ;;  %v480_v55 = vrot.slane %v474_v53, 2  ;;  %v481_v56 = vrot.slane %v474_v53, 3  ;;  %v486_v57 = vadd.f32 %v474_v53, %v391_v52 }
 0x399   :  { %v3610_v62 = vpop.f32.mrf.mxu1 }
 0x39a   :  { %v487_v63 = vadd.f32 %v479_v54, %v392_v58  ;;  %v488_v0 = vadd.f32 %v480_v55, %v393_v60  ;;  %v489_v1 = vadd.f32 %v481_v56, %v394_v61  ;;  %v490_v2 = vmul.f32 %v486_v57, %v4255_v38 }
 0x39c   :  { %v491_v3 = vmul.f32 %v487_v63, %v4255_v38  ;;  %v492_v7 = vmul.f32 %v488_v0, %v4255_v38  ;;  %v493_v9 = vmul.f32 %v489_v1, %v4255_v38  ;;  %3792 = vtanh.f32 %v490_v2 }
 0x39e   :  { %3794 = vtanh.f32 %v491_v3 }
 0x39f   :  { %3796 = vtanh.f32 %v492_v7  ;;  %v594_v7 = vld [vmem:[#allocation2 + $0x2] sm:$0x1] }
 0x3a0   :  { %3798 = vtanh.f32 %v493_v9 }
 0x3a9   :  { %v3793_v11 = vpop.eup %3792 }
 0x3aa   :  { %v498_v18 = vmul.f32 %v3793_v11, %v4255_v38 }
 0x3ab   :  { %v3795_v12 = vpop.eup %3794 }
 0x3ac   :  { %v3797_v13 = vpop.eup %3796  ;;  %v499_v14 = vmul.f32 %v3795_v12, %v4255_v38  ;;  %v502_v21 = vadd.f32 %v498_v18, %v4263_v59 }
 0x3ad   :  { %v3799_v15 = vpop.eup %3798  ;;  %v500_v16 = vmul.f32 %v3797_v13, %v4255_v38 }
 0x3ae   :  { %v503_v17 = vadd.f32 %v499_v14, %v4263_v59  ;;  %v501_v20 = vmul.f32 %v3799_v15, %v4255_v38  ;;  %v506_v45 = vmul.f32 %v502_v21, %v4284_v27  ;;  %v595_v15 = vld [vmem:[#allocation2 + $0x12] sm:$0x1] }
 0x3af   :  { %v504_v19 = vadd.f32 %v500_v16, %v4263_v59  ;;  %v596_v16 = vld [vmem:[#allocation2 + $0x22] sm:$0x1] }
 0x3b0   :  { %516 = vrot.lane.b32.xlu1 %v503_v17, %s4107_s2  ;;  %v505_v23 = vadd.f32 %v501_v20, %v4263_v59  ;;  %v507_v35 = vmul.f32 %v503_v17, %v4281_v22 }
 0x3b1   :  { %518 = vrot.lane.b32.xlu0 %v504_v19, %s4107_s2  ;;  %v508_v36 = vmul.f32 %v504_v19, %v4286_v28 }
 0x3b2   :  { %v509_v47 = vmul.f32 %v505_v23, %v4290_v31 }
 0x3b4   :  { %514 = vrot.lane.b32.xlu1 %v502_v21, %s4107_s2 }
 0x3b5   :  { %520 = vrot.lane.b32.xlu0 %v505_v23, %s4107_s2 }
 0x422   :  { %v517_v24 = vpop.permute.xlu1 %516 }
 0x423   :  { %v519_v25 = vpop.permute.xlu0 %518  ;;  %v527_v26 = vmul.f32 %v517_v24, %v503_v17 }
 0x424   :  { %v528_v29 = vmul.f32 %v519_v25, %v504_v19 }
 0x425   :  { %536 = vrot.lane.b32.xlu1 %v527_v26, %s4108_s3 }
 0x426   :  { %538 = vrot.lane.b32.xlu0 %v528_v29, %s4108_s3  ;;  %v515_v30 = vpop.permute.xlu1 %514 }
 0x427   :  { %v521_v32 = vpop.permute.xlu0 %520  ;;  %v526_v33 = vmul.f32 %v515_v30, %v502_v21 }
 0x428   :  { %v529_v34 = vmul.f32 %v521_v32, %v505_v23 }
 0x429   :  { %534 = vrot.lane.b32.xlu1 %v526_v33, %s4108_s3 }
 0x42a   :  { %540 = vrot.lane.b32.xlu0 %v529_v34, %s4108_s3 }
 0x497   :  { %v537_v39 = vpop.permute.xlu1 %536 }
 0x498   :  { %v539_v40 = vpop.permute.xlu0 %538  ;;  %v4346_v43 = vadd.f32 %v537_v39, %v507_v35 }
 0x499   :  { %v4348_v44 = vadd.f32 %v539_v40, %v508_v36 }
 0x49a   :  { %3800 = vtanh.f32 %v4346_v43 }
 0x49b   :  { %3802 = vtanh.f32 %v4348_v44  ;;  %v535_v48 = vpop.permute.xlu1 %534 }
 0x49c   :  { %v541_v49 = vpop.permute.xlu0 %540  ;;  %v4354_v50 = vadd.f32 %v535_v48, %v506_v45 }
 0x49d   :  { %v4356_v22 = vadd.f32 %v541_v49, %v509_v47 }
 0x49e   :  { %3804 = vtanh.f32 %v4354_v50 }
 0x49f   :  { %3806 = vtanh.f32 %v4356_v22 }
 0x4a7   :  { %v3801_v28 = vpop.eup %3800 }
 0x4a8   :  { %v3803_v51 = vpop.eup %3802  ;;  %560 = vrot.lane.b32.xlu1 %v3801_v28, %s4107_s2 }
 0x4a9   :  { %562 = vrot.lane.b32.xlu0 %v3803_v51, %s4107_s2 }
 0x4ab   :  { %v3805_v27 = vpop.eup %3804 }
 0x4ac   :  { %v3807_v52 = vpop.eup %3806  ;;  %558 = vrot.lane.b32.xlu1 %v3805_v27, %s4107_s2 }
 0x4ad   :  { %564 = vrot.lane.b32.xlu0 %v3807_v52, %s4107_s2 }
 0x51a   :  { %v561_v31 = vpop.permute.xlu1 %560 }
 0x51b   :  { %v563_v53 = vpop.permute.xlu0 %562  ;;  %v4364_v54 = vmul.f32 %v561_v31, %v503_v17  ;;  %v597_v17 = vld [vmem:[#allocation2 + $0x32] sm:$0x1] }
 0x51c   :  { %v4366_v55 = vmul.f32 %v563_v53, %v504_v19 }
 0x51d   :  { %v598_v57 = vrot.slane %v4364_v54, 7 }
 0x51e   :  { %v559_v56 = vpop.permute.xlu1 %558  ;;  %v600_v61 = vrot.slane %v4366_v55, 6 }
 0x51f   :  { %v565_v58 = vpop.permute.xlu0 %564  ;;  %v4369_v60 = vmul.f32 %v559_v56, %v502_v21 }
 0x520   :  { %v4372_v62 = vmul.f32 %v565_v58, %v505_v23 }
 0x521   :  { %v599_v63 = vsel %vm396_vm6, %v598_v57, %v4369_v60 }
 0x522   :  { %v602_v0 = vrot.slane %v4372_v62, 5  ;;  %v601_v1 = vsel %vm399_vm7, %v600_v61, %v599_v63 }
 0x524   :  { %v603_v2 = vsel %vm402_vm8, %v602_v0, %v601_v1 }
 0x525   :  { %604 = vrot.lane.b32.xlu1 %v603_v2, %s4108_s3 }
 0x597   :  { %v605_v3 = vpop.permute.xlu1 %604 }
 0x598   :  { %3620 = vmatmul.mubr.msk.f32.vlgmr.msra.gmra.mxu0 %vm200_vm9, %v605_v3 }
 0x599   :  { %3634 = vmatpush3.msra.mxu0 %v4171_v4  ;;  %3641 = vmatprep.mubr.msk.f32.mxu0 %vm4105_vm2, %v5554_v5 }
 0x59a   :  { %3635 = vmatprep.subr.mxu0 %v5554_v5 }
 0x59b   :  { %3636 = vmatpush3.msra.mxu0 %v4177_v6 }
 0x59c   :  { %3637 = vmatprep.subr.mxu0 %v5554_v5 }
 0x59d   :  { %3638 = vmatpush3.msra.mxu0 %v4189_v8 }
 0x59e   :  { %3639 = vmatprep.subr.mxu0 %v5554_v5 }
 0x59f   :  { %3640 = vmatpush3.msra.mxu0 %v4201_v10 }
 0x5a0   :  { %3655 = vmatprep.subr.mxu0 %v5554_v5 }
 0x658   :  { %v674_v9 = vpop.f32.mrf.mxu0 }
 0x659   :  { %v679_v11 = vrot.slane %v674_v9, 1  ;;  %v680_v12 = vrot.slane %v674_v9, 2  ;;  %v681_v13 = vrot.slane %v674_v9, 3  ;;  %v686_v14 = vadd.f32 %v674_v9, %v594_v7 }
 0x65a   :  { %v3621_v18 = vpop.f32.mrf.mxu0 }
 0x65b   :  { %v687_v19 = vadd.f32 %v679_v11, %v595_v15  ;;  %v688_v20 = vadd.f32 %v680_v12, %v596_v16  ;;  %v689_v21 = vadd.f32 %v681_v13, %v597_v17  ;;  %v690_v23 = vmul.f32 %v686_v14, %v4255_v38 }
 0x65d   :  { %v691_v24 = vmul.f32 %v687_v19, %v4255_v38  ;;  %v692_v25 = vmul.f32 %v688_v20, %v4255_v38  ;;  %v693_v26 = vmul.f32 %v689_v21, %v4255_v38  ;;  %3808 = vtanh.f32 %v690_v23 }
 0x65f   :  { %3810 = vtanh.f32 %v691_v24 }
 0x660   :  { %3812 = vtanh.f32 %v692_v25 }
 0x661   :  { %3814 = vtanh.f32 %v693_v26 }
 0x66a   :  { %v3809_v29 = vpop.eup %3808 }
 0x66b   :  { %v698_v39 = vmul.f32 %v3809_v29, %v4255_v38 }
 0x66c   :  { %v3811_v30 = vpop.eup %3810 }
 0x66d   :  { %v3813_v32 = vpop.eup %3812  ;;  %v699_v33 = vmul.f32 %v3811_v30, %v4255_v38  ;;  %v702_v47 = vadd.f32 %v698_v39, %v4263_v59 }
 0x66e   :  { %v3815_v34 = vpop.eup %3814  ;;  %v700_v35 = vmul.f32 %v3813_v32, %v4255_v38  ;;  %v794_v32 = vld [vmem:[#allocation2 + $0x3] sm:$0x1] }
 0x66f   :  { %v703_v36 = vadd.f32 %v699_v33, %v4263_v59  ;;  %v701_v45 = vmul.f32 %v3815_v34, %v4255_v38  ;;  %v706_v2 = vmul.f32 %v702_v47, %v4354_v50 }
 0x670   :  { %v704_v40 = vadd.f32 %v700_v35, %v4263_v59 }
 0x671   :  { %716 = vrot.lane.b32.xlu0 %v703_v36, %s4107_s2  ;;  %v705_v48 = vadd.f32 %v701_v45, %v4263_v59  ;;  %v707_v57 = vmul.f32 %v703_v36, %v4346_v43  ;;  %v796_v45 = vld [vmem:[#allocation2 + $0x23] sm:$0x1] }
 0x672   :  { %718 = vrot.lane.b32.xlu1 %v704_v40, %s4107_s2  ;;  %v708_v58 = vmul.f32 %v704_v40, %v4348_v44 }
 0x673   :  { %v709_v3 = vmul.f32 %v705_v48, %v4356_v22 }
 0x675   :  { %714 = vrot.lane.b32.xlu0 %v702_v47, %s4107_s2 }
 0x676   :  { %720 = vrot.lane.b32.xlu1 %v705_v48, %s4107_s2 }
 0x6e3   :  { %v717_v49 = vpop.permute.xlu0 %716 }
 0x6e4   :  { %v719_v28 = vpop.permute.xlu1 %718  ;;  %v727_v51 = vmul.f32 %v717_v49, %v703_v36 }
 0x6e5   :  { %v728_v27 = vmul.f32 %v719_v28, %v704_v40 }
 0x6e6   :  { %736 = vrot.lane.b32.xlu0 %v727_v51, %s4108_s3 }
 0x6e7   :  { %738 = vrot.lane.b32.xlu1 %v728_v27, %s4108_s3  ;;  %v715_v52 = vpop.permute.xlu0 %714 }
 0x6e8   :  { %v721_v31 = vpop.permute.xlu1 %720  ;;  %v726_v53 = vmul.f32 %v715_v52, %v702_v47 }
 0x6e9   :  { %v729_v56 = vmul.f32 %v721_v31, %v705_v48 }
 0x6ea   :  { %734 = vrot.lane.b32.xlu0 %v726_v53, %s4108_s3 }
 0x6eb   :  { %740 = vrot.lane.b32.xlu1 %v729_v56, %s4108_s3 }
 0x758   :  { %v737_v61 = vpop.permute.xlu0 %736 }
 0x759   :  { %v739_v63 = vpop.permute.xlu1 %738  ;;  %v4413_v0 = vadd.f32 %v737_v61, %v707_v57 }
 0x75a   :  { %v4415_v1 = vadd.f32 %v739_v63, %v708_v58 }
 0x75b   :  { %3816 = vtanh.f32 %v4413_v0 }
 0x75c   :  { %3818 = vtanh.f32 %v4415_v1  ;;  %v735_v7 = vpop.permute.xlu0 %734 }
 0x75d   :  { %v741_v9 = vpop.permute.xlu1 %740  ;;  %v4421_v11 = vadd.f32 %v735_v7, %v706_v2 }
 0x75e   :  { %v4423_v43 = vadd.f32 %v741_v9, %v709_v3 }
 0x75f   :  { %3820 = vtanh.f32 %v4421_v11 }
 0x760   :  { %3822 = vtanh.f32 %v4423_v43 }
 0x768   :  { %v3817_v44 = vpop.eup %3816 }
 0x769   :  { %v3819_v12 = vpop.eup %3818  ;;  %760 = vrot.lane.b32.xlu0 %v3817_v44, %s4107_s2 }
 0x76a   :  { %762 = vrot.lane.b32.xlu1 %v3819_v12, %s4107_s2 }
 0x76c   :  { %v3821_v50 = vpop.eup %3820 }
 0x76d   :  { %v3823_v13 = vpop.eup %3822  ;;  %758 = vrot.lane.b32.xlu0 %v3821_v50, %s4107_s2 }
 0x76e   :  { %764 = vrot.lane.b32.xlu1 %v3823_v13, %s4107_s2 }
 0x7db   :  { %v761_v22 = vpop.permute.xlu0 %760 }
 0x7dc   :  { %v763_v14 = vpop.permute.xlu1 %762  ;;  %v4431_v15 = vmul.f32 %v761_v22, %v703_v36 }
 0x7dd   :  { %v4433_v16 = vmul.f32 %v763_v14, %v704_v40  ;;  %v795_v40 = vld [vmem:[#allocation2 + $0x13] sm:$0x1] }
 0x7de   :  { %v798_v18 = vrot.slane %v4431_v15, 7 }
 0x7df   :  { %v759_v17 = vpop.permute.xlu0 %758  ;;  %v800_v21 = vrot.slane %v4433_v16, 6 }
 0x7e0   :  { %v765_v19 = vpop.permute.xlu1 %764  ;;  %v4436_v20 = vmul.f32 %v759_v17, %v702_v47  ;;  %v797_v47 = vld [vmem:[#allocation2 + $0x33] sm:$0x1] }
 0x7e1   :  { %v4439_v23 = vmul.f32 %v765_v19, %v705_v48 }
 0x7e2   :  { %v799_v24 = vsel %vm396_vm6, %v798_v18, %v4436_v20 }
 0x7e3   :  { %v802_v25 = vrot.slane %v4439_v23, 5  ;;  %v801_v26 = vsel %vm399_vm7, %v800_v21, %v799_v24 }
 0x7e5   :  { %v803_v29 = vsel %vm402_vm8, %v802_v25, %v801_v26 }
 0x7e6   :  { %804 = vrot.lane.b32.xlu0 %v803_v29, %s4108_s3 }
 0x858   :  { %v805_v30 = vpop.permute.xlu0 %804 }
 0x859   :  { %3631 = vmatmul.mubr.msk.f32.vlgmr.msra.gmra.mxu1 %vm200_vm9, %v805_v30 }
 0x85a   :  { %3645 = vmatpush3.msra.mxu1 %v4171_v4  ;;  %3652 = vmatprep.mubr.msk.f32.mxu1 %vm4105_vm2, %v5554_v5 }
 0x85b   :  { %3646 = vmatprep.subr.mxu1 %v5554_v5 }
 0x85c   :  { %3647 = vmatpush3.msra.mxu1 %v4177_v6 }
 0x85d   :  { %3648 = vmatprep.subr.mxu1 %v5554_v5 }
 0x85e   :  { %3649 = vmatpush3.msra.mxu1 %v4189_v8 }
 0x85f   :  { %3650 = vmatprep.subr.mxu1 %v5554_v5 }
 0x860   :  { %3651 = vmatpush3.msra.mxu1 %v4201_v10 }
 0x861   :  { %3666 = vmatprep.subr.mxu1 %v5554_v5 }
 0x919   :  { %v874_v33 = vpop.f32.mrf.mxu1 }
 0x91a   :  { %v879_v34 = vrot.slane %v874_v33, 1  ;;  %v880_v35 = vrot.slane %v874_v33, 2  ;;  %v881_v36 = vrot.slane %v874_v33, 3  ;;  %v886_v39 = vadd.f32 %v874_v33, %v794_v32 }
 0x91b   :  { %v3632_v48 = vpop.f32.mrf.mxu1 }
 0x91c   :  { %v887_v49 = vadd.f32 %v879_v34, %v795_v40  ;;  %v888_v28 = vadd.f32 %v880_v35, %v796_v45  ;;  %v889_v51 = vadd.f32 %v881_v36, %v797_v47  ;;  %v890_v27 = vmul.f32 %v886_v39, %v4255_v38 }
 0x91e   :  { %v891_v52 = vmul.f32 %v887_v49, %v4255_v38  ;;  %v892_v31 = vmul.f32 %v888_v28, %v4255_v38  ;;  %v893_v53 = vmul.f32 %v889_v51, %v4255_v38  ;;  %3824 = vtanh.f32 %v890_v27 }
 0x920   :  { %3826 = vtanh.f32 %v891_v52 }
 0x921   :  { %3828 = vtanh.f32 %v892_v31 }
 0x922   :  { %3830 = vtanh.f32 %v893_v53 }
 0x92b   :  { %v3825_v56 = vpop.eup %3824 }
 0x92c   :  { %v898_v7 = vmul.f32 %v3825_v56, %v4255_v38 }
 0x92d   :  { %v3827_v57 = vpop.eup %3826 }
 0x92e   :  { %v3829_v58 = vpop.eup %3828  ;;  %v899_v61 = vmul.f32 %v3827_v57, %v4255_v38  ;;  %v902_v12 = vadd.f32 %v898_v7, %v4263_v59 }
 0x92f   :  { %v3831_v63 = vpop.eup %3830  ;;  %v900_v2 = vmul.f32 %v3829_v58, %v4255_v38 }
 0x930   :  { %v903_v3 = vadd.f32 %v899_v61, %v4263_v59  ;;  %v901_v44 = vmul.f32 %v3831_v63, %v4255_v38  ;;  %v906_v34 = vmul.f32 %v902_v12, %v4421_v11 }
 0x931   :  { %v904_v9 = vadd.f32 %v900_v2, %v4263_v59 }
 0x932   :  { %916 = vrot.lane.b32.xlu1 %v903_v3, %s4107_s2  ;;  %v905_v50 = vadd.f32 %v901_v44, %v4263_v59  ;;  %v907_v25 = vmul.f32 %v903_v3, %v4413_v0 }
 0x933   :  { %918 = vrot.lane.b32.xlu0 %v904_v9, %s4107_s2  ;;  %v908_v26 = vmul.f32 %v904_v9, %v4415_v1 }
 0x934   :  { %v909_v35 = vmul.f32 %v905_v50, %v4423_v43 }
 0x936   :  { %914 = vrot.lane.b32.xlu1 %v902_v12, %s4107_s2 }
 0x937   :  { %920 = vrot.lane.b32.xlu0 %v905_v50, %s4107_s2 }
 0x9a4   :  { %v917_v13 = vpop.permute.xlu1 %916 }
 0x9a5   :  { %v919_v22 = vpop.permute.xlu0 %918  ;;  %v927_v14 = vmul.f32 %v917_v13, %v903_v3  ;;  %v996_v13 = vld [vmem:[#allocation2 + $0x24] sm:$0x1] }
 0x9a6   :  { %v928_v17 = vmul.f32 %v919_v22, %v904_v9  ;;  %v997_v22 = vld [vmem:[#allocation2 + $0x34] sm:$0x1] }
 0x9a7   :  { %936 = vrot.lane.b32.xlu1 %v927_v14, %s4108_s3 }
 0x9a8   :  { %938 = vrot.lane.b32.xlu0 %v928_v17, %s4108_s3  ;;  %v915_v18 = vpop.permute.xlu1 %914 }
 0x9a9   :  { %v921_v19 = vpop.permute.xlu0 %920  ;;  %v926_v21 = vmul.f32 %v915_v18, %v902_v12 }
 0x9aa   :  { %v929_v24 = vmul.f32 %v921_v19, %v905_v50 }
 0x9ab   :  { %934 = vrot.lane.b32.xlu1 %v926_v21, %s4108_s3 }
 0x9ac   :  { %940 = vrot.lane.b32.xlu0 %v929_v24, %s4108_s3 }
 0xa19   :  { %v937_v29 = vpop.permute.xlu1 %936 }
 0xa1a   :  { %v939_v30 = vpop.permute.xlu0 %938  ;;  %v4480_v32 = vadd.f32 %v937_v29, %v907_v25 }
 0xa1b   :  { %v4482_v33 = vadd.f32 %v939_v30, %v908_v26 }
 0xa1c   :  { %3832 = vtanh.f32 %v4480_v32 }
 0xa1d   :  { %3834 = vtanh.f32 %v4482_v33  ;;  %v935_v36 = vpop.permute.xlu1 %934 }
 0xa1e   :  { %v941_v39 = vpop.permute.xlu0 %940  ;;  %v4488_v40 = vadd.f32 %v935_v36, %v906_v34 }
 0xa1f   :  { %v4490_v0 = vadd.f32 %v941_v39, %v909_v35 }
 0xa20   :  { %3836 = vtanh.f32 %v4488_v40 }
 0xa21   :  { %3838 = vtanh.f32 %v4490_v0 }
 0xa29   :  { %v3833_v1 = vpop.eup %3832 }
 0xa2a   :  { %v3835_v45 = vpop.eup %3834  ;;  %960 = vrot.lane.b32.xlu1 %v3833_v1, %s4107_s2 }
 0xa2b   :  { %962 = vrot.lane.b32.xlu0 %v3835_v45, %s4107_s2 }
 0xa2d   :  { %v3837_v11 = vpop.eup %3836 }
 0xa2e   :  { %v3839_v47 = vpop.eup %3838  ;;  %958 = vrot.lane.b32.xlu1 %v3837_v11, %s4107_s2 }
 0xa2f   :  { %964 = vrot.lane.b32.xlu0 %v3839_v47, %s4107_s2 }
 0xa9c   :  { %v961_v43 = vpop.permute.xlu1 %960 }
 0xa9d   :  { %v963_v48 = vpop.permute.xlu0 %962  ;;  %v4498_v49 = vmul.f32 %v961_v43, %v903_v3  ;;  %v994_v3 = vld [vmem:[#allocation2 + $0x4] sm:$0x1] }
 0xa9e   :  { %v4500_v28 = vmul.f32 %v963_v48, %v904_v9 }
 0xa9f   :  { %v998_v27 = vrot.slane %v4498_v49, 7 }
 0xaa0   :  { %v959_v51 = vpop.permute.xlu1 %958  ;;  %v1000_v53 = vrot.slane %v4500_v28, 6 }
 0xaa1   :  { %v965_v52 = vpop.permute.xlu0 %964  ;;  %v4503_v31 = vmul.f32 %v959_v51, %v902_v12 }
 0xaa2   :  { %v4506_v56 = vmul.f32 %v965_v52, %v905_v50  ;;  %v995_v50 = vld [vmem:[#allocation2 + $0x14] sm:$0x1] }
 0xaa3   :  { %v999_v57 = vsel %vm396_vm6, %v998_v27, %v4503_v31 }
 0xaa4   :  { %v1002_v58 = vrot.slane %v4506_v56, 5  ;;  %v1001_v61 = vsel %vm399_vm7, %v1000_v53, %v999_v57 }
 0xaa6   :  { %v1003_v63 = vsel %vm402_vm8, %v1002_v58, %v1001_v61 }
 0xaa7   :  { %1004 = vrot.lane.b32.xlu1 %v1003_v63, %s4108_s3 }
 0xb19   :  { %v1005_v2 = vpop.permute.xlu1 %1004 }
 0xb1a   :  { %3642 = vmatmul.mubr.msk.f32.vlgmr.msra.gmra.mxu0 %vm200_vm9, %v1005_v2 }
 0xb1b   :  { %3656 = vmatpush3.msra.mxu0 %v4171_v4  ;;  %3663 = vmatprep.mubr.msk.f32.mxu0 %vm4105_vm2, %v5554_v5 }
 0xb1c   :  { %3657 = vmatprep.subr.mxu0 %v5554_v5 }
 0xb1d   :  { %3658 = vmatpush3.msra.mxu0 %v4177_v6 }
 0xb1e   :  { %3659 = vmatprep.subr.mxu0 %v5554_v5 }
 0xb1f   :  { %3660 = vmatpush3.msra.mxu0 %v4189_v8 }
 0xb20   :  { %3661 = vmatprep.subr.mxu0 %v5554_v5 }
 0xb21   :  { %3662 = vmatpush3.msra.mxu0 %v4201_v10 }
 0xb22   :  { %3677 = vmatprep.subr.mxu0 %v5554_v5 }
 0xbda   :  { %v1074_v7 = vpop.f32.mrf.mxu0 }
 0xbdb   :  { %v1079_v4 = vrot.slane %v1074_v7, 1  ;;  %v1080_v9 = vrot.slane %v1074_v7, 2  ;;  %v1081_v44 = vrot.slane %v1074_v7, 3  ;;  %v1086_v12 = vadd.f32 %v1074_v7, %v994_v3 }
 0xbdc   :  { %v3643_v6 = vpop.f32.mrf.mxu0 }
 0xbdd   :  { %v1087_v14 = vadd.f32 %v1079_v4, %v995_v50  ;;  %v1088_v17 = vadd.f32 %v1080_v9, %v996_v13  ;;  %v1089_v18 = vadd.f32 %v1081_v44, %v997_v22  ;;  %v1090_v8 = vmul.f32 %v1086_v12, %v4255_v38 }
 0xbdf   :  { %v1091_v19 = vmul.f32 %v1087_v14, %v4255_v38  ;;  %v1092_v10 = vmul.f32 %v1088_v17, %v4255_v38  ;;  %v1093_v21 = vmul.f32 %v1089_v18, %v4255_v38  ;;  %3840 = vtanh.f32 %v1090_v8 }
 0xbe1   :  { %3842 = vtanh.f32 %v1091_v19 }
 0xbe2   :  { %3844 = vtanh.f32 %v1092_v10 }
 0xbe3   :  { %3846 = vtanh.f32 %v1093_v21 }
 0xbec   :  { %v3841_v24 = vpop.eup %3840 }
 0xbed   :  { %v1098_v36 = vmul.f32 %v3841_v24, %v4255_v38 }
 0xbee   :  { %v3843_v25 = vpop.eup %3842 }
 0xbef   :  { %v3845_v26 = vpop.eup %3844  ;;  %v1099_v29 = vmul.f32 %v3843_v25, %v4255_v38  ;;  %v1102_v45 = vadd.f32 %v1098_v36, %v4263_v59  ;;  %v4594_v36 = vld [vmem:[%s5550_s4 + $0x10] sm:$0xff] }
 0xbf0   :  { %v3847_v30 = vpop.eup %3846  ;;  %v1100_v34 = vmul.f32 %v3845_v26, %v4255_v38 }
 0xbf1   :  { %v1103_v35 = vadd.f32 %v1099_v29, %v4263_v59  ;;  %v1101_v1 = vmul.f32 %v3847_v30, %v4255_v38  ;;  %v1106_v4 = vmul.f32 %v1102_v45, %v4488_v40 }
 0xbf2   :  { %v1104_v39 = vadd.f32 %v1100_v34, %v4263_v59 }
 0xbf3   :  { %1116 = vrot.lane.b32.xlu0 %v1103_v35, %s4107_s2  ;;  %v1105_v11 = vadd.f32 %v1101_v1, %v4263_v59  ;;  %v1107_v58 = vmul.f32 %v1103_v35, %v4480_v32  ;;  %v4608_v1 = vld [vmem:[%s5550_s4] sm:$0xff] }
 0xbf4   :  { %1118 = vrot.lane.b32.xlu1 %v1104_v39, %s4107_s2  ;;  %v1108_v61 = vmul.f32 %v1104_v39, %v4482_v33 }
 0xbf5   :  { %v1109_v9 = vmul.f32 %v1105_v11, %v4490_v0 }
 0xbf7   :  { %1114 = vrot.lane.b32.xlu0 %v1102_v45, %s4107_s2 }
 0xbf8   :  { %1120 = vrot.lane.b32.xlu1 %v1105_v11, %s4107_s2 }
 0xc65   :  { %v1117_v47 = vpop.permute.xlu0 %1116 }
 0xc66   :  { %v1119_v43 = vpop.permute.xlu1 %1118  ;;  %v1127_v48 = vmul.f32 %v1117_v47, %v1103_v35 }
 0xc67   :  { %v1128_v51 = vmul.f32 %v1119_v43, %v1104_v39 }
 0xc68   :  { %1136 = vrot.lane.b32.xlu0 %v1127_v48, %s4108_s3 }
 0xc69   :  { %1138 = vrot.lane.b32.xlu1 %v1128_v51, %s4108_s3  ;;  %v1115_v27 = vpop.permute.xlu0 %1114 }
 0xc6a   :  { %v1121_v52 = vpop.permute.xlu1 %1120  ;;  %v1126_v53 = vmul.f32 %v1115_v27, %v1102_v45  ;;  %v1195_v27 = vld [vmem:[#allocation2 + $0x15] sm:$0x1] }
 0xc6b   :  { %v1129_v57 = vmul.f32 %v1121_v52, %v1105_v11  ;;  %v1196_v52 = vld [vmem:[#allocation2 + $0x25] sm:$0x1] }
 0xc6c   :  { %1134 = vrot.lane.b32.xlu0 %v1126_v53, %s4108_s3  ;;  %v1197_v53 = vld [vmem:[#allocation2 + $0x35] sm:$0x1] }
 0xc6d   :  { %1140 = vrot.lane.b32.xlu1 %v1129_v57, %s4108_s3 }
 0xcda   :  { %v1137_v63 = vpop.permute.xlu0 %1136 }
 0xcdb   :  { %v1139_v2 = vpop.permute.xlu1 %1138  ;;  %v4547_v3 = vadd.f32 %v1137_v63, %v1107_v58 }
 0xcdc   :  { %v4549_v7 = vadd.f32 %v1139_v2, %v1108_v61 }
 0xcdd   :  { %3848 = vtanh.f32 %v4547_v3 }
 0xcde   :  { %3850 = vtanh.f32 %v4549_v7  ;;  %v1135_v44 = vpop.permute.xlu0 %1134 }
 0xcdf   :  { %v1141_v12 = vpop.permute.xlu1 %1140  ;;  %v4555_v50 = vadd.f32 %v1135_v44, %v1106_v4 }
 0xce0   :  { %v4557_v32 = vadd.f32 %v1141_v12, %v1109_v9 }
 0xce1   :  { %3852 = vtanh.f32 %v4555_v50 }
 0xce2   :  { %3854 = vtanh.f32 %v4557_v32 }
 0xcea   :  { %v3849_v33 = vpop.eup %3848 }
 0xceb   :  { %v3851_v13 = vpop.eup %3850  ;;  %1160 = vrot.lane.b32.xlu0 %v3849_v33, %s4107_s2 }
 0xcec   :  { %1162 = vrot.lane.b32.xlu1 %v3851_v13, %s4107_s2 }
 0xcee   :  { %v3853_v40 = vpop.eup %3852 }
 0xcef   :  { %v3855_v22 = vpop.eup %3854  ;;  %1158 = vrot.lane.b32.xlu0 %v3853_v40, %s4107_s2 }
 0xcf0   :  { %1164 = vrot.lane.b32.xlu1 %v3855_v22, %s4107_s2 }
 0xd5d   :  { %v1161_v0 = vpop.permute.xlu0 %1160 }
 0xd5e   :  { %v1163_v6 = vpop.permute.xlu1 %1162  ;;  %v4565_v14 = vmul.f32 %v1161_v0, %v1103_v35  ;;  %v4585_v35 = vld [vmem:[%s5550_s4 + $0x18] sm:$0xff] }
 0xd5f   :  { %v4567_v17 = vmul.f32 %v1163_v6, %v1104_v39  ;;  %v4601_v39 = vld [vmem:[%s5550_s4 + $0x8] sm:$0xff] }
 0xd60   :  { %v1198_v8 = vrot.slane %v4565_v14, 7 }
 0xd61   :  { %v1159_v18 = vpop.permute.xlu0 %1158  ;;  %v1200_v21 = vrot.slane %v4567_v17, 6 }
 0xd62   :  { %v1165_v19 = vpop.permute.xlu1 %1164  ;;  %v4570_v10 = vmul.f32 %v1159_v18, %v1102_v45  ;;  %v1194_v45 = vld [vmem:[#allocation2 + $0x5] sm:$0x1] }
 0xd63   :  { %v4573_v24 = vmul.f32 %v1165_v19, %v1105_v11 }
 0xd64   :  { %v1199_v25 = vsel %vm396_vm6, %v1198_v8, %v4570_v10 }
 0xd65   :  { %v1202_v26 = vrot.slane %v4573_v24, 5  ;;  %v1201_v29 = vsel %vm399_vm7, %v1200_v21, %v1199_v25 }
 0xd67   :  { %v1203_v30 = vsel %vm402_vm8, %v1202_v26, %v1201_v29 }
 0xd68   :  { %1204 = vrot.lane.b32.xlu0 %v1203_v30, %s4108_s3 }
 0xdda   :  { %v1205_v34 = vpop.permute.xlu0 %1204 }
 0xddb   :  { %3653 = vmatmul.mubr.msk.f32.vlgmr.msra.gmra.mxu1 %vm200_vm9, %v1205_v34 }
 0xddc   :  { %3667 = vmatpush3.msra.mxu1 %v4585_v35  ;;  %3674 = vmatprep.mubr.msk.f32.mxu1 %vm4105_vm2, %v5554_v5 }
 0xddd   :  { %3668 = vmatprep.subr.mxu1 %v5554_v5 }
 0xdde   :  { %3669 = vmatpush3.msra.mxu1 %v4594_v36 }
 0xddf   :  { %3670 = vmatprep.subr.mxu1 %v5554_v5 }
 0xde0   :  { %3671 = vmatpush3.msra.mxu1 %v4601_v39 }
 0xde1   :  { %3672 = vmatprep.subr.mxu1 %v5554_v5 }
 0xde2   :  { %3673 = vmatpush3.msra.mxu1 %v4608_v1 }
 0xde3   :  { %3688 = vmatprep.subr.mxu1 %v5554_v5 }
 0xe9b   :  { %v1274_v11 = vpop.f32.mrf.mxu1 }
 0xe9c   :  { %v1279_v47 = vrot.slane %v1274_v11, 1  ;;  %v1280_v43 = vrot.slane %v1274_v11, 2  ;;  %v1281_v48 = vrot.slane %v1274_v11, 3  ;;  %v1286_v51 = vadd.f32 %v1274_v11, %v1194_v45 }
 0xe9d   :  { %v3654_v57 = vpop.f32.mrf.mxu1 }
 0xe9e   :  { %v1287_v58 = vadd.f32 %v1279_v47, %v1195_v27  ;;  %v1288_v61 = vadd.f32 %v1280_v43, %v1196_v52  ;;  %v1289_v63 = vadd.f32 %v1281_v48, %v1197_v53  ;;  %v1290_v2 = vmul.f32 %v1286_v51, %v4255_v38 }
 0xea0   :  { %v1291_v4 = vmul.f32 %v1287_v58, %v4255_v38  ;;  %v1292_v9 = vmul.f32 %v1288_v61, %v4255_v38  ;;  %v1293_v44 = vmul.f32 %v1289_v63, %v4255_v38  ;;  %3856 = vtanh.f32 %v1290_v2 }
 0xea2   :  { %3858 = vtanh.f32 %v1291_v4 }
 0xea3   :  { %3860 = vtanh.f32 %v1292_v9 }
 0xea4   :  { %3862 = vtanh.f32 %v1293_v44 }
 0xead   :  { %v3857_v12 = vpop.eup %3856 }
 0xeae   :  { %v1298_v18 = vmul.f32 %v3857_v12, %v4255_v38 }
 0xeaf   :  { %v3859_v33 = vpop.eup %3858 }
 0xeb0   :  { %v3861_v13 = vpop.eup %3860  ;;  %v1299_v40 = vmul.f32 %v3859_v33, %v4255_v38  ;;  %v1302_v21 = vadd.f32 %v1298_v18, %v4263_v59 }
 0xeb1   :  { %v3863_v22 = vpop.eup %3862  ;;  %v1300_v0 = vmul.f32 %v3861_v13, %v4255_v38 }
 0xeb2   :  { %v1303_v6 = vadd.f32 %v1299_v40, %v4263_v59  ;;  %v1301_v19 = vmul.f32 %v3863_v22, %v4255_v38  ;;  %v1306_v58 = vmul.f32 %v1302_v21, %v4555_v50 }
 0xeb3   :  { %v1304_v8 = vadd.f32 %v1300_v0, %v4263_v59 }
 0xeb4   :  { %1316 = vrot.lane.b32.xlu1 %v1303_v6, %s4107_s2  ;;  %v1305_v25 = vadd.f32 %v1301_v19, %v4263_v59  ;;  %v1307_v48 = vmul.f32 %v1303_v6, %v4547_v3 }
 0xeb5   :  { %1318 = vrot.lane.b32.xlu0 %v1304_v8, %s4107_s2  ;;  %v1308_v51 = vmul.f32 %v1304_v8, %v4549_v7 }
 0xeb6   :  { %v1309_v61 = vmul.f32 %v1305_v25, %v4557_v32 }
 0xeb8   :  { %1314 = vrot.lane.b32.xlu1 %v1302_v21, %s4107_s2 }
 0xeb9   :  { %1320 = vrot.lane.b32.xlu0 %v1305_v25, %s4107_s2 }
 0xf26   :  { %v1317_v26 = vpop.permute.xlu1 %1316 }
 0xf27   :  { %v1319_v29 = vpop.permute.xlu0 %1318  ;;  %v1327_v30 = vmul.f32 %v1317_v26, %v1303_v6 }
 0xf28   :  { %v1328_v34 = vmul.f32 %v1319_v29, %v1304_v8 }
 0xf29   :  { %1336 = vrot.lane.b32.xlu1 %v1327_v30, %s4108_s3 }
 0xf2a   :  { %1338 = vrot.lane.b32.xlu0 %v1328_v34, %s4108_s3  ;;  %v1315_v45 = vpop.permute.xlu1 %1314 }
 0xf2b   :  { %v1321_v11 = vpop.permute.xlu0 %1320  ;;  %v1326_v47 = vmul.f32 %v1315_v45, %v1302_v21 }
 0xf2c   :  { %v1329_v43 = vmul.f32 %v1321_v11, %v1305_v25 }
 0xf2d   :  { %1334 = vrot.lane.b32.xlu1 %v1326_v47, %s4108_s3 }
 0xf2e   :  { %1340 = vrot.lane.b32.xlu0 %v1329_v43, %s4108_s3 }
 0xf9b   :  { %v1337_v27 = vpop.permute.xlu1 %1336 }
 0xf9c   :  { %v1339_v52 = vpop.permute.xlu0 %1338  ;;  %v4634_v53 = vadd.f32 %v1337_v27, %v1307_v48  ;;  %v1395_v48 = vld [vmem:[#allocation2 + $0x16] sm:$0x1] }
 0xf9d   :  { %v4636_v57 = vadd.f32 %v1339_v52, %v1308_v51  ;;  %v1396_v51 = vld [vmem:[#allocation2 + $0x26] sm:$0x1]  ;;  %v1397_v27 = vld [vmem:[#allocation2 + $0x36] sm:$0x1] }
 0xf9e   :  { %3864 = vtanh.f32 %v4634_v53 }
 0xf9f   :  { %3866 = vtanh.f32 %v4636_v57  ;;  %v1335_v63 = vpop.permute.xlu1 %1334 }
 0xfa0   :  { %v1341_v2 = vpop.permute.xlu0 %1340  ;;  %v4642_v4 = vadd.f32 %v1335_v63, %v1306_v58 }
 0xfa1   :  { %v4644_v3 = vadd.f32 %v1341_v2, %v1309_v61 }
 0xfa2   :  { %3868 = vtanh.f32 %v4642_v4 }
 0xfa3   :  { %3870 = vtanh.f32 %v4644_v3 }
 0xfab   :  { %v3865_v7 = vpop.eup %3864 }
 0xfac   :  { %v3867_v9 = vpop.eup %3866  ;;  %1360 = vrot.lane.b32.xlu1 %v3865_v7, %s4107_s2 }
 0xfad   :  { %1362 = vrot.lane.b32.xlu0 %v3867_v9, %s4107_s2 }
 0xfaf   :  { %v3869_v50 = vpop.eup %3868 }
 0xfb0   :  { %v3871_v44 = vpop.eup %3870  ;;  %1358 = vrot.lane.b32.xlu1 %v3869_v50, %s4107_s2 }
 0xfb1   :  { %1364 = vrot.lane.b32.xlu0 %v3871_v44, %s4107_s2 }
0x101e   :  { %v1361_v32 = vpop.permute.xlu1 %1360 }
0x101f   :  { %v1363_v12 = vpop.permute.xlu0 %1362  ;;  %v4652_v33 = vmul.f32 %v1361_v32, %v1303_v6 }
0x1020   :  { %v4654_v13 = vmul.f32 %v1363_v12, %v1304_v8 }
0x1021   :  { %v1398_v22 = vrot.slane %v4652_v33, 7 }
0x1022   :  { %v1359_v40 = vpop.permute.xlu1 %1358  ;;  %v1400_v19 = vrot.slane %v4654_v13, 6 }
0x1023   :  { %v1365_v0 = vpop.permute.xlu0 %1364  ;;  %v4657_v18 = vmul.f32 %v1359_v40, %v1302_v21  ;;  %v1394_v21 = vld [vmem:[#allocation2 + $0x6] sm:$0x1] }
0x1024   :  { %v4660_v26 = vmul.f32 %v1365_v0, %v1305_v25 }
0x1025   :  { %v1399_v29 = vsel %vm396_vm6, %v1398_v22, %v4657_v18 }
0x1026   :  { %v1402_v30 = vrot.slane %v4660_v26, 5  ;;  %v1401_v6 = vsel %vm399_vm7, %v1400_v19, %v1399_v29 }
0x1028   :  { %v1403_v8 = vsel %vm402_vm8, %v1402_v30, %v1401_v6 }
0x1029   :  { %1404 = vrot.lane.b32.xlu1 %v1403_v8, %s4108_s3 }
0x109b   :  { %v1405_v34 = vpop.permute.xlu1 %1404 }
0x109c   :  { %3664 = vmatmul.mubr.msk.f32.vlgmr.msra.gmra.mxu0 %vm200_vm9, %v1405_v34 }
0x109d   :  { %3678 = vmatpush3.msra.mxu0 %v4585_v35  ;;  %3685 = vmatprep.mubr.msk.f32.mxu0 %vm4105_vm2, %v5554_v5 }
0x109e   :  { %3679 = vmatprep.subr.mxu0 %v5554_v5 }
0x109f   :  { %3680 = vmatpush3.msra.mxu0 %v4594_v36 }
0x10a0   :  { %3681 = vmatprep.subr.mxu0 %v5554_v5 }
0x10a1   :  { %3682 = vmatpush3.msra.mxu0 %v4601_v39 }
0x10a2   :  { %3683 = vmatprep.subr.mxu0 %v5554_v5 }
0x10a3   :  { %3684 = vmatpush3.msra.mxu0 %v4608_v1 }
0x10a4   :  { %3699 = vmatprep.subr.mxu0 %v5554_v5 }
0x115c   :  { %v1474_v25 = vpop.f32.mrf.mxu0 }
0x115d   :  { %v1479_v45 = vrot.slane %v1474_v25, 1  ;;  %v1480_v11 = vrot.slane %v1474_v25, 2  ;;  %v1481_v47 = vrot.slane %v1474_v25, 3  ;;  %v1486_v43 = vadd.f32 %v1474_v25, %v1394_v21 }
0x115e   :  { %v3665_v52 = vpop.f32.mrf.mxu0 }
0x115f   :  { %v1487_v58 = vadd.f32 %v1479_v45, %v1395_v48  ;;  %v1488_v61 = vadd.f32 %v1480_v11, %v1396_v51  ;;  %v1489_v63 = vadd.f32 %v1481_v47, %v1397_v27  ;;  %v1490_v2 = vmul.f32 %v1486_v43, %v4255_v38 }
0x1161   :  { %v1491_v7 = vmul.f32 %v1487_v58, %v4255_v38  ;;  %v1492_v9 = vmul.f32 %v1488_v61, %v4255_v38  ;;  %v1493_v50 = vmul.f32 %v1489_v63, %v4255_v38  ;;  %3872 = vtanh.f32 %v1490_v2 }
0x1163   :  { %3874 = vtanh.f32 %v1491_v7 }
0x1164   :  { %3876 = vtanh.f32 %v1492_v9 }
0x1165   :  { %3878 = vtanh.f32 %v1493_v50 }
0x116e   :  { %v3873_v44 = vpop.eup %3872 }
0x116f   :  { %v1498_v29 = vmul.f32 %v3873_v44, %v4255_v38 }
0x1170   :  { %v3875_v32 = vpop.eup %3874 }
0x1171   :  { %v3877_v12 = vpop.eup %3876  ;;  %v1499_v40 = vmul.f32 %v3875_v32, %v4255_v38  ;;  %v1502_v8 = vadd.f32 %v1498_v29, %v4263_v59 }
0x1172   :  { %v3879_v22 = vpop.eup %3878  ;;  %v1500_v0 = vmul.f32 %v3877_v12, %v4255_v38 }
0x1173   :  { %v1503_v19 = vadd.f32 %v1499_v40, %v4263_v59  ;;  %v1501_v6 = vmul.f32 %v3879_v22, %v4255_v38  ;;  %v1506_v7 = vmul.f32 %v1502_v8, %v4642_v4 }
0x1174   :  { %v1504_v30 = vadd.f32 %v1500_v0, %v4263_v59 }
0x1175   :  { %1516 = vrot.lane.b32.xlu0 %v1503_v19, %s4107_s2  ;;  %v1505_v34 = vadd.f32 %v1501_v6, %v4263_v59  ;;  %v1507_v27 = vmul.f32 %v1503_v19, %v4634_v53 }
0x1176   :  { %1518 = vrot.lane.b32.xlu1 %v1504_v30, %s4107_s2  ;;  %v1508_v52 = vmul.f32 %v1504_v30, %v4636_v57 }
0x1177   :  { %v1509_v9 = vmul.f32 %v1505_v34, %v4644_v3 }
0x1179   :  { %1514 = vrot.lane.b32.xlu0 %v1502_v8, %s4107_s2 }
0x117a   :  { %1520 = vrot.lane.b32.xlu1 %v1505_v34, %s4107_s2 }
0x11e7   :  { %v1517_v21 = vpop.permute.xlu0 %1516 }
0x11e8   :  { %v1519_v25 = vpop.permute.xlu1 %1518  ;;  %v1527_v45 = vmul.f32 %v1517_v21, %v1503_v19 }
0x11e9   :  { %v1528_v11 = vmul.f32 %v1519_v25, %v1504_v30 }
0x11ea   :  { %1536 = vrot.lane.b32.xlu0 %v1527_v45, %s4108_s3 }
0x11eb   :  { %1538 = vrot.lane.b32.xlu1 %v1528_v11, %s4108_s3  ;;  %v1515_v47 = vpop.permute.xlu0 %1514 }
0x11ec   :  { %v1521_v43 = vpop.permute.xlu1 %1520  ;;  %v1526_v48 = vmul.f32 %v1515_v47, %v1502_v8 }
0x11ed   :  { %v1529_v51 = vmul.f32 %v1521_v43, %v1505_v34 }
0x11ee   :  { %1534 = vrot.lane.b32.xlu0 %v1526_v48, %s4108_s3 }
0x11ef   :  { %1540 = vrot.lane.b32.xlu1 %v1529_v51, %s4108_s3 }
0x125c   :  { %v1537_v58 = vpop.permute.xlu0 %1536 }
0x125d   :  { %v1539_v61 = vpop.permute.xlu1 %1538  ;;  %v4701_v63 = vadd.f32 %v1537_v58, %v1507_v27 }
0x125e   :  { %v4703_v2 = vadd.f32 %v1539_v61, %v1508_v52 }
0x125f   :  { %3880 = vtanh.f32 %v4701_v63 }
0x1260   :  { %3882 = vtanh.f32 %v4703_v2  ;;  %v1535_v50 = vpop.permute.xlu0 %1534 }
0x1261   :  { %v1541_v44 = vpop.permute.xlu1 %1540  ;;  %v4709_v32 = vadd.f32 %v1535_v50, %v1506_v7  ;;  %v1595_v7 = vld [vmem:[#allocation2 + $0x17] sm:$0x1] }
0x1262   :  { %v4711_v53 = vadd.f32 %v1541_v44, %v1509_v9  ;;  %v1596_v9 = vld [vmem:[#allocation2 + $0x27] sm:$0x1]  ;;  %v1597_v50 = vld [vmem:[#allocation2 + $0x37] sm:$0x1] }
0x1263   :  { %3884 = vtanh.f32 %v4709_v32 }
0x1264   :  { %3886 = vtanh.f32 %v4711_v53 }
0x126c   :  { %v3881_v57 = vpop.eup %3880 }
0x126d   :  { %v3883_v12 = vpop.eup %3882  ;;  %1560 = vrot.lane.b32.xlu0 %v3881_v57, %s4107_s2 }
0x126e   :  { %1562 = vrot.lane.b32.xlu1 %v3883_v12, %s4107_s2 }
0x1270   :  { %v3885_v4 = vpop.eup %3884 }
0x1271   :  { %v3887_v40 = vpop.eup %3886  ;;  %1558 = vrot.lane.b32.xlu0 %v3885_v4, %s4107_s2 }
0x1272   :  { %1564 = vrot.lane.b32.xlu1 %v3887_v40, %s4107_s2 }
0x12df   :  { %v1561_v3 = vpop.permute.xlu0 %1560 }
0x12e0   :  { %v1563_v22 = vpop.permute.xlu1 %1562  ;;  %v4719_v0 = vmul.f32 %v1561_v3, %v1503_v19 }
0x12e1   :  { %v4721_v29 = vmul.f32 %v1563_v22, %v1504_v30 }
0x12e2   :  { %v1598_v21 = vrot.slane %v4719_v0, 7 }
0x12e3   :  { %v1559_v6 = vpop.permute.xlu0 %1558  ;;  %v1600_v11 = vrot.slane %v4721_v29, 6 }
0x12e4   :  { %v1565_v25 = vpop.permute.xlu1 %1564  ;;  %v4724_v45 = vmul.f32 %v1559_v6, %v1502_v8  ;;  %v1594_v8 = vld [vmem:[#allocation2 + $0x7] sm:$0x1] }
0x12e5   :  { %v4727_v47 = vmul.f32 %v1565_v25, %v1505_v34 }
0x12e6   :  { %v1599_v43 = vsel %vm396_vm6, %v1598_v21, %v4724_v45 }
0x12e7   :  { %v1602_v48 = vrot.slane %v4727_v47, 5  ;;  %v1601_v19 = vsel %vm399_vm7, %v1600_v11, %v1599_v43 }
0x12e9   :  { %v1603_v30 = vsel %vm402_vm8, %v1602_v48, %v1601_v19 }
0x12ea   :  { %1604 = vrot.lane.b32.xlu0 %v1603_v30, %s4108_s3 }
0x135c   :  { %v1605_v51 = vpop.permute.xlu0 %1604 }
0x135d   :  { %3675 = vmatmul.mubr.msk.f32.vlgmr.msra.gmra.mxu1 %vm200_vm9, %v1605_v51 }
0x135e   :  { %3689 = vmatpush3.msra.mxu1 %v4585_v35  ;;  %3696 = vmatprep.mubr.msk.f32.mxu1 %vm4105_vm2, %v5554_v5 }
0x135f   :  { %3690 = vmatprep.subr.mxu1 %v5554_v5 }
0x1360   :  { %3691 = vmatpush3.msra.mxu1 %v4594_v36 }
0x1361   :  { %3692 = vmatprep.subr.mxu1 %v5554_v5 }
0x1362   :  { %3693 = vmatpush3.msra.mxu1 %v4601_v39 }
0x1363   :  { %3694 = vmatprep.subr.mxu1 %v5554_v5 }
0x1364   :  { %3695 = vmatpush3.msra.mxu1 %v4608_v1 }
0x1365   :  { %3710 = vmatprep.subr.mxu1 %v5554_v5 }
0x141d   :  { %v1674_v34 = vpop.f32.mrf.mxu1 }
0x141e   :  { %v1679_v27 = vrot.slane %v1674_v34, 1  ;;  %v1680_v52 = vrot.slane %v1674_v34, 2  ;;  %v1681_v58 = vrot.slane %v1674_v34, 3  ;;  %v1686_v61 = vadd.f32 %v1674_v34, %v1594_v8 }
0x141f   :  { %v3676_v44 = vpop.f32.mrf.mxu1 }
0x1420   :  { %v1687_v57 = vadd.f32 %v1679_v27, %v1595_v7  ;;  %v1688_v12 = vadd.f32 %v1680_v52, %v1596_v9  ;;  %v1689_v4 = vadd.f32 %v1681_v58, %v1597_v50  ;;  %v1690_v40 = vmul.f32 %v1686_v61, %v4255_v38 }
0x1422   :  { %v1691_v3 = vmul.f32 %v1687_v57, %v4255_v38  ;;  %v1692_v22 = vmul.f32 %v1688_v12, %v4255_v38  ;;  %v1693_v6 = vmul.f32 %v1689_v4, %v4255_v38  ;;  %3888 = vtanh.f32 %v1690_v40 }
0x1424   :  { %3890 = vtanh.f32 %v1691_v3 }
0x1425   :  { %3892 = vtanh.f32 %v1692_v22 }
0x1426   :  { %3894 = vtanh.f32 %v1693_v6 }
0x142f   :  { %v3889_v21 = vpop.eup %3888 }
0x1430   :  { %v1698_v51 = vmul.f32 %v3889_v21, %v4255_v38 }
0x1431   :  { %v3891_v25 = vpop.eup %3890 }
0x1432   :  { %v3893_v11 = vpop.eup %3892  ;;  %v1699_v43 = vmul.f32 %v3891_v25, %v4255_v38  ;;  %v1702_v27 = vadd.f32 %v1698_v51, %v4263_v59 }
0x1433   :  { %v3895_v48 = vpop.eup %3894  ;;  %v1700_v19 = vmul.f32 %v3893_v11, %v4255_v38 }
0x1434   :  { %v1703_v30 = vadd.f32 %v1699_v43, %v4263_v59  ;;  %v1701_v34 = vmul.f32 %v3895_v48, %v4255_v38  ;;  %v1706_v25 = vmul.f32 %v1702_v27, %v4709_v32 }
0x1435   :  { %v1704_v8 = vadd.f32 %v1700_v19, %v4263_v59 }
0x1436   :  { %1716 = vrot.lane.b32.xlu1 %v1703_v30, %s4107_s2  ;;  %v1705_v52 = vadd.f32 %v1701_v34, %v4263_v59  ;;  %v1707_v4 = vmul.f32 %v1703_v30, %v4701_v63 }
0x1437   :  { %1718 = vrot.lane.b32.xlu0 %v1704_v8, %s4107_s2  ;;  %v1708_v40 = vmul.f32 %v1704_v8, %v4703_v2 }
0x1438   :  { %v1709_v11 = vmul.f32 %v1705_v52, %v4711_v53 }
0x143a   :  { %1714 = vrot.lane.b32.xlu1 %v1702_v27, %s4107_s2 }
0x143b   :  { %1720 = vrot.lane.b32.xlu0 %v1705_v52, %s4107_s2 }
0x14a8   :  { %v1717_v58 = vpop.permute.xlu1 %1716 }
0x14a9   :  { %v1719_v61 = vpop.permute.xlu0 %1718  ;;  %v1727_v7 = vmul.f32 %v1717_v58, %v1703_v30 }
0x14aa   :  { %v1728_v9 = vmul.f32 %v1719_v61, %v1704_v8 }
0x14ab   :  { %1736 = vrot.lane.b32.xlu1 %v1727_v7, %s4108_s3 }
0x14ac   :  { %1738 = vrot.lane.b32.xlu0 %v1728_v9, %s4108_s3  ;;  %v1715_v50 = vpop.permute.xlu1 %1714 }
0x14ad   :  { %v1721_v44 = vpop.permute.xlu0 %1720  ;;  %v1726_v57 = vmul.f32 %v1715_v50, %v1702_v27 }
0x14ae   :  { %v1729_v12 = vmul.f32 %v1721_v44, %v1705_v52 }
0x14af   :  { %1734 = vrot.lane.b32.xlu1 %v1726_v57, %s4108_s3 }
0x14b0   :  { %1740 = vrot.lane.b32.xlu0 %v1729_v12, %s4108_s3 }
0x151d   :  { %v1737_v3 = vpop.permute.xlu1 %1736 }
0x151e   :  { %v1739_v22 = vpop.permute.xlu0 %1738  ;;  %v4768_v6 = vadd.f32 %v1737_v3, %v1707_v4 }
0x151f   :  { %v4770_v21 = vadd.f32 %v1739_v22, %v1708_v40 }
0x1520   :  { %3896 = vtanh.f32 %v4768_v6 }
0x1521   :  { %3898 = vtanh.f32 %v4770_v21  ;;  %v1735_v43 = vpop.permute.xlu1 %1734 }
0x1522   :  { %v1741_v48 = vpop.permute.xlu0 %1740  ;;  %v4776_v19 = vadd.f32 %v1735_v43, %v1706_v25 }
0x1523   :  { %v4778_v63 = vadd.f32 %v1741_v48, %v1709_v11 }
0x1524   :  { %3900 = vtanh.f32 %v4776_v19 }
0x1525   :  { %3902 = vtanh.f32 %v4778_v63 }
0x152d   :  { %v3897_v2 = vpop.eup %3896 }
0x152e   :  { %v3899_v51 = vpop.eup %3898  ;;  %1760 = vrot.lane.b32.xlu1 %v3897_v2, %s4107_s2  ;;  %v1795_v2 = vld [vmem:[#allocation2 + $0x18] sm:$0x1] }
0x152f   :  { %1762 = vrot.lane.b32.xlu0 %v3899_v51, %s4107_s2  ;;  %v1796_v51 = vld [vmem:[#allocation2 + $0x28] sm:$0x1] }
0x1531   :  { %v3901_v32 = vpop.eup %3900 }
0x1532   :  { %v3903_v34 = vpop.eup %3902  ;;  %1758 = vrot.lane.b32.xlu1 %v3901_v32, %s4107_s2  ;;  %v1797_v32 = vld [vmem:[#allocation2 + $0x38] sm:$0x1] }
0x1533   :  { %1764 = vrot.lane.b32.xlu0 %v3903_v34, %s4107_s2 }
0x15a0   :  { %v1761_v53 = vpop.permute.xlu1 %1760 }
0x15a1   :  { %v1763_v58 = vpop.permute.xlu0 %1762  ;;  %v4786_v61 = vmul.f32 %v1761_v53, %v1703_v30 }
0x15a2   :  { %v4788_v7 = vmul.f32 %v1763_v58, %v1704_v8 }
0x15a3   :  { %v1798_v50 = vrot.slane %v4786_v61, 7 }
0x15a4   :  { %v1759_v9 = vpop.permute.xlu1 %1758  ;;  %v1800_v12 = vrot.slane %v4788_v7, 6 }
0x15a5   :  { %v1765_v44 = vpop.permute.xlu0 %1764  ;;  %v4791_v57 = vmul.f32 %v1759_v9, %v1702_v27  ;;  %v1794_v27 = vld [vmem:[#allocation2 + $0x8] sm:$0x1] }
0x15a6   :  { %v4794_v4 = vmul.f32 %v1765_v44, %v1705_v52 }
0x15a7   :  { %v1799_v40 = vsel %vm396_vm6, %v1798_v50, %v4791_v57 }
0x15a8   :  { %v1802_v3 = vrot.slane %v4794_v4, 5  ;;  %v1801_v30 = vsel %vm399_vm7, %v1800_v12, %v1799_v40 }
0x15aa   :  { %v1803_v8 = vsel %vm402_vm8, %v1802_v3, %v1801_v30 }
0x15ab   :  { %1804 = vrot.lane.b32.xlu1 %v1803_v8, %s4108_s3 }
0x161d   :  { %v1805_v22 = vpop.permute.xlu1 %1804 }
0x161e   :  { %3686 = vmatmul.mubr.msk.f32.vlgmr.msra.gmra.mxu0 %vm200_vm9, %v1805_v22 }
0x161f   :  { %3700 = vmatpush3.msra.mxu0 %v4585_v35  ;;  %3707 = vmatprep.mubr.msk.f32.mxu0 %vm4105_vm2, %v5554_v5 }
0x1620   :  { %3701 = vmatprep.subr.mxu0 %v5554_v5 }
0x1621   :  { %3702 = vmatpush3.msra.mxu0 %v4594_v36 }
0x1622   :  { %3703 = vmatprep.subr.mxu0 %v5554_v5 }
0x1623   :  { %3704 = vmatpush3.msra.mxu0 %v4601_v39 }
0x1624   :  { %3705 = vmatprep.subr.mxu0 %v5554_v5 }
0x1625   :  { %3706 = vmatpush3.msra.mxu0 %v4608_v1 }
0x1626   :  { %3721 = vmatprep.subr.mxu0 %v5554_v5 }
0x16de   :  { %v1874_v52 = vpop.f32.mrf.mxu0 }
0x16df   :  { %v1879_v25 = vrot.slane %v1874_v52, 1  ;;  %v1880_v11 = vrot.slane %v1874_v52, 2  ;;  %v1881_v43 = vrot.slane %v1874_v52, 3  ;;  %v1886_v48 = vadd.f32 %v1874_v52, %v1794_v27 }
0x16e0   :  { %v3687_v34 = vpop.f32.mrf.mxu0 }
0x16e1   :  { %v1887_v53 = vadd.f32 %v1879_v25, %v1795_v2  ;;  %v1888_v58 = vadd.f32 %v1880_v11, %v1796_v51  ;;  %v1889_v9 = vadd.f32 %v1881_v43, %v1797_v32  ;;  %v1890_v50 = vmul.f32 %v1886_v48, %v4255_v38 }
0x16e3   :  { %v1891_v44 = vmul.f32 %v1887_v53, %v4255_v38  ;;  %v1892_v12 = vmul.f32 %v1888_v58, %v4255_v38  ;;  %v1893_v40 = vmul.f32 %v1889_v9, %v4255_v38  ;;  %3904 = vtanh.f32 %v1890_v50 }
0x16e5   :  { %3906 = vtanh.f32 %v1891_v44 }
0x16e6   :  { %3908 = vtanh.f32 %v1892_v12 }
0x16e7   :  { %3910 = vtanh.f32 %v1893_v40 }
0x16f0   :  { %v3905_v3 = vpop.eup %3904 }
0x16f1   :  { %v1898_v11 = vmul.f32 %v3905_v3, %v4255_v38 }
0x16f2   :  { %v3907_v30 = vpop.eup %3906 }
0x16f3   :  { %v3909_v8 = vpop.eup %3908  ;;  %v1899_v22 = vmul.f32 %v3907_v30, %v4255_v38  ;;  %v1902_v2 = vadd.f32 %v1898_v11, %v4263_v59 }
0x16f4   :  { %v3911_v27 = vpop.eup %3910  ;;  %v1900_v52 = vmul.f32 %v3909_v8, %v4255_v38 }
0x16f5   :  { %v1903_v25 = vadd.f32 %v1899_v22, %v4263_v59  ;;  %v1901_v48 = vmul.f32 %v3911_v27, %v4255_v38 }
0x16f6   :  { %v1904_v43 = vadd.f32 %v1900_v52, %v4263_v59  ;;  %v1906_v52 = vmul.f32 %v1902_v2, %v4776_v19 }
0x16f7   :  { %1916 = vrot.lane.b32.xlu0 %v1903_v25, %s4107_s2  ;;  %v1905_v51 = vadd.f32 %v1901_v48, %v4263_v59  ;;  %v1907_v40 = vmul.f32 %v1903_v25, %v4768_v6 }
0x16f8   :  { %1918 = vrot.lane.b32.xlu1 %v1904_v43, %s4107_s2  ;;  %v1908_v3 = vmul.f32 %v1904_v43, %v4770_v21 }
0x16f9   :  { %v1909_v11 = vmul.f32 %v1905_v51, %v4778_v63 }
0x16fb   :  { %1914 = vrot.lane.b32.xlu0 %v1902_v2, %s4107_s2 }
0x16fc   :  { %1920 = vrot.lane.b32.xlu1 %v1905_v51, %s4107_s2 }
0x1769   :  { %v1917_v32 = vpop.permute.xlu0 %1916 }
0x176a   :  { %v1919_v34 = vpop.permute.xlu1 %1918  ;;  %v1927_v53 = vmul.f32 %v1917_v32, %v1903_v25 }
0x176b   :  { %v1928_v58 = vmul.f32 %v1919_v34, %v1904_v43 }
0x176c   :  { %1936 = vrot.lane.b32.xlu0 %v1927_v53, %s4108_s3 }
0x176d   :  { %1938 = vrot.lane.b32.xlu1 %v1928_v58, %s4108_s3  ;;  %v1915_v9 = vpop.permute.xlu0 %1914 }
0x176e   :  { %v1921_v50 = vpop.permute.xlu1 %1920  ;;  %v1926_v44 = vmul.f32 %v1915_v9, %v1902_v2 }
0x176f   :  { %v1929_v12 = vmul.f32 %v1921_v50, %v1905_v51 }
0x1770   :  { %1934 = vrot.lane.b32.xlu0 %v1926_v44, %s4108_s3 }
0x1771   :  { %1940 = vrot.lane.b32.xlu1 %v1929_v12, %s4108_s3 }
0x17de   :  { %v1937_v30 = vpop.permute.xlu0 %1936 }
0x17df   :  { %v1939_v8 = vpop.permute.xlu1 %1938  ;;  %v4835_v22 = vadd.f32 %v1937_v30, %v1907_v40 }
0x17e0   :  { %v4837_v27 = vadd.f32 %v1939_v8, %v1908_v3 }
0x17e1   :  { %3912 = vtanh.f32 %v4835_v22 }
0x17e2   :  { %3914 = vtanh.f32 %v4837_v27  ;;  %v1935_v48 = vpop.permute.xlu0 %1934 }
0x17e3   :  { %v1941_v32 = vpop.permute.xlu1 %1940  ;;  %v4843_v34 = vadd.f32 %v1935_v48, %v1906_v52 }
0x17e4   :  { %v4845_v6 = vadd.f32 %v1941_v32, %v1909_v11 }
0x17e5   :  { %3916 = vtanh.f32 %v4843_v34 }
0x17e6   :  { %3918 = vtanh.f32 %v4845_v6 }
0x17ee   :  { %v3913_v21 = vpop.eup %3912 }
0x17ef   :  { %v3915_v53 = vpop.eup %3914  ;;  %1960 = vrot.lane.b32.xlu0 %v3913_v21, %s4107_s2 }
0x17f0   :  { %1962 = vrot.lane.b32.xlu1 %v3915_v53, %s4107_s2 }
0x17f2   :  { %v3917_v19 = vpop.eup %3916 }
0x17f3   :  { %v3919_v58 = vpop.eup %3918  ;;  %1958 = vrot.lane.b32.xlu0 %v3917_v19, %s4107_s2 }
0x17f4   :  { %1964 = vrot.lane.b32.xlu1 %v3919_v58, %s4107_s2 }
0x1861   :  { %v1961_v63 = vpop.permute.xlu0 %1960 }
0x1862   :  { %v1963_v9 = vpop.permute.xlu1 %1962  ;;  %v4853_v50 = vmul.f32 %v1961_v63, %v1903_v25  ;;  %v1995_v63 = vld [vmem:[#allocation2 + $0x19] sm:$0x1] }
0x1863   :  { %v4855_v44 = vmul.f32 %v1963_v9, %v1904_v43  ;;  %v1996_v9 = vld [vmem:[#allocation2 + $0x29] sm:$0x1] }
0x1864   :  { %v1998_v40 = vrot.slane %v4853_v50, 7 }
0x1865   :  { %5578 = vst [vmem:[#allocation10_spill] sm:$0xff] %v4855_v44  ;;  %v1959_v12 = vpop.permute.xlu0 %1958  ;;  %v2000_v8 = vrot.slane %v4855_v44, 6 }
0x1866   :  { %v1965_v3 = vpop.permute.xlu1 %1964  ;;  %v4858_v30 = vmul.f32 %v1959_v12, %v1902_v2  ;;  %v1994_v2 = vld [vmem:[#allocation2 + $0x9] sm:$0x1]  ;;  %v1997_v12 = vld [vmem:[#allocation2 + $0x39] sm:$0x1] }
0x1867   :  { %v4861_v52 = vmul.f32 %v1965_v3, %v1905_v51 }
0x1868   :  { %v1999_v11 = vsel %vm396_vm6, %v1998_v40, %v4858_v30 }
0x1869   :  { %v2002_v48 = vrot.slane %v4861_v52, 5  ;;  %v2001_v25 = vsel %vm399_vm7, %v2000_v8, %v1999_v11 }
0x186b   :  { %v2003_v43 = vsel %vm402_vm8, %v2002_v48, %v2001_v25 }
0x186c   :  { %2004 = vrot.lane.b32.xlu0 %v2003_v43, %s4108_s3 }
0x18de   :  { %v2005_v32 = vpop.permute.xlu0 %2004 }
0x18df   :  { %3697 = vmatmul.mubr.msk.f32.vlgmr.msra.gmra.mxu1 %vm200_vm9, %v2005_v32 }
0x18e0   :  { %3711 = vmatpush3.msra.mxu1 %v4585_v35  ;;  %3718 = vmatprep.mubr.msk.f32.mxu1 %vm4105_vm2, %v5554_v5 }
0x18e1   :  { %3712 = vmatprep.subr.mxu1 %v5554_v5 }
0x18e2   :  { %3713 = vmatpush3.msra.mxu1 %v4594_v36 }
0x18e3   :  { %3714 = vmatprep.subr.mxu1 %v5554_v5 }
0x18e4   :  { %3715 = vmatpush3.msra.mxu1 %v4601_v39 }
0x18e5   :  { %3716 = vmatprep.subr.mxu1 %v5554_v5 }
0x18e6   :  { %3717 = vmatpush3.msra.mxu1 %v4608_v1 }
0x18e7   :  { %3732 = vmatprep.subr.mxu1 %v5554_v5 }
0x199f   :  { %v2074_v51 = vpop.f32.mrf.mxu1 }
0x19a0   :  { %v2079_v21 = vrot.slane %v2074_v51, 1  ;;  %v2080_v53 = vrot.slane %v2074_v51, 2  ;;  %v2081_v19 = vrot.slane %v2074_v51, 3  ;;  %v2086_v58 = vadd.f32 %v2074_v51, %v1994_v2 }
0x19a1   :  { %v3698_v40 = vpop.f32.mrf.mxu1 }
0x19a2   :  { %v2087_v3 = vadd.f32 %v2079_v21, %v1995_v63  ;;  %v2088_v8 = vadd.f32 %v2080_v53, %v1996_v9  ;;  %v2089_v11 = vadd.f32 %v2081_v19, %v1997_v12  ;;  %v2090_v48 = vmul.f32 %v2086_v58, %v4255_v38 }
0x19a4   :  { %v2091_v25 = vmul.f32 %v2087_v3, %v4255_v38  ;;  %v2092_v43 = vmul.f32 %v2088_v8, %v4255_v38  ;;  %v2093_v32 = vmul.f32 %v2089_v11, %v4255_v38  ;;  %3920 = vtanh.f32 %v2090_v48 }
0x19a6   :  { %3922 = vtanh.f32 %v2091_v25 }
0x19a7   :  { %3924 = vtanh.f32 %v2092_v43 }
0x19a8   :  { %3926 = vtanh.f32 %v2093_v32 }
0x19b1   :  { %v3921_v2 = vpop.eup %3920 }
0x19b2   :  { %v2098_v58 = vmul.f32 %v3921_v2, %v4255_v38 }
0x19b3   :  { %v3923_v51 = vpop.eup %3922 }
0x19b4   :  { %v3925_v5 = vpop.eup %3924  ;;  %v2099_v40 = vmul.f32 %v3923_v51, %v4255_v38  ;;  %v2102_v12 = vadd.f32 %v2098_v58, %v4263_v59 }
0x19b5   :  { %v3927_v21 = vpop.eup %3926  ;;  %v2100_v53 = vmul.f32 %v3925_v5, %v4255_v38 }
0x19b6   :  { %v2103_v19 = vadd.f32 %v2099_v40, %v4263_v59  ;;  %v2101_v9 = vmul.f32 %v3927_v21, %v4255_v38 }
0x19b7   :  { %v2104_v63 = vadd.f32 %v2100_v53, %v4263_v59 }
0x19b8   :  { %2116 = vrot.lane.b32.xlu1 %v2103_v19, %s4107_s2  ;;  %v2105_v3 = vadd.f32 %v2101_v9, %v4263_v59  ;;  %v2107_v51 = vmul.f32 %v2103_v19, %v4835_v22 }
0x19b9   :  { %2118 = vrot.lane.b32.xlu0 %v2104_v63, %s4107_s2  ;;  %v2108_v40 = vmul.f32 %v2104_v63, %v4837_v27 }
0x19bc   :  { %2114 = vrot.lane.b32.xlu1 %v2102_v12, %s4107_s2 }
0x19bd   :  { %2120 = vrot.lane.b32.xlu0 %v2105_v3, %s4107_s2 }
0x1a2a   :  { %v2117_v5 = vpop.permute.xlu1 %2116 }
0x1a2b   :  { %v2119_v8 = vpop.permute.xlu0 %2118  ;;  %v2127_v11 = vmul.f32 %v2117_v5, %v2103_v19  ;;  %v2106_v5 = vmul.f32 %v2102_v12, %v4843_v34 }
0x1a2c   :  { %v2128_v48 = vmul.f32 %v2119_v8, %v2104_v63  ;;  %v2109_v8 = vmul.f32 %v2105_v3, %v4845_v6 }
0x1a2d   :  { %2136 = vrot.lane.b32.xlu1 %v2127_v11, %s4108_s3 }
0x1a2e   :  { %2138 = vrot.lane.b32.xlu0 %v2128_v48, %s4108_s3  ;;  %v2115_v25 = vpop.permute.xlu1 %2114 }
0x1a2f   :  { %v2121_v43 = vpop.permute.xlu0 %2120  ;;  %v2126_v32 = vmul.f32 %v2115_v25, %v2102_v12 }
0x1a30   :  { %v2129_v2 = vmul.f32 %v2121_v43, %v2105_v3 }
0x1a31   :  { %2134 = vrot.lane.b32.xlu1 %v2126_v32, %s4108_s3 }
0x1a32   :  { %2140 = vrot.lane.b32.xlu0 %v2129_v2, %s4108_s3 }
0x1a9f   :  { %v2137_v21 = vpop.permute.xlu1 %2136 }
0x1aa0   :  { %v2139_v53 = vpop.permute.xlu0 %2138  ;;  %v4902_v58 = vadd.f32 %v2137_v21, %v2107_v51 }
0x1aa1   :  { %v4904_v9 = vadd.f32 %v2139_v53, %v2108_v40 }
0x1aa2   :  { %3928 = vtanh.f32 %v4902_v58 }
0x1aa3   :  { %3930 = vtanh.f32 %v4904_v9  ;;  %v2135_v11 = vpop.permute.xlu1 %2134 }
0x1aa4   :  { %v2141_v48 = vpop.permute.xlu0 %2140  ;;  %v4910_v25 = vadd.f32 %v2135_v11, %v2106_v5 }
0x1aa5   :  { %v4912_v22 = vadd.f32 %v2141_v48, %v2109_v8 }
0x1aa6   :  { %3932 = vtanh.f32 %v4910_v25 }
0x1aa7   :  { %3934 = vtanh.f32 %v4912_v22 }
0x1aaf   :  { %v3929_v27 = vpop.eup %3928 }
0x1ab0   :  { %v3931_v43 = vpop.eup %3930  ;;  %2160 = vrot.lane.b32.xlu1 %v3929_v27, %s4107_s2 }
0x1ab1   :  { %2162 = vrot.lane.b32.xlu0 %v3931_v43, %s4107_s2 }
0x1ab3   :  { %v3933_v34 = vpop.eup %3932 }
0x1ab4   :  { %v3935_v32 = vpop.eup %3934  ;;  %2158 = vrot.lane.b32.xlu1 %v3933_v34, %s4107_s2 }
0x1ab5   :  { %2164 = vrot.lane.b32.xlu0 %v3935_v32, %s4107_s2 }
0x1b22   :  { %v2161_v6 = vpop.permute.xlu1 %2160 }
0x1b23   :  { %v2163_v2 = vpop.permute.xlu0 %2162  ;;  %v4920_v51 = vmul.f32 %v2161_v6, %v2103_v19 }
0x1b24   :  { %v4922_v40 = vmul.f32 %v2163_v2, %v2104_v63 }
0x1b25   :  { %5579 = vst [vmem:[#allocation11_spill] sm:$0xff] %v4920_v51  ;;  %v2198_v53 = vrot.slane %v4920_v51, 7 }
0x1b26   :  { %5580 = vst [vmem:[#allocation12_spill] sm:$0xff] %v4922_v40  ;;  %v2159_v21 = vpop.permute.xlu1 %2158  ;;  %v2200_v11 = vrot.slane %v4922_v40, 6 }
0x1b27   :  { %v2165_v5 = vpop.permute.xlu0 %2164  ;;  %v4925_v8 = vmul.f32 %v2159_v21, %v2102_v12  ;;  %v5583_v12 = vmov 0.0  }
0x1b28   :  { %v4928_v48 = vmul.f32 %v2165_v5, %v2105_v3  ;;  %v2194_v3 = vld [vmem:[#allocation2 + $0xa] sm:$0x1] }
0x1b29   :  { %5581 = vst [vmem:[#allocation13_spill] sm:$0xff] %v4925_v8  ;;  %v2199_v27 = vsel %vm396_vm6, %v2198_v53, %v4925_v8  ;;  %v2195_v53 = vld [vmem:[#allocation2 + $0x1a] sm:$0x1]  ;;  %v2196_v5 = vld [vmem:[#allocation2 + $0x2a] sm:$0x1] }
0x1b2a   :  { %5582 = vst [vmem:[#allocation14_spill] sm:$0xff] %v4928_v48  ;;  %v2202_v43 = vrot.slane %v4928_v48, 5  ;;  %v2201_v19 = vsel %vm399_vm7, %v2200_v11, %v2199_v27  ;;  %v2197_v11 = vld [vmem:[#allocation2 + $0x3a] sm:$0x1] }
0x1b2c   :  { %v2203_v63 = vsel %vm402_vm8, %v2202_v43, %v2201_v19 }
0x1b2d   :  { %2204 = vrot.lane.b32.xlu1 %v2203_v63, %s4108_s3 }
0x1b9f   :  { %v2205_v34 = vpop.permute.xlu1 %2204 }
0x1ba0   :  { %3708 = vmatmul.mubr.msk.f32.vlgmr.msra.gmra.mxu0 %vm200_vm9, %v2205_v34 }
0x1ba1   :  { %3722 = vmatpush3.msra.mxu0 %v4585_v35  ;;  %3729 = vmatprep.mubr.msk.f32.mxu0 %vm4105_vm2, %v5583_v12 }
0x1ba2   :  { %3723 = vmatprep.subr.mxu0 %v5583_v12 }
0x1ba3   :  { %3724 = vmatpush3.msra.mxu0 %v4594_v36 }
0x1ba4   :  { %3725 = vmatprep.subr.mxu0 %v5583_v12 }
0x1ba5   :  { %3726 = vmatpush3.msra.mxu0 %v4601_v39 }
0x1ba6   :  { %3727 = vmatprep.subr.mxu0 %v5583_v12 }
0x1ba7   :  { %3728 = vmatpush3.msra.mxu0 %v4608_v1 }
0x1ba8   :  { %3743 = vmatprep.subr.mxu0 %v5583_v12 }
0x1c60   :  { %v2274_v32 = vpop.f32.mrf.mxu0 }
0x1c61   :  { %v2279_v35 = vrot.slane %v2274_v32, 1  ;;  %v2280_v6 = vrot.slane %v2274_v32, 2  ;;  %v2281_v2 = vrot.slane %v2274_v32, 3  ;;  %v2286_v21 = vadd.f32 %v2274_v32, %v2194_v3 }
0x1c62   :  { %v3709_v36 = vpop.f32.mrf.mxu0 }
0x1c63   :  { %v2287_v27 = vadd.f32 %v2279_v35, %v2195_v53  ;;  %v2288_v43 = vadd.f32 %v2280_v6, %v2196_v5  ;;  %v2289_v19 = vadd.f32 %v2281_v2, %v2197_v11  ;;  %v2290_v39 = vmul.f32 %v2286_v21, %v4255_v38 }
0x1c65   :  { %v2291_v63 = vmul.f32 %v2287_v27, %v4255_v38  ;;  %v2292_v1 = vmul.f32 %v2288_v43, %v4255_v38  ;;  %v2293_v34 = vmul.f32 %v2289_v19, %v4255_v38  ;;  %3936 = vtanh.f32 %v2290_v39 }
0x1c67   :  { %3938 = vtanh.f32 %v2291_v63 }
0x1c68   :  { %3940 = vtanh.f32 %v2292_v1 }
0x1c69   :  { %3942 = vtanh.f32 %v2293_v34 }
0x1c72   :  { %v3937_v3 = vpop.eup %3936 }
0x1c73   :  { %v2298_v21 = vmul.f32 %v3937_v3, %v4255_v38 }
0x1c74   :  { %v3939_v32 = vpop.eup %3938 }
0x1c75   :  { %v3941_v48 = vpop.eup %3940  ;;  %v2299_v36 = vmul.f32 %v3939_v32, %v4255_v38  ;;  %v2302_v11 = vadd.f32 %v2298_v21, %v4263_v59 }
0x1c76   :  { %v3943_v35 = vpop.eup %3942  ;;  %v2300_v6 = vmul.f32 %v3941_v48, %v4255_v38 }
0x1c77   :  { %v2303_v2 = vadd.f32 %v2299_v36, %v4263_v59  ;;  %v2301_v5 = vmul.f32 %v3943_v35, %v4255_v38 }
0x1c78   :  { %v2304_v53 = vadd.f32 %v2300_v6, %v4263_v59 }
0x1c79   :  { %2316 = vrot.lane.b32.xlu0 %v2303_v2, %s4107_s2  ;;  %v2305_v27 = vadd.f32 %v2301_v5, %v4263_v59  ;;  %v2307_v32 = vmul.f32 %v2303_v2, %v4902_v58 }
0x1c7a   :  { %2318 = vrot.lane.b32.xlu1 %v2304_v53, %s4107_s2  ;;  %v2308_v36 = vmul.f32 %v2304_v53, %v4904_v9 }
0x1c7d   :  { %2314 = vrot.lane.b32.xlu0 %v2302_v11, %s4107_s2 }
0x1c7e   :  { %2320 = vrot.lane.b32.xlu1 %v2305_v27, %s4107_s2 }
0x1ceb   :  { %v2317_v48 = vpop.permute.xlu0 %2316 }
0x1cec   :  { %v2319_v43 = vpop.permute.xlu1 %2318  ;;  %v2327_v19 = vmul.f32 %v2317_v48, %v2303_v2  ;;  %v2306_v48 = vmul.f32 %v2302_v11, %v4910_v25 }
0x1ced   :  { %v2328_v39 = vmul.f32 %v2319_v43, %v2304_v53  ;;  %v2309_v43 = vmul.f32 %v2305_v27, %v4912_v22 }
0x1cee   :  { %2336 = vrot.lane.b32.xlu0 %v2327_v19, %s4108_s3 }
0x1cef   :  { %2338 = vrot.lane.b32.xlu1 %v2328_v39, %s4108_s3  ;;  %v2315_v63 = vpop.permute.xlu0 %2314 }
0x1cf0   :  { %v2321_v1 = vpop.permute.xlu1 %2320  ;;  %v2326_v34 = vmul.f32 %v2315_v63, %v2302_v11 }
0x1cf1   :  { %v2329_v3 = vmul.f32 %v2321_v1, %v2305_v27 }
0x1cf2   :  { %2334 = vrot.lane.b32.xlu0 %v2326_v34, %s4108_s3 }
0x1cf3   :  { %2340 = vrot.lane.b32.xlu1 %v2329_v3, %s4108_s3 }
0x1d60   :  { %v2337_v35 = vpop.permute.xlu0 %2336 }
0x1d61   :  { %v2339_v6 = vpop.permute.xlu1 %2338  ;;  %v4969_v21 = vadd.f32 %v2337_v35, %v2307_v32 }
0x1d62   :  { %v4971_v5 = vadd.f32 %v2339_v6, %v2308_v36 }
0x1d63   :  { %3944 = vtanh.f32 %v4969_v21 }
0x1d64   :  { %3946 = vtanh.f32 %v4971_v5  ;;  %v2335_v19 = vpop.permute.xlu0 %2334 }
0x1d65   :  { %v2341_v39 = vpop.permute.xlu1 %2340  ;;  %v4977_v63 = vadd.f32 %v2335_v19, %v2306_v48 }
0x1d66   :  { %v4979_v58 = vadd.f32 %v2341_v39, %v2309_v43 }
0x1d67   :  { %3948 = vtanh.f32 %v4977_v63 }
0x1d68   :  { %3950 = vtanh.f32 %v4979_v58 }
0x1d70   :  { %v3945_v9 = vpop.eup %3944 }
0x1d71   :  { %v3947_v1 = vpop.eup %3946  ;;  %2360 = vrot.lane.b32.xlu0 %v3945_v9, %s4107_s2 }
0x1d72   :  { %2362 = vrot.lane.b32.xlu1 %v3947_v1, %s4107_s2 }
0x1d74   :  { %v3949_v25 = vpop.eup %3948 }
0x1d75   :  { %v3951_v34 = vpop.eup %3950  ;;  %2358 = vrot.lane.b32.xlu0 %v3949_v25, %s4107_s2 }
0x1d76   :  { %2364 = vrot.lane.b32.xlu1 %v3951_v34, %s4107_s2  ;;  %v5023_v34 = vld [vmem:[%s5550_s4 + $0x8] sm:$0xff] }
0x1de3   :  { %v2361_v22 = vpop.permute.xlu0 %2360 }
0x1de4   :  { %v2363_v3 = vpop.permute.xlu1 %2362  ;;  %v4987_v32 = vmul.f32 %v2361_v22, %v2303_v2  ;;  %v5030_v22 = vld [vmem:[%s5550_s4] sm:$0xff] }
0x1de5   :  { %v4989_v36 = vmul.f32 %v2363_v3, %v2304_v53  ;;  %v2394_v3 = vld [vmem:[#allocation2 + $0xb] sm:$0x1] }
0x1de6   :  { %5584 = vst [vmem:[#allocation15_spill] sm:$0xff] %v4987_v32  ;;  %v2398_v6 = vrot.slane %v4987_v32, 7 }
0x1de7   :  { %5585 = vst [vmem:[#allocation16_spill] sm:$0xff] %v4989_v36  ;;  %v2359_v35 = vpop.permute.xlu0 %2358  ;;  %v2400_v19 = vrot.slane %v4989_v36, 6 }
0x1de8   :  { %v2365_v48 = vpop.permute.xlu1 %2364  ;;  %v4992_v43 = vmul.f32 %v2359_v35, %v2302_v11  ;;  %v5007_v11 = vld [vmem:[%s5550_s4 + $0x18] sm:$0xff] }
0x1de9   :  { %v4995_v39 = vmul.f32 %v2365_v48, %v2305_v27  ;;  %v5016_v27 = vld [vmem:[%s5550_s4 + $0x10] sm:$0xff]  ;;  %s4109_s4 = smov 96  }
0x1dea   :  { %5586 = vst [vmem:[#allocation17_spill] sm:$0xff] %v4992_v43  ;;  %v2399_v9 = vsel %vm396_vm6, %v2398_v6, %v4992_v43 }
0x1deb   :  { %5587 = vst [vmem:[#allocation18_spill] sm:$0xff] %v4995_v39  ;;  %v2402_v1 = vrot.slane %v4995_v39, 5  ;;  %v2401_v2 = vsel %vm399_vm7, %v2400_v19, %v2399_v9 }
0x1ded   :  { %v2403_v53 = vsel %vm402_vm8, %v2402_v1, %v2401_v2  ;;  %v2395_v1 = vld [vmem:[#allocation2 + $0x1b] sm:$0x1]  ;;  %v2396_v2 = vld [vmem:[#allocation2 + $0x2b] sm:$0x1] }
0x1dee   :  { %2404 = vrot.lane.b32.xlu0 %v2403_v53, %s4108_s3  ;;  %v2397_v53 = vld [vmem:[#allocation2 + $0x3b] sm:$0x1] }
0x1e60   :  { %v2405_v25 = vpop.permute.xlu0 %2404 }
0x1e61   :  { %3719 = vmatmul.mubr.msk.f32.vlgmr.msra.gmra.mxu1 %vm200_vm9, %v2405_v25 }
0x1e62   :  { %3733 = vmatpush3.msra.mxu1 %v5007_v11  ;;  %3740 = vmatprep.mubr.msk.f32.mxu1 %vm4105_vm2, %v5583_v12 }
0x1e63   :  { %3734 = vmatprep.subr.mxu1 %v5583_v12 }
0x1e64   :  { %3735 = vmatpush3.msra.mxu1 %v5016_v27 }
0x1e65   :  { %3736 = vmatprep.subr.mxu1 %v5583_v12 }
0x1e66   :  { %3737 = vmatpush3.msra.mxu1 %v5023_v34 }
0x1e67   :  { %3738 = vmatprep.subr.mxu1 %v5583_v12 }
0x1e68   :  { %3739 = vmatpush3.msra.mxu1 %v5030_v22 }
0x1e69   :  { %3754 = vmatprep.subr.mxu1 %v5583_v12 }
0x1f21   :  { %v2474_v35 = vpop.f32.mrf.mxu1 }
0x1f22   :  { %v2479_v6 = vrot.slane %v2474_v35, 1  ;;  %v2480_v48 = vrot.slane %v2474_v35, 2  ;;  %v2481_v19 = vrot.slane %v2474_v35, 3  ;;  %v2486_v9 = vadd.f32 %v2474_v35, %v2394_v3 }
0x1f23   :  { %v3720_v25 = vpop.f32.mrf.mxu1 }
0x1f24   :  { %v2487_v39 = vadd.f32 %v2479_v6, %v2395_v1  ;;  %v2488_v32 = vadd.f32 %v2480_v48, %v2396_v2  ;;  %v2489_v36 = vadd.f32 %v2481_v19, %v2397_v53  ;;  %v2490_v43 = vmul.f32 %v2486_v9, %v4255_v38 }
0x1f26   :  { %v2491_v51 = vmul.f32 %v2487_v39, %v4255_v38  ;;  %v2492_v40 = vmul.f32 %v2488_v32, %v4255_v38  ;;  %v2493_v44 = vmul.f32 %v2489_v36, %v4255_v38  ;;  %3952 = vtanh.f32 %v2490_v43 }
0x1f28   :  { %3954 = vtanh.f32 %v2491_v51 }
0x1f29   :  { %3956 = vtanh.f32 %v2492_v40 }
0x1f2a   :  { %3958 = vtanh.f32 %v2493_v44 }
0x1f33   :  { %v3953_v3 = vpop.eup %3952 }
0x1f34   :  { %v2498_v39 = vmul.f32 %v3953_v3, %v4255_v38 }
0x1f35   :  { %v3955_v35 = vpop.eup %3954 }
0x1f36   :  { %v3957_v8 = vpop.eup %3956  ;;  %v2499_v25 = vmul.f32 %v3955_v35, %v4255_v38  ;;  %v2502_v44 = vadd.f32 %v2498_v39, %v4263_v59 }
0x1f37   :  { %v3959_v6 = vpop.eup %3958  ;;  %v2500_v48 = vmul.f32 %v3957_v8, %v4255_v38 }
0x1f38   :  { %v2503_v19 = vadd.f32 %v2499_v25, %v4263_v59  ;;  %v2501_v36 = vmul.f32 %v3959_v6, %v4255_v38 }
0x1f39   :  { %v2504_v32 = vadd.f32 %v2500_v48, %v4263_v59 }
0x1f3a   :  { %2516 = vrot.lane.b32.xlu1 %v2503_v19, %s4107_s2  ;;  %v2505_v51 = vadd.f32 %v2501_v36, %v4263_v59  ;;  %v2507_v35 = vmul.f32 %v2503_v19, %v4969_v21 }
0x1f3b   :  { %2518 = vrot.lane.b32.xlu0 %v2504_v32, %s4107_s2  ;;  %v2508_v25 = vmul.f32 %v2504_v32, %v4971_v5 }
0x1f3e   :  { %2514 = vrot.lane.b32.xlu1 %v2502_v44, %s4107_s2 }
0x1f3f   :  { %2520 = vrot.lane.b32.xlu0 %v2505_v51, %s4107_s2 }
0x1fac   :  { %v2517_v40 = vpop.permute.xlu1 %2516 }
0x1fad   :  { %v2519_v8 = vpop.permute.xlu0 %2518  ;;  %v2527_v43 = vmul.f32 %v2517_v40, %v2503_v19  ;;  %v2506_v40 = vmul.f32 %v2502_v44, %v4977_v63 }
0x1fae   :  { %v2528_v9 = vmul.f32 %v2519_v8, %v2504_v32  ;;  %v2509_v8 = vmul.f32 %v2505_v51, %v4979_v58 }
0x1faf   :  { %2536 = vrot.lane.b32.xlu1 %v2527_v43, %s4108_s3 }
0x1fb0   :  { %2538 = vrot.lane.b32.xlu0 %v2528_v9, %s4108_s3  ;;  %v2515_v1 = vpop.permute.xlu1 %2514 }
0x1fb1   :  { %v2521_v2 = vpop.permute.xlu0 %2520  ;;  %v2526_v53 = vmul.f32 %v2515_v1, %v2502_v44 }
0x1fb2   :  { %v2529_v3 = vmul.f32 %v2521_v2, %v2505_v51 }
0x1fb3   :  { %2534 = vrot.lane.b32.xlu1 %v2526_v53, %s4108_s3 }
0x1fb4   :  { %2540 = vrot.lane.b32.xlu0 %v2529_v3, %s4108_s3 }
0x2021   :  { %v2537_v6 = vpop.permute.xlu1 %2536 }
0x2022   :  { %v2539_v48 = vpop.permute.xlu0 %2538  ;;  %v5056_v39 = vadd.f32 %v2537_v6, %v2507_v35 }
0x2023   :  { %v5058_v36 = vadd.f32 %v2539_v48, %v2508_v25 }
0x2024   :  { %3960 = vtanh.f32 %v5056_v39 }
0x2025   :  { %3962 = vtanh.f32 %v5058_v36  ;;  %v2535_v43 = vpop.permute.xlu1 %2534 }
0x2026   :  { %v2541_v9 = vpop.permute.xlu0 %2540  ;;  %v5064_v1 = vadd.f32 %v2535_v43, %v2506_v40 }
0x2027   :  { %v5066_v21 = vadd.f32 %v2541_v9, %v2509_v8 }
0x2028   :  { %3964 = vtanh.f32 %v5064_v1 }
0x2029   :  { %3966 = vtanh.f32 %v5066_v21 }
0x2031   :  { %v3961_v5 = vpop.eup %3960 }
0x2032   :  { %v3963_v2 = vpop.eup %3962  ;;  %2560 = vrot.lane.b32.xlu1 %v3961_v5, %s4107_s2 }
0x2033   :  { %2562 = vrot.lane.b32.xlu0 %v3963_v2, %s4107_s2 }
0x2035   :  { %v3965_v63 = vpop.eup %3964 }
0x2036   :  { %v3967_v53 = vpop.eup %3966  ;;  %2558 = vrot.lane.b32.xlu1 %v3965_v63, %s4107_s2 }
0x2037   :  { %2564 = vrot.lane.b32.xlu0 %v3967_v53, %s4107_s2 }
0x20a4   :  { %v2561_v58 = vpop.permute.xlu1 %2560 }
0x20a5   :  { %v2563_v3 = vpop.permute.xlu0 %2562  ;;  %v5074_v35 = vmul.f32 %v2561_v58, %v2503_v19 }
0x20a6   :  { %v5076_v25 = vmul.f32 %v2563_v3, %v2504_v32 }
0x20a7   :  { %5588 = vst [vmem:[#allocation19_spill] sm:$0xff] %v5074_v35  ;;  %v2598_v48 = vrot.slane %v5074_v35, 7 }
0x20a8   :  { %5589 = vst [vmem:[#allocation20_spill] sm:$0xff] %v5076_v25  ;;  %v2559_v6 = vpop.permute.xlu1 %2558  ;;  %v2600_v43 = vrot.slane %v5076_v25, 6 }
0x20a9   :  { %v2565_v40 = vpop.permute.xlu0 %2564  ;;  %v5079_v8 = vmul.f32 %v2559_v6, %v2502_v44  ;;  %v2594_v44 = vld [vmem:[#allocation2 + $0xc] sm:$0x1] }
0x20aa   :  { %v5082_v9 = vmul.f32 %v2565_v40, %v2505_v51  ;;  %v2596_v40 = vld [vmem:[#allocation2 + $0x2c] sm:$0x1] }
0x20ab   :  { %5590 = vst [vmem:[#allocation21_spill] sm:$0xff] %v5079_v8  ;;  %v2599_v5 = vsel %vm396_vm6, %v2598_v48, %v5079_v8  ;;  %v2595_v48 = vld [vmem:[#allocation2 + $0x1c] sm:$0x1] }
0x20ac   :  { %5591 = vst [vmem:[#allocation22_spill] sm:$0xff] %v5082_v9  ;;  %v2602_v2 = vrot.slane %v5082_v9, 5  ;;  %v2601_v19 = vsel %vm399_vm7, %v2600_v43, %v2599_v5  ;;  %v2597_v43 = vld [vmem:[#allocation2 + $0x3c] sm:$0x1] }
0x20ae   :  { %v2603_v32 = vsel %vm402_vm8, %v2602_v2, %v2601_v19 }
0x20af   :  { %2604 = vrot.lane.b32.xlu1 %v2603_v32, %s4108_s3 }
0x2121   :  { %v2605_v63 = vpop.permute.xlu1 %2604 }
0x2122   :  { %3730 = vmatmul.mubr.msk.f32.vlgmr.msra.gmra.mxu0 %vm200_vm9, %v2605_v63 }
0x2123   :  { %3744 = vmatpush3.msra.mxu0 %v5007_v11  ;;  %3751 = vmatprep.mubr.msk.f32.mxu0 %vm4105_vm2, %v5583_v12 }
0x2124   :  { %3745 = vmatprep.subr.mxu0 %v5583_v12 }
0x2125   :  { %3746 = vmatpush3.msra.mxu0 %v5016_v27 }
0x2126   :  { %3747 = vmatprep.subr.mxu0 %v5583_v12 }
0x2127   :  { %3748 = vmatpush3.msra.mxu0 %v5023_v34 }
0x2128   :  { %3749 = vmatprep.subr.mxu0 %v5583_v12 }
0x2129   :  { %3750 = vmatpush3.msra.mxu0 %v5030_v22 }
0x21e2   :  { %v2674_v51 = vpop.f32.mrf.mxu0 }
0x21e3   :  { %v2679_v53 = vrot.slane %v2674_v51, 1  ;;  %v2680_v58 = vrot.slane %v2674_v51, 2  ;;  %v2681_v3 = vrot.slane %v2674_v51, 3  ;;  %v2686_v6 = vadd.f32 %v2674_v51, %v2594_v44 }
0x21e4   :  { %v3731_v5 = vpop.f32.mrf.mxu0 }
0x21e5   :  { %v2687_v2 = vadd.f32 %v2679_v53, %v2595_v48  ;;  %v2688_v19 = vadd.f32 %v2680_v58, %v2596_v40  ;;  %v2689_v32 = vadd.f32 %v2681_v3, %v2597_v43  ;;  %v2690_v63 = vmul.f32 %v2686_v6, %v4255_v38 }
0x21e7   :  { %v2691_v9 = vmul.f32 %v2687_v2, %v4255_v38  ;;  %v2692_v35 = vmul.f32 %v2688_v19, %v4255_v38  ;;  %v2693_v25 = vmul.f32 %v2689_v32, %v4255_v38  ;;  %3968 = vtanh.f32 %v2690_v63 }
0x21e9   :  { %3970 = vtanh.f32 %v2691_v9 }
0x21ea   :  { %3972 = vtanh.f32 %v2692_v35 }
0x21eb   :  { %3974 = vtanh.f32 %v2693_v25 }
0x21f4   :  { %v3969_v44 = vpop.eup %3968 }
0x21f5   :  { %v2698_v6 = vmul.f32 %v3969_v44, %v4255_v38 }
0x21f6   :  { %v3971_v51 = vpop.eup %3970 }
0x21f7   :  { %v3973_v8 = vpop.eup %3972  ;;  %v2699_v5 = vmul.f32 %v3971_v51, %v4255_v38  ;;  %v2702_v35 = vadd.f32 %v2698_v6, %v4263_v59 }
0x21f8   :  { %v3975_v53 = vpop.eup %3974  ;;  %v2700_v58 = vmul.f32 %v3973_v8, %v4255_v38 }
0x21f9   :  { %v2703_v3 = vadd.f32 %v2699_v5, %v4263_v59  ;;  %v2701_v40 = vmul.f32 %v3975_v53, %v4255_v38 }
0x21fa   :  { %v2704_v48 = vadd.f32 %v2700_v58, %v4263_v59 }
0x21fb   :  { %2716 = vrot.lane.b32.xlu0 %v2703_v3, %s4107_s2  ;;  %v2705_v25 = vadd.f32 %v2701_v40, %v4263_v59  ;;  %v2707_v51 = vmul.f32 %v2703_v3, %v5056_v39 }
0x21fc   :  { %2718 = vrot.lane.b32.xlu1 %v2704_v48, %s4107_s2  ;;  %v2708_v5 = vmul.f32 %v2704_v48, %v5058_v36 }
0x21ff   :  { %2714 = vrot.lane.b32.xlu0 %v2702_v35, %s4107_s2 }
0x2200   :  { %2720 = vrot.lane.b32.xlu1 %v2705_v25, %s4107_s2 }
0x226d   :  { %v2717_v8 = vpop.permute.xlu0 %2716 }
0x226e   :  { %v2719_v9 = vpop.permute.xlu1 %2718  ;;  %v2727_v43 = vmul.f32 %v2717_v8, %v2703_v3  ;;  %v2706_v8 = vmul.f32 %v2702_v35, %v5064_v1 }
0x226f   :  { %v2728_v2 = vmul.f32 %v2719_v9, %v2704_v48  ;;  %v2709_v9 = vmul.f32 %v2705_v25, %v5066_v21 }
0x2270   :  { %2736 = vrot.lane.b32.xlu0 %v2727_v43, %s4108_s3 }
0x2271   :  { %2738 = vrot.lane.b32.xlu1 %v2728_v2, %s4108_s3  ;;  %v2715_v19 = vpop.permute.xlu0 %2714 }
0x2272   :  { %v2721_v32 = vpop.permute.xlu1 %2720  ;;  %v2726_v63 = vmul.f32 %v2715_v19, %v2702_v35 }
0x2273   :  { %v2729_v44 = vmul.f32 %v2721_v32, %v2705_v25 }
0x2274   :  { %2734 = vrot.lane.b32.xlu0 %v2726_v63, %s4108_s3 }
0x2275   :  { %2740 = vrot.lane.b32.xlu1 %v2729_v44, %s4108_s3 }
0x22e2   :  { %v2737_v53 = vpop.permute.xlu0 %2736 }
0x22e3   :  { %v2739_v58 = vpop.permute.xlu1 %2738  ;;  %v5122_v6 = vadd.f32 %v2737_v53, %v2707_v51 }
0x22e4   :  { %v5124_v40 = vadd.f32 %v2739_v58, %v2708_v5 }
0x22e5   :  { %3976 = vtanh.f32 %v5122_v6 }
0x22e6   :  { %3978 = vtanh.f32 %v5124_v40  ;;  %v2735_v43 = vpop.permute.xlu0 %2734 }
0x22e7   :  { %v2741_v2 = vpop.permute.xlu1 %2740  ;;  %v5130_v19 = vadd.f32 %v2735_v43, %v2706_v8 }
0x22e8   :  { %v5132_v39 = vadd.f32 %v2741_v2, %v2709_v9 }
0x22e9   :  { %3980 = vtanh.f32 %v5130_v19 }
0x22ea   :  { %3982 = vtanh.f32 %v5132_v39 }
0x22f2   :  { %v3977_v36 = vpop.eup %3976 }
0x22f3   :  { %v3979_v32 = vpop.eup %3978  ;;  %2760 = vrot.lane.b32.xlu0 %v3977_v36, %s4107_s2 }
0x22f4   :  { %2762 = vrot.lane.b32.xlu1 %v3979_v32, %s4107_s2 }
0x22f6   :  { %v3981_v1 = vpop.eup %3980 }
0x22f7   :  { %v3983_v63 = vpop.eup %3982  ;;  %2758 = vrot.lane.b32.xlu0 %v3981_v1, %s4107_s2 }
0x22f8   :  { %2764 = vrot.lane.b32.xlu1 %v3983_v63, %s4107_s2 }
0x2365   :  { %v2761_v21 = vpop.permute.xlu0 %2760 }
0x2366   :  { %v2763_v44 = vpop.permute.xlu1 %2762  ;;  %v5140_v51 = vmul.f32 %v2761_v21, %v2703_v3 }
0x2367   :  { %v5142_v5 = vmul.f32 %v2763_v44, %v2704_v48 }
0x2368   :  { %v2798_v58 = vrot.slane %v5140_v51, 7 }
0x2369   :  { %v2759_v53 = vpop.permute.xlu0 %2758  ;;  %v2800_v43 = vrot.slane %v5142_v5, 6 }
0x236a   :  { %v2765_v8 = vpop.permute.xlu1 %2764  ;;  %v5145_v9 = vmul.f32 %v2759_v53, %v2702_v35  ;;  %v2794_v35 = vld [vmem:[#allocation2 + $0xd] sm:$0x1]  ;;  %v2795_v53 = vld [vmem:[#allocation2 + $0x1d] sm:$0x1] }
0x236b   :  { %v5148_v2 = vmul.f32 %v2765_v8, %v2705_v25  ;;  %v2797_v8 = vld [vmem:[#allocation2 + $0x3d] sm:$0x1] }
0x236c   :  { %v2799_v36 = vsel %vm396_vm6, %v2798_v58, %v5145_v9  ;;  %v2796_v58 = vld [vmem:[#allocation2 + $0x2d] sm:$0x1] }
0x236d   :  { %v2802_v32 = vrot.slane %v5148_v2, 5  ;;  %v2801_v3 = vsel %vm399_vm7, %v2800_v43, %v2799_v36 }
0x236f   :  { %v2803_v48 = vsel %vm402_vm8, %v2802_v32, %v2801_v3 }
0x2370   :  { %2804 = vrot.lane.b32.xlu0 %v2803_v48, %s4108_s3 }
0x23e2   :  { %v2805_v1 = vpop.permute.xlu0 %2804 }
0x23e3   :  { %3741 = vmatmul.mubr.msk.f32.vlgmr.msra.gmra.mxu1 %vm200_vm9, %v2805_v1 }
0x23e4   :  { %3755 = vmatpush3.msra.mxu1 %v5007_v11  ;;  %3762 = vmatprep.mubr.msk.f32.mxu1 %vm4105_vm2, %v5583_v12 }
0x23e5   :  { %3756 = vmatprep.subr.mxu1 %v5583_v12 }
0x23e6   :  { %3757 = vmatpush3.msra.mxu1 %v5016_v27 }
0x23e7   :  { %3758 = vmatprep.subr.mxu1 %v5583_v12 }
0x23e8   :  { %3759 = vmatpush3.msra.mxu1 %v5023_v34 }
0x23e9   :  { %3760 = vmatprep.subr.mxu1 %v5583_v12 }
0x23ea   :  { %3761 = vmatpush3.msra.mxu1 %v5030_v22 }
0x24a3   :  { %v2874_v25 = vpop.f32.mrf.mxu1 }
0x24a4   :  { %v2879_v63 = vrot.slane %v2874_v25, 1  ;;  %v2880_v21 = vrot.slane %v2874_v25, 2  ;;  %v2881_v11 = vrot.slane %v2874_v25, 3  ;;  %v2886_v44 = vadd.f32 %v2874_v25, %v2794_v35 }
0x24a5   :  { %v3742_v43 = vpop.f32.mrf.mxu1 }
0x24a6   :  { %v2887_v36 = vadd.f32 %v2879_v63, %v2795_v53  ;;  %v2888_v27 = vadd.f32 %v2880_v21, %v2796_v58  ;;  %v2889_v32 = vadd.f32 %v2881_v11, %v2797_v8  ;;  %v2890_v3 = vmul.f32 %v2886_v44, %v4255_v38 }
0x24a8   :  { %v2891_v34 = vmul.f32 %v2887_v36, %v4255_v38  ;;  %v2892_v12 = vmul.f32 %v2888_v27, %v4255_v38  ;;  %v2893_v22 = vmul.f32 %v2889_v32, %v4255_v38  ;;  %3984 = vtanh.f32 %v2890_v3 }
0x24aa   :  { %3986 = vtanh.f32 %v2891_v34 }
0x24ab   :  { %3988 = vtanh.f32 %v2892_v12 }
0x24ac   :  { %3990 = vtanh.f32 %v2893_v22 }
0x24b5   :  { %v3985_v48 = vpop.eup %3984 }
0x24b6   :  { %v2898_v44 = vmul.f32 %v3985_v48, %v4255_v38 }
0x24b7   :  { %v3987_v1 = vpop.eup %3986 }
0x24b8   :  { %v3989_v35 = vpop.eup %3988  ;;  %v2899_v25 = vmul.f32 %v3987_v1, %v4255_v38  ;;  %v2902_v8 = vadd.f32 %v2898_v44, %v4263_v59 }
0x24b9   :  { %v3991_v63 = vpop.eup %3990  ;;  %v2900_v21 = vmul.f32 %v3989_v35, %v4255_v38 }
0x24ba   :  { %v2903_v11 = vadd.f32 %v2899_v25, %v4263_v59  ;;  %v2901_v58 = vmul.f32 %v3991_v63, %v4255_v38 }
0x24bb   :  { %v2904_v53 = vadd.f32 %v2900_v21, %v4263_v59 }
0x24bc   :  { %2916 = vrot.lane.b32.xlu1 %v2903_v11, %s4107_s2  ;;  %v2905_v43 = vadd.f32 %v2901_v58, %v4263_v59  ;;  %v2907_v1 = vmul.f32 %v2903_v11, %v5122_v6  ;;  %v2906_v58 = vmul.f32 %v2902_v8, %v5130_v19 }
0x24bd   :  { %2918 = vrot.lane.b32.xlu0 %v2904_v53, %s4107_s2  ;;  %v2908_v35 = vmul.f32 %v2904_v53, %v5124_v40 }
0x24c0   :  { %2914 = vrot.lane.b32.xlu1 %v2902_v8, %s4107_s2 }
0x24c1   :  { %2920 = vrot.lane.b32.xlu0 %v2905_v43, %s4107_s2 }
0x252e   :  { %v2917_v36 = vpop.permute.xlu1 %2916 }
0x252f   :  { %v2919_v27 = vpop.permute.xlu0 %2918  ;;  %v2927_v32 = vmul.f32 %v2917_v36, %v2903_v11  ;;  %v2909_v36 = vmul.f32 %v2905_v43, %v5132_v39 }
0x2530   :  { %v2928_v3 = vmul.f32 %v2919_v27, %v2904_v53 }
0x2531   :  { %2936 = vrot.lane.b32.xlu1 %v2927_v32, %s4108_s3 }
0x2532   :  { %2938 = vrot.lane.b32.xlu0 %v2928_v3, %s4108_s3  ;;  %v2915_v34 = vpop.permute.xlu1 %2914 }
0x2533   :  { %v2921_v12 = vpop.permute.xlu0 %2920  ;;  %v2926_v22 = vmul.f32 %v2915_v34, %v2902_v8 }
0x2534   :  { %v2929_v48 = vmul.f32 %v2921_v12, %v2905_v43 }
0x2535   :  { %2934 = vrot.lane.b32.xlu1 %v2926_v22, %s4108_s3 }
0x2536   :  { %2940 = vrot.lane.b32.xlu0 %v2929_v48, %s4108_s3 }
0x25a3   :  { %v2937_v25 = vpop.permute.xlu1 %2936 }
0x25a4   :  { %v2939_v63 = vpop.permute.xlu0 %2938  ;;  %v5188_v21 = vadd.f32 %v2937_v25, %v2907_v1 }
0x25a5   :  { %v5190_v44 = vadd.f32 %v2939_v63, %v2908_v35 }
0x25a6   :  { %3992 = vtanh.f32 %v5188_v21 }
0x25a7   :  { %3994 = vtanh.f32 %v5190_v44  ;;  %v2935_v27 = vpop.permute.xlu1 %2934 }
0x25a8   :  { %v2941_v32 = vpop.permute.xlu0 %2940  ;;  %v5196_v3 = vadd.f32 %v2935_v27, %v2906_v58 }
0x25a9   :  { %v5198_v6 = vadd.f32 %v2941_v32, %v2909_v36 }
0x25aa   :  { %3996 = vtanh.f32 %v5196_v3 }
0x25ab   :  { %3998 = vtanh.f32 %v5198_v6 }
0x25b3   :  { %v3993_v40 = vpop.eup %3992 }
0x25b4   :  { %v3995_v34 = vpop.eup %3994  ;;  %2960 = vrot.lane.b32.xlu1 %v3993_v40, %s4107_s2 }
0x25b5   :  { %2962 = vrot.lane.b32.xlu0 %v3995_v34, %s4107_s2 }
0x25b7   :  { %v3997_v19 = vpop.eup %3996 }
0x25b8   :  { %v3999_v12 = vpop.eup %3998  ;;  %2958 = vrot.lane.b32.xlu1 %v3997_v19, %s4107_s2 }
0x25b9   :  { %2964 = vrot.lane.b32.xlu0 %v3999_v12, %s4107_s2 }
0x2626   :  { %v2961_v39 = vpop.permute.xlu1 %2960 }
0x2627   :  { %v2963_v22 = vpop.permute.xlu0 %2962  ;;  %v5206_v48 = vmul.f32 %v2961_v39, %v2903_v11 }
0x2628   :  { %v5208_v1 = vmul.f32 %v2963_v22, %v2904_v53 }
0x2629   :  { %5592 = vst [vmem:[#allocation23_spill] sm:$0xff] %v5206_v48  ;;  %v2998_v25 = vrot.slane %v5206_v48, 7 }
0x262a   :  { %5593 = vst [vmem:[#allocation24_spill] sm:$0xff] %v5208_v1  ;;  %v2959_v35 = vpop.permute.xlu1 %2958  ;;  %v3000_v36 = vrot.slane %v5208_v1, 6 }
0x262b   :  { %v2965_v63 = vpop.permute.xlu0 %2964  ;;  %v5211_v58 = vmul.f32 %v2959_v35, %v2902_v8  ;;  %v2994_v8 = vld [vmem:[#allocation2 + $0xe] sm:$0x1]  ;;  %v2995_v35 = vld [vmem:[#allocation2 + $0x1e] sm:$0x1] }
0x262c   :  { %v5214_v27 = vmul.f32 %v2965_v63, %v2905_v43  ;;  %v2996_v63 = vld [vmem:[#allocation2 + $0x2e] sm:$0x1] }
0x262d   :  { %v2999_v32 = vsel %vm396_vm6, %v2998_v25, %v5211_v58  ;;  %v2997_v25 = vld [vmem:[#allocation2 + $0x3e] sm:$0x1] }
0x262e   :  { %5594 = vst [vmem:[#allocation25_spill] sm:$0xff] %v5214_v27  ;;  %v3002_v40 = vrot.slane %v5214_v27, 5  ;;  %v3001_v11 = vsel %vm399_vm7, %v3000_v36, %v2999_v32 }
0x2630   :  { %v3003_v53 = vsel %vm402_vm8, %v3002_v40, %v3001_v11 }
0x2631   :  { %3004 = vrot.lane.b32.xlu1 %v3003_v53, %s4108_s3 }
0x26a3   :  { %v3005_v34 = vpop.permute.xlu1 %3004 }
0x26a4   :  { %3752 = vmatmul.mubr.msk.f32.vlgmr.msra.gmra.mxu0 %vm200_vm9, %v3005_v34 }
0x2764   :  { %v3074_v19 = vpop.f32.mrf.mxu0 }
0x2765   :  { %v3079_v12 = vrot.slane %v3074_v19, 1  ;;  %v3080_v39 = vrot.slane %v3074_v19, 2  ;;  %v3081_v43 = vrot.slane %v3074_v19, 3  ;;  %v3086_v22 = vadd.f32 %v3074_v19, %v2994_v8 }
0x2766   :  { %v3753_v48 = vpop.f32.mrf.mxu0 }
0x2767   :  { %v3087_v27 = vadd.f32 %v3079_v12, %v2995_v35  ;;  %v3088_v1 = vadd.f32 %v3080_v39, %v2996_v63  ;;  %v3089_v36 = vadd.f32 %v3081_v43, %v2997_v25  ;;  %v3090_v32 = vmul.f32 %v3086_v22, %v4255_v38 }
0x2769   :  { %v3091_v40 = vmul.f32 %v3087_v27, %v4255_v38  ;;  %v3092_v11 = vmul.f32 %v3088_v1, %v4255_v38  ;;  %v3093_v53 = vmul.f32 %v3089_v36, %v4255_v38  ;;  %4000 = vtanh.f32 %v3090_v32 }
0x276b   :  { %4002 = vtanh.f32 %v3091_v40 }
0x276c   :  { %4004 = vtanh.f32 %v3092_v11 }
0x276d   :  { %4006 = vtanh.f32 %v3093_v53 }
0x2776   :  { %v4001_v34 = vpop.eup %4000 }
0x2777   :  { %v3098_v27 = vmul.f32 %v4001_v34, %v4255_v38 }
0x2778   :  { %v4003_v8 = vpop.eup %4002 }
0x2779   :  { %v4005_v19 = vpop.eup %4004  ;;  %v3099_v48 = vmul.f32 %v4003_v8, %v4255_v38  ;;  %v3102_v35 = vadd.f32 %v3098_v27, %v4263_v59 }
0x277a   :  { %v4007_v12 = vpop.eup %4006  ;;  %v3100_v39 = vmul.f32 %v4005_v19, %v4255_v38 }
0x277b   :  { %v3103_v43 = vadd.f32 %v3099_v48, %v4263_v59  ;;  %v3101_v22 = vmul.f32 %v4007_v12, %v4255_v38 }
0x277c   :  { %v3104_v1 = vadd.f32 %v3100_v39, %v4263_v59 }
0x277d   :  { %3116 = vrot.lane.b32.xlu0 %v3103_v43, %s4107_s2  ;;  %v3105_v63 = vadd.f32 %v3101_v22, %v4263_v59  ;;  %v3107_v19 = vmul.f32 %v3103_v43, %v5188_v21 }
0x277e   :  { %3118 = vrot.lane.b32.xlu1 %v3104_v1, %s4107_s2  ;;  %v3108_v48 = vmul.f32 %v3104_v1, %v5190_v44 }
0x2781   :  { %3114 = vrot.lane.b32.xlu0 %v3102_v35, %s4107_s2 }
0x2782   :  { %3120 = vrot.lane.b32.xlu1 %v3105_v63, %s4107_s2 }
0x27ef   :  { %v3117_v25 = vpop.permute.xlu0 %3116 }
0x27f0   :  { %v3119_v36 = vpop.permute.xlu1 %3118  ;;  %v3127_v32 = vmul.f32 %v3117_v25, %v3103_v43  ;;  %v3106_v25 = vmul.f32 %v3102_v35, %v5196_v3 }
0x27f1   :  { %v3128_v40 = vmul.f32 %v3119_v36, %v3104_v1  ;;  %v3109_v36 = vmul.f32 %v3105_v63, %v5198_v6 }
0x27f2   :  { %3136 = vrot.lane.b32.xlu0 %v3127_v32, %s4108_s3 }
0x27f3   :  { %3138 = vrot.lane.b32.xlu1 %v3128_v40, %s4108_s3  ;;  %v3115_v11 = vpop.permute.xlu0 %3114 }
0x27f4   :  { %v3121_v53 = vpop.permute.xlu1 %3120  ;;  %v3126_v34 = vmul.f32 %v3115_v11, %v3102_v35 }
0x27f5   :  { %v3129_v8 = vmul.f32 %v3121_v53, %v3105_v63 }
0x27f6   :  { %3134 = vrot.lane.b32.xlu0 %v3126_v34, %s4108_s3 }
0x27f7   :  { %3140 = vrot.lane.b32.xlu1 %v3129_v8, %s4108_s3 }
0x2864   :  { %v3137_v12 = vpop.permute.xlu0 %3136 }
0x2865   :  { %v3139_v39 = vpop.permute.xlu1 %3138  ;;  %v5245_v27 = vadd.f32 %v3137_v12, %v3107_v19 }
0x2866   :  { %v5247_v22 = vadd.f32 %v3139_v39, %v3108_v48 }
0x2867   :  { %4008 = vtanh.f32 %v5245_v27 }
0x2868   :  { %4010 = vtanh.f32 %v5247_v22  ;;  %v3135_v32 = vpop.permute.xlu0 %3134 }
0x2869   :  { %v3141_v40 = vpop.permute.xlu1 %3140  ;;  %v5253_v11 = vadd.f32 %v3135_v32, %v3106_v25 }
0x286a   :  { %v5255_v21 = vadd.f32 %v3141_v40, %v3109_v36 }
0x286b   :  { %4012 = vtanh.f32 %v5253_v11 }
0x286c   :  { %4014 = vtanh.f32 %v5255_v21 }
0x2874   :  { %v4009_v44 = vpop.eup %4008 }
0x2875   :  { %v4011_v53 = vpop.eup %4010  ;;  %3160 = vrot.lane.b32.xlu0 %v4009_v44, %s4107_s2 }
0x2876   :  { %3162 = vrot.lane.b32.xlu1 %v4011_v53, %s4107_s2 }
0x2878   :  { %v4013_v3 = vpop.eup %4012 }
0x2879   :  { %v4015_v34 = vpop.eup %4014  ;;  %3158 = vrot.lane.b32.xlu0 %v4013_v3, %s4107_s2 }
0x287a   :  { %3164 = vrot.lane.b32.xlu1 %v4015_v34, %s4107_s2 }
0x28e7   :  { %v3161_v6 = vpop.permute.xlu0 %3160 }
0x28e8   :  { %v3163_v8 = vpop.permute.xlu1 %3162  ;;  %v5263_v19 = vmul.f32 %v3161_v6, %v3103_v43 }
0x28e9   :  { %v5265_v48 = vmul.f32 %v3163_v8, %v3104_v1 }
0x28ea   :  { %5595 = vst [vmem:[#allocation26_spill] sm:$0xff] %v5263_v19  ;;  %v3198_v39 = vrot.slane %v5263_v19, 7  ;;  %v3196_v19 = vld [vmem:[#allocation2 + $0x2f] sm:$0x1] }
0x28eb   :  { %5596 = vst [vmem:[#allocation27_spill] sm:$0xff] %v5265_v48  ;;  %v3159_v12 = vpop.permute.xlu0 %3158  ;;  %v3200_v32 = vrot.slane %v5265_v48, 6 }
0x28ec   :  { %v3165_v25 = vpop.permute.xlu1 %3164  ;;  %v5268_v36 = vmul.f32 %v3159_v12, %v3102_v35  ;;  %v3194_v35 = vld [vmem:[#allocation2 + $0xf] sm:$0x1] }
0x28ed   :  { %v5271_v40 = vmul.f32 %v3165_v25, %v3105_v63  ;;  %v3195_v25 = vld [vmem:[#allocation2 + $0x1f] sm:$0x1] }
0x28ee   :  { %5597 = vst [vmem:[#allocation28_spill] sm:$0xff] %v5268_v36  ;;  %v3199_v44 = vsel %vm396_vm6, %v3198_v39, %v5268_v36  ;;  %v3197_v39 = vld [vmem:[#allocation2 + $0x3f] sm:$0x1] }
0x28ef   :  { %5598 = vst [vmem:[#allocation29_spill] sm:$0xff] %v5271_v40  ;;  %v3202_v53 = vrot.slane %v5271_v40, 5  ;;  %v3201_v43 = vsel %vm399_vm7, %v3200_v32, %v3199_v44 }
0x28f1   :  { %v3203_v1 = vsel %vm402_vm8, %v3202_v53, %v3201_v43 }
0x28f2   :  { %3204 = vrot.lane.b32.xlu0 %v3203_v1, %s4108_s3 }
0x2964   :  { %v3205_v3 = vpop.permute.xlu0 %3204 }
0x2965   :  { %3763 = vmatmul.mubr.msk.f32.vlgmr.msra.gmra.mxu1 %vm200_vm9, %v3205_v3 }
0x2a25   :  { %v3274_v34 = vpop.f32.mrf.mxu1 }
0x2a26   :  { %v3279_v6 = vrot.slane %v3274_v34, 1  ;;  %v3280_v8 = vrot.slane %v3274_v34, 2  ;;  %v3281_v63 = vrot.slane %v3274_v34, 3  ;;  %v3286_v12 = vadd.f32 %v3274_v34, %v3194_v35 }
0x2a27   :  { %v3764_v48 = vpop.f32.mrf.mxu1 }
0x2a28   :  { %v3287_v40 = vadd.f32 %v3279_v6, %v3195_v25  ;;  %v3288_v36 = vadd.f32 %v3280_v8, %v3196_v19  ;;  %v3289_v32 = vadd.f32 %v3281_v63, %v3197_v39  ;;  %v3290_v44 = vmul.f32 %v3286_v12, %v4255_v38 }
0x2a2a   :  { %v3291_v53 = vmul.f32 %v3287_v40, %v4255_v38  ;;  %v3292_v43 = vmul.f32 %v3288_v36, %v4255_v38  ;;  %v3293_v1 = vmul.f32 %v3289_v32, %v4255_v38  ;;  %4016 = vtanh.f32 %v3290_v44 }
0x2a2c   :  { %4018 = vtanh.f32 %v3291_v53 }
0x2a2d   :  { %4020 = vtanh.f32 %v3292_v43 }
0x2a2e   :  { %4022 = vtanh.f32 %v3293_v1 }
0x2a37   :  { %v4017_v3 = vpop.eup %4016 }
0x2a38   :  { %v3298_v40 = vmul.f32 %v4017_v3, %v4255_v38 }
0x2a39   :  { %v4019_v35 = vpop.eup %4018 }
0x2a3a   :  { %v4021_v34 = vpop.eup %4020  ;;  %v3299_v48 = vmul.f32 %v4019_v35, %v4255_v38  ;;  %v5299_v12 = vadd.f32 %v3298_v40, %v4263_v59  ;;  %v5605_v40 = vld [vmem:[#allocation16_spill] sm:$0xff] }
0x2a3b   :  { %v4023_v6 = vpop.eup %4022  ;;  %v3300_v19 = vmul.f32 %v4021_v34, %v4255_v38  ;;  %v5603_v34 = vld [vmem:[#allocation17_spill] sm:$0xff] }
0x2a3c   :  { %v5287_v8 = vadd.f32 %v3299_v48, %v4263_v59  ;;  %v3301_v63 = vmul.f32 %v4023_v6, %v4255_v38 }
0x2a3d   :  { %v5291_v36 = vadd.f32 %v3300_v19, %v4263_v59  ;;  %v5604_v19 = vld [vmem:[#allocation14_spill] sm:$0xff] }
0x2a3e   :  { %3316 = vrot.lane.b32.xlu1 %v5287_v8, %s4107_s2  ;;  %v5302_v25 = vadd.f32 %v3301_v63, %v4263_v59 }
0x2a3f   :  { %3318 = vrot.lane.b32.xlu0 %v5291_v36, %s4107_s2 }
0x2a42   :  { %3314 = vrot.lane.b32.xlu1 %v5299_v12, %s4107_s2 }
0x2a43   :  { %3320 = vrot.lane.b32.xlu0 %v5302_v25, %s4107_s2 }
0x2ab0   :  { %v3317_v39 = vpop.permute.xlu1 %3316 }
0x2ab1   :  { %v3319_v38 = vpop.permute.xlu0 %3318  ;;  %v3327_v59 = vmul.f32 %v3317_v39, %v5287_v8 }
0x2ab2   :  { %v3328_v32 = vmul.f32 %v3319_v38, %v5291_v36  ;;  %v5606_v38 = vld [vmem:[#allocation15_spill] sm:$0xff] }
0x2ab4   :  { %3338 = vrot.lane.b32.xlu0 %v3328_v32, %s4108_s3  ;;  %v3315_v44 = vpop.permute.xlu1 %3314  ;;  %v5607_v32 = vld [vmem:[#allocation21_spill] sm:$0xff] }
0x2ab5   :  { %v3321_v53 = vpop.permute.xlu0 %3320  ;;  %v3326_v43 = vmul.f32 %v3315_v44, %v5299_v12 }
0x2ab6   :  { %v3329_v1 = vmul.f32 %v3321_v53, %v5302_v25 }
0x2ab7   :  { %3334 = vrot.lane.b32.xlu1 %v3326_v43, %s4108_s3  ;;  %v5608_v43 = vld [vmem:[#allocation18_spill] sm:$0xff] }
0x2ab8   :  { %3340 = vrot.lane.b32.xlu0 %v3329_v1, %s4108_s3  ;;  %v5609_v1 = vld [vmem:[#allocation20_spill] sm:$0xff] }
0x2abb   :  { %3336 = vrot.lane.b32.xlu1 %v3327_v59, %s4108_s3 }
0x2abc   :  { %376 = vrot.lane.b32.xlu0 %v4297_v37, %s4108_s3  ;;  %v3308_v37 = vmul.f32 %v5291_v36, %v5247_v22 }
0x2abf   :  { %374 = vrot.lane.b32.xlu1 %v4301_v42, %s4108_s3 }
0x2ac0   :  { %380 = vrot.lane.b32.xlu0 %v4305_v46, %s4108_s3  ;;  %v3306_v46 = vmul.f32 %v5299_v12, %v5253_v11 }
0x2ac3   :  { %378 = vrot.lane.b32.xlu1 %v4299_v41, %s4108_s3 }
0x2ac4   :  { %580 = vrot.lane.b32.xlu0 %v4364_v54, %s4108_s3  ;;  %v3309_v54 = vmul.f32 %v5302_v25, %v5255_v21  ;;  %v5600_v21 = vld [vmem:[#allocation10_spill] sm:$0xff] }
0x2ac7   :  { %578 = vrot.lane.b32.xlu1 %v4369_v60, %s4108_s3 }
0x2ac8   :  { %584 = vrot.lane.b32.xlu0 %v4372_v62, %s4108_s3 }
0x2acb   :  { %582 = vrot.lane.b32.xlu1 %v4366_v55, %s4108_s3 }
0x2acc   :  { %780 = vrot.lane.b32.xlu0 %v4431_v15, %s4108_s3 }
0x2acf   :  { %778 = vrot.lane.b32.xlu1 %v4436_v20, %s4108_s3 }
0x2ad0   :  { %784 = vrot.lane.b32.xlu0 %v4439_v23, %s4108_s3 }
0x2ad3   :  { %782 = vrot.lane.b32.xlu1 %v4433_v16, %s4108_s3  ;;  %v3307_v16 = vmul.f32 %v5287_v8, %v5245_v27  ;;  %v5599_v27 = vld [vmem:[#allocation13_spill] sm:$0xff] }
0x2ad4   :  { %980 = vrot.lane.b32.xlu0 %v4498_v49, %s4108_s3 }
0x2ad7   :  { %978 = vrot.lane.b32.xlu1 %v4503_v31, %s4108_s3 }
0x2ad8   :  { %984 = vrot.lane.b32.xlu0 %v4506_v56, %s4108_s3 }
0x2adb   :  { %982 = vrot.lane.b32.xlu1 %v4500_v28, %s4108_s3 }
0x2adc   :  { %1180 = vrot.lane.b32.xlu0 %v4565_v14, %s4108_s3 }
0x2adf   :  { %1178 = vrot.lane.b32.xlu1 %v4570_v10, %s4108_s3 }
0x2ae0   :  { %1184 = vrot.lane.b32.xlu0 %v4573_v24, %s4108_s3 }
0x2ae3   :  { %1182 = vrot.lane.b32.xlu1 %v4567_v17, %s4108_s3 }
0x2ae4   :  { %1380 = vrot.lane.b32.xlu0 %v4652_v33, %s4108_s3 }
0x2ae7   :  { %1378 = vrot.lane.b32.xlu1 %v4657_v18, %s4108_s3 }
0x2ae8   :  { %1384 = vrot.lane.b32.xlu0 %v4660_v26, %s4108_s3 }
0x2aeb   :  { %1382 = vrot.lane.b32.xlu1 %v4654_v13, %s4108_s3 }
0x2aec   :  { %1580 = vrot.lane.b32.xlu0 %v4719_v0, %s4108_s3 }
0x2aef   :  { %1578 = vrot.lane.b32.xlu1 %v4724_v45, %s4108_s3 }
0x2af0   :  { %1584 = vrot.lane.b32.xlu0 %v4727_v47, %s4108_s3 }
0x2af3   :  { %1582 = vrot.lane.b32.xlu1 %v4721_v29, %s4108_s3 }
0x2af4   :  { %1780 = vrot.lane.b32.xlu0 %v4786_v61, %s4108_s3 }
0x2af7   :  { %1778 = vrot.lane.b32.xlu1 %v4791_v57, %s4108_s3 }
0x2af8   :  { %1784 = vrot.lane.b32.xlu0 %v4794_v4, %s4108_s3 }
0x2afb   :  { %1782 = vrot.lane.b32.xlu1 %v4788_v7, %s4108_s3 }
0x2afc   :  { %1980 = vrot.lane.b32.xlu0 %v4853_v50, %s4108_s3 }
0x2b26   :  { %v3339_v41 = vpop.permute.xlu0 %3338 }
0x2b27   :  { %v3348_v42 = vadd.f32 %v3339_v41, %v3308_v37  ;;  %v5610_v41 = vld [vmem:[#allocation19_spill] sm:$0xff] }
0x2b29   :  { %4024 = vtanh.f32 %v3348_v42  ;;  %v3335_v55 = vpop.permute.xlu1 %3334  ;;  %v3411_v31 = vrot.slane %v3348_v42, 6 }
0x2b2a   :  { %v3341_v60 = vpop.permute.xlu0 %3340  ;;  %v3346_v62 = vadd.f32 %v3335_v55, %v3306_v46 }
0x2b2b   :  { %v3349_v15 = vadd.f32 %v3341_v60, %v3309_v54  ;;  %v5611_v54 = vld [vmem:[#allocation22_spill] sm:$0xff] }
0x2b2c   :  { %4026 = vtanh.f32 %v3346_v62 }
0x2b2d   :  { %4028 = vtanh.f32 %v3349_v15  ;;  %v3337_v20 = vpop.permute.xlu1 %3336  ;;  %v3413_v14 = vrot.slane %v3349_v15, 5 }
0x2b2e   :  { %v377_v23 = vpop.permute.xlu0 %376  ;;  %v3347_v49 = vadd.f32 %v3337_v20, %v3307_v16 }
0x2b2f   :  { %388 = vst.msk [vmem:[#allocation3 + $0x10] sm:$0x1] %vm386_vm10, %v377_v23 }
0x2b30   :  { %4030 = vtanh.f32 %v3347_v49  ;;  %v3409_v28 = vrot.slane %v3347_v49, 7  ;;  %v5616_v49 = vld [vmem:[#allocation27_spill] sm:$0xff] }
0x2b31   :  { %v375_v56 = vpop.permute.xlu1 %374 }
0x2b32   :  { %v3410_v17 = vsel %vm396_vm6, %v3409_v28, %v3346_v62  ;;  %v381_v10 = vpop.permute.xlu0 %380  ;;  %387 = vst.msk [vmem:[#allocation3] sm:$0x1] %vm386_vm10, %v375_v56  ;;  %v5617_v28 = vld [vmem:[#allocation26_spill] sm:$0xff] }
0x2b33   :  { %390 = vst.msk [vmem:[#allocation3 + $0x30] sm:$0x1] %vm386_vm10, %v381_v10  ;;  %v3412_v24 = vsel %vm399_vm7, %v3411_v31, %v3410_v17  ;;  %v5618_v31 = vld [vmem:[#allocation29_spill] sm:$0xff] }
0x2b34   :  { %v5396_v33 = vsel %vm402_vm8, %v3413_v14, %v3412_v24 }
0x2b35   :  { %v379_v13 = vpop.permute.xlu1 %378 }
0x2b36   :  { %v4025_v18 = vpop.eup %4024  ;;  %v581_v26 = vpop.permute.xlu0 %580  ;;  %389 = vst.msk [vmem:[#allocation3 + $0x20] sm:$0x1] %vm386_vm10, %v379_v13 }
0x2b37   :  { %591 = vst.msk [vmem:[#allocation3 + $0x11] sm:$0x1] %vm386_vm10, %v581_v26  ;;  %3362 = vrot.lane.b32.xlu0 %v4025_v18, %s4107_s2 }
0x2b39   :  { %v4027_v0 = vpop.eup %4026  ;;  %v579_v29 = vpop.permute.xlu1 %578 }
0x2b3a   :  { %v4029_v45 = vpop.eup %4028  ;;  %v585_v47 = vpop.permute.xlu0 %584  ;;  %590 = vst.msk [vmem:[#allocation3 + $0x1] sm:$0x1] %vm386_vm10, %v579_v29  ;;  %3358 = vrot.lane.b32.xlu1 %v4027_v0, %s4107_s2 }
0x2b3b   :  { %593 = vst.msk [vmem:[#allocation3 + $0x31] sm:$0x1] %vm386_vm10, %v585_v47  ;;  %3364 = vrot.lane.b32.xlu0 %v4029_v45, %s4107_s2 }
0x2b3d   :  { %v4031_v61 = vpop.eup %4030  ;;  %v583_v7 = vpop.permute.xlu1 %582 }
0x2b3e   :  { %v781_v57 = vpop.permute.xlu0 %780  ;;  %592 = vst.msk [vmem:[#allocation3 + $0x21] sm:$0x1] %vm386_vm10, %v583_v7  ;;  %3360 = vrot.lane.b32.xlu1 %v4031_v61, %s4107_s2 }
0x2b3f   :  { %791 = vst.msk [vmem:[#allocation3 + $0x12] sm:$0x1] %vm386_vm10, %v781_v57  ;;  %1984 = vrot.lane.b32.xlu0 %v4861_v52, %s4108_s3  ;;  %v5601_v52 = vld [vmem:[#allocation12_spill] sm:$0xff] }
0x2b41   :  { %v779_v4 = vpop.permute.xlu1 %778 }
0x2b42   :  { %v785_v50 = vpop.permute.xlu0 %784  ;;  %790 = vst.msk [vmem:[#allocation3 + $0x2] sm:$0x1] %vm386_vm10, %v779_v4  ;;  %1978 = vrot.lane.b32.xlu1 %v4858_v30, %s4108_s3  ;;  %v5602_v30 = vld [vmem:[#allocation11_spill] sm:$0xff] }
0x2b43   :  { %793 = vst.msk [vmem:[#allocation3 + $0x32] sm:$0x1] %vm386_vm10, %v785_v50  ;;  %2178 = vrot.lane.b32.xlu0 %v5599_v27, %s4108_s3 }
0x2b45   :  { %v783_v22 = vpop.permute.xlu1 %782 }
0x2b46   :  { %v981_v11 = vpop.permute.xlu0 %980  ;;  %792 = vst.msk [vmem:[#allocation3 + $0x22] sm:$0x1] %vm386_vm10, %v783_v22  ;;  %1982 = vrot.lane.b32.xlu1 %v5600_v21, %s4108_s3 }
0x2b47   :  { %991 = vst.msk [vmem:[#allocation3 + $0x13] sm:$0x1] %vm386_vm10, %v981_v11  ;;  %2182 = vrot.lane.b32.xlu0 %v5601_v52, %s4108_s3 }
0x2b49   :  { %v979_v3 = vpop.permute.xlu1 %978 }
0x2b4a   :  { %v985_v35 = vpop.permute.xlu0 %984  ;;  %990 = vst.msk [vmem:[#allocation3 + $0x3] sm:$0x1] %vm386_vm10, %v979_v3  ;;  %2180 = vrot.lane.b32.xlu1 %v5602_v30, %s4108_s3 }
0x2b4b   :  { %993 = vst.msk [vmem:[#allocation3 + $0x33] sm:$0x1] %vm386_vm10, %v985_v35  ;;  %2378 = vrot.lane.b32.xlu0 %v5603_v34, %s4108_s3 }
0x2b4d   :  { %v983_v48 = vpop.permute.xlu1 %982 }
0x2b4e   :  { %v1181_v6 = vpop.permute.xlu0 %1180  ;;  %992 = vst.msk [vmem:[#allocation3 + $0x23] sm:$0x1] %vm386_vm10, %v983_v48  ;;  %2184 = vrot.lane.b32.xlu1 %v5604_v19, %s4108_s3 }
0x2b4f   :  { %1191 = vst.msk [vmem:[#allocation3 + $0x14] sm:$0x1] %vm386_vm10, %v1181_v6  ;;  %2382 = vrot.lane.b32.xlu0 %v5605_v40, %s4108_s3 }
0x2b51   :  { %v1179_v63 = vpop.permute.xlu1 %1178 }
0x2b52   :  { %v1185_v39 = vpop.permute.xlu0 %1184  ;;  %1190 = vst.msk [vmem:[#allocation3 + $0x4] sm:$0x1] %vm386_vm10, %v1179_v63  ;;  %2380 = vrot.lane.b32.xlu1 %v5606_v38, %s4108_s3 }
0x2b53   :  { %1193 = vst.msk [vmem:[#allocation3 + $0x34] sm:$0x1] %vm386_vm10, %v1185_v39  ;;  %2578 = vrot.lane.b32.xlu0 %v5607_v32, %s4108_s3 }
0x2b55   :  { %v1183_v44 = vpop.permute.xlu1 %1182 }
0x2b56   :  { %v1381_v53 = vpop.permute.xlu0 %1380  ;;  %1192 = vst.msk [vmem:[#allocation3 + $0x24] sm:$0x1] %vm386_vm10, %v1183_v44  ;;  %2384 = vrot.lane.b32.xlu1 %v5608_v43, %s4108_s3 }
0x2b57   :  { %1391 = vst.msk [vmem:[#allocation3 + $0x15] sm:$0x1] %vm386_vm10, %v1381_v53  ;;  %2582 = vrot.lane.b32.xlu0 %v5609_v1, %s4108_s3 }
0x2b59   :  { %v1379_v59 = vpop.permute.xlu1 %1378 }
0x2b5a   :  { %v1385_v37 = vpop.permute.xlu0 %1384  ;;  %1390 = vst.msk [vmem:[#allocation3 + $0x5] sm:$0x1] %vm386_vm10, %v1379_v59  ;;  %2580 = vrot.lane.b32.xlu1 %v5610_v41, %s4108_s3 }
0x2b5b   :  { %1393 = vst.msk [vmem:[#allocation3 + $0x35] sm:$0x1] %vm386_vm10, %v1385_v37  ;;  %2778 = vrot.lane.b32.xlu0 %v5145_v9, %s4108_s3 }
0x2b5d   :  { %v1383_v42 = vpop.permute.xlu1 %1382 }
0x2b5e   :  { %v1581_v46 = vpop.permute.xlu0 %1580  ;;  %1392 = vst.msk [vmem:[#allocation3 + $0x25] sm:$0x1] %vm386_vm10, %v1383_v42  ;;  %2584 = vrot.lane.b32.xlu1 %v5611_v54, %s4108_s3 }
0x2b5f   :  { %1591 = vst.msk [vmem:[#allocation3 + $0x16] sm:$0x1] %vm386_vm10, %v1581_v46  ;;  %2782 = vrot.lane.b32.xlu0 %v5142_v5, %s4108_s3  ;;  %v5612_v5 = vld [vmem:[#allocation24_spill] sm:$0xff] }
0x2b61   :  { %v1579_v55 = vpop.permute.xlu1 %1578 }
0x2b62   :  { %v1585_v60 = vpop.permute.xlu0 %1584  ;;  %1590 = vst.msk [vmem:[#allocation3 + $0x6] sm:$0x1] %vm386_vm10, %v1579_v55  ;;  %2780 = vrot.lane.b32.xlu1 %v5140_v51, %s4108_s3  ;;  %v5613_v51 = vld [vmem:[#allocation23_spill] sm:$0xff] }
0x2b63   :  { %1593 = vst.msk [vmem:[#allocation3 + $0x36] sm:$0x1] %vm386_vm10, %v1585_v60  ;;  %2978 = vrot.lane.b32.xlu0 %v5211_v58, %s4108_s3  ;;  %v5614_v58 = vld [vmem:[#allocation28_spill] sm:$0xff] }
0x2b65   :  { %v1583_v9 = vpop.permute.xlu1 %1582 }
0x2b66   :  { %v1781_v62 = vpop.permute.xlu0 %1780  ;;  %1592 = vst.msk [vmem:[#allocation3 + $0x26] sm:$0x1] %vm386_vm10, %v1583_v9  ;;  %2784 = vrot.lane.b32.xlu1 %v5148_v2, %s4108_s3  ;;  %v5615_v2 = vld [vmem:[#allocation25_spill] sm:$0xff] }
0x2b67   :  { %1791 = vst.msk [vmem:[#allocation3 + $0x17] sm:$0x1] %vm386_vm10, %v1781_v62  ;;  %2982 = vrot.lane.b32.xlu0 %v5612_v5, %s4108_s3 }
0x2b69   :  { %v1779_v15 = vpop.permute.xlu1 %1778 }
0x2b6a   :  { %v1785_v16 = vpop.permute.xlu0 %1784  ;;  %1790 = vst.msk [vmem:[#allocation3 + $0x7] sm:$0x1] %vm386_vm10, %v1779_v15  ;;  %2980 = vrot.lane.b32.xlu1 %v5613_v51, %s4108_s3 }
0x2b6b   :  { %1793 = vst.msk [vmem:[#allocation3 + $0x37] sm:$0x1] %vm386_vm10, %v1785_v16  ;;  %3178 = vrot.lane.b32.xlu0 %v5614_v58, %s4108_s3 }
0x2b6d   :  { %v1783_v20 = vpop.permute.xlu1 %1782 }
0x2b6e   :  { %v1981_v23 = vpop.permute.xlu0 %1980  ;;  %1792 = vst.msk [vmem:[#allocation3 + $0x27] sm:$0x1] %vm386_vm10, %v1783_v20  ;;  %2984 = vrot.lane.b32.xlu1 %v5615_v2, %s4108_s3 }
0x2b6f   :  { %1991 = vst.msk [vmem:[#allocation3 + $0x18] sm:$0x1] %vm386_vm10, %v1981_v23  ;;  %3182 = vrot.lane.b32.xlu0 %v5616_v49, %s4108_s3 }
0x2b72   :  { %3180 = vrot.lane.b32.xlu1 %v5617_v28, %s4108_s3 }
0x2b76   :  { %3184 = vrot.lane.b32.xlu1 %v5618_v31, %s4108_s3 }
0x2ba9   :  { %v3363_v56 = vpop.permute.xlu0 %3362 }
0x2baa   :  { %v3372_v24 = vmul.f32 %v3363_v56, %v5291_v36 }
0x2bac   :  { %v3359_v14 = vpop.permute.xlu1 %3358  ;;  %v3396_v45 = vrot.slane %v3372_v24, 6 }
0x2bad   :  { %v3365_v17 = vpop.permute.xlu0 %3364  ;;  %v3370_v10 = vmul.f32 %v3359_v14, %v5299_v12 }
0x2bae   :  { %v3373_v18 = vmul.f32 %v3365_v17, %v5302_v25 }
0x2baf   :  { %3378 = vrot.lane.b32.xlu0 %v3370_v10, %s4108_s3 }
0x2bb0   :  { %v3361_v13 = vpop.permute.xlu1 %3360  ;;  %v3398_v12 = vrot.slane %v3373_v18, 5 }
0x2bb1   :  { %v1985_v26 = vpop.permute.xlu0 %1984  ;;  %v3371_v0 = vmul.f32 %v3361_v13, %v5287_v8 }
0x2bb2   :  { %1993 = vst.msk [vmem:[#allocation3 + $0x38] sm:$0x1] %vm386_vm10, %v1985_v26 }
0x2bb3   :  { %v3394_v29 = vrot.slane %v3371_v0, 7  ;;  %3382 = vrot.lane.b32.xlu0 %v3372_v24, %s4108_s3  ;;  %3380 = vrot.lane.b32.xlu1 %v3371_v0, %s4108_s3 }
0x2bb4   :  { %v1979_v47 = vpop.permute.xlu1 %1978 }
0x2bb5   :  { %v3395_v61 = vsel %vm396_vm6, %v3394_v29, %v3370_v10  ;;  %v2179_v7 = vpop.permute.xlu0 %2178  ;;  %1990 = vst.msk [vmem:[#allocation3 + $0x8] sm:$0x1] %vm386_vm10, %v1979_v47 }
0x2bb6   :  { %2190 = vst.msk [vmem:[#allocation3 + $0x9] sm:$0x1] %vm386_vm10, %v2179_v7  ;;  %v3397_v36 = vsel %vm399_vm7, %v3396_v45, %v3395_v61 }
0x2bb7   :  { %3415 = vrot.lane.b32.xlu0 %v5396_v33, %s4109_s4  ;;  %v3399_v8 = vsel %vm402_vm8, %v3398_v12, %v3397_v36 }
0x2bb8   :  { %3400 = vrot.lane.b32.xlu1 %v3399_v8, %s4108_s3  ;;  %v1983_v25 = vpop.permute.xlu1 %1982 }
0x2bb9   :  { %v2183_v57 = vpop.permute.xlu0 %2182  ;;  %1992 = vst.msk [vmem:[#allocation3 + $0x28] sm:$0x1] %vm386_vm10, %v1983_v25 }
0x2bba   :  { %2192 = vst.msk [vmem:[#allocation3 + $0x29] sm:$0x1] %vm386_vm10, %v2183_v57 }
0x2bbc   :  { %3384 = vrot.lane.b32.xlu1 %v3373_v18, %s4108_s3  ;;  %v2181_v4 = vpop.permute.xlu1 %2180 }
0x2bbd   :  { %v2379_v50 = vpop.permute.xlu0 %2378  ;;  %2191 = vst.msk [vmem:[#allocation3 + $0x19] sm:$0x1] %vm386_vm10, %v2181_v4 }
0x2bbe   :  { %2390 = vst.msk [vmem:[#allocation3 + $0xa] sm:$0x1] %vm386_vm10, %v2379_v50 }
0x2bc0   :  { %v2185_v27 = vpop.permute.xlu1 %2184 }
0x2bc1   :  { %v2383_v33 = vpop.permute.xlu0 %2382  ;;  %2193 = vst.msk [vmem:[#allocation3 + $0x39] sm:$0x1] %vm386_vm10, %v2185_v27 }
0x2bc2   :  { %2392 = vst.msk [vmem:[#allocation3 + $0x2a] sm:$0x1] %vm386_vm10, %v2383_v33 }
0x2bc4   :  { %v2381_v22 = vpop.permute.xlu1 %2380 }
0x2bc5   :  { %v2579_v11 = vpop.permute.xlu0 %2578  ;;  %2391 = vst.msk [vmem:[#allocation3 + $0x1a] sm:$0x1] %vm386_vm10, %v2381_v22 }
0x2bc6   :  { %2590 = vst.msk [vmem:[#allocation3 + $0xb] sm:$0x1] %vm386_vm10, %v2579_v11 }
0x2bc8   :  { %v2385_v21 = vpop.permute.xlu1 %2384 }
0x2bc9   :  { %v2583_v52 = vpop.permute.xlu0 %2582  ;;  %2393 = vst.msk [vmem:[#allocation3 + $0x3a] sm:$0x1] %vm386_vm10, %v2385_v21 }
0x2bca   :  { %2592 = vst.msk [vmem:[#allocation3 + $0x2b] sm:$0x1] %vm386_vm10, %v2583_v52 }
0x2bcc   :  { %v2581_v3 = vpop.permute.xlu1 %2580 }
0x2bcd   :  { %v2779_v35 = vpop.permute.xlu0 %2778  ;;  %2591 = vst.msk [vmem:[#allocation3 + $0x1b] sm:$0x1] %vm386_vm10, %v2581_v3 }
0x2bce   :  { %2790 = vst.msk [vmem:[#allocation3 + $0xc] sm:$0x1] %vm386_vm10, %v2779_v35 }
0x2bd0   :  { %v2585_v30 = vpop.permute.xlu1 %2584 }
0x2bd1   :  { %v2783_v34 = vpop.permute.xlu0 %2782  ;;  %2593 = vst.msk [vmem:[#allocation3 + $0x3b] sm:$0x1] %vm386_vm10, %v2585_v30 }
0x2bd2   :  { %2792 = vst.msk [vmem:[#allocation3 + $0x2c] sm:$0x1] %vm386_vm10, %v2783_v34 }
0x2bd4   :  { %v2781_v48 = vpop.permute.xlu1 %2780 }
0x2bd5   :  { %v2979_v6 = vpop.permute.xlu0 %2978  ;;  %2791 = vst.msk [vmem:[#allocation3 + $0x1c] sm:$0x1] %vm386_vm10, %v2781_v48 }
0x2bd6   :  { %2990 = vst.msk [vmem:[#allocation3 + $0xd] sm:$0x1] %vm386_vm10, %v2979_v6 }
0x2bd8   :  { %v2785_v19 = vpop.permute.xlu1 %2784 }
0x2bd9   :  { %v2983_v40 = vpop.permute.xlu0 %2982  ;;  %2793 = vst.msk [vmem:[#allocation3 + $0x3c] sm:$0x1] %vm386_vm10, %v2785_v19 }
0x2bda   :  { %2992 = vst.msk [vmem:[#allocation3 + $0x2d] sm:$0x1] %vm386_vm10, %v2983_v40 }
0x2bdc   :  { %v2981_v63 = vpop.permute.xlu1 %2980 }
0x2bdd   :  { %v3179_v39 = vpop.permute.xlu0 %3178  ;;  %2991 = vst.msk [vmem:[#allocation3 + $0x1d] sm:$0x1] %vm386_vm10, %v2981_v63 }
0x2bde   :  { %3190 = vst.msk [vmem:[#allocation3 + $0xe] sm:$0x1] %vm386_vm10, %v3179_v39 }
0x2be0   :  { %v2985_v38 = vpop.permute.xlu1 %2984 }
0x2be1   :  { %v3183_v32 = vpop.permute.xlu0 %3182  ;;  %2993 = vst.msk [vmem:[#allocation3 + $0x3d] sm:$0x1] %vm386_vm10, %v2985_v38 }
0x2be2   :  { %3192 = vst.msk [vmem:[#allocation3 + $0x2e] sm:$0x1] %vm386_vm10, %v3183_v32 }
0x2be4   :  { %v3181_v44 = vpop.permute.xlu1 %3180 }
0x2be5   :  { %3191 = vst.msk [vmem:[#allocation3 + $0x1e] sm:$0x1] %vm386_vm10, %v3181_v44 }
0x2be8   :  { %v3185_v53 = vpop.permute.xlu1 %3184 }
0x2be9   :  { %3193 = vst.msk [vmem:[#allocation3 + $0x3e] sm:$0x1] %vm386_vm10, %v3185_v53 }
0x2c21   :  { %v3379_v43 = vpop.permute.xlu0 %3378 }
0x2c22   :  { %3390 = vst.msk [vmem:[#allocation3 + $0xf] sm:$0x1] %vm386_vm10, %v3379_v43 }
0x2c25   :  { %v3383_v1 = vpop.permute.xlu0 %3382  ;;  %v3381_v59 = vpop.permute.xlu1 %3380 }
0x2c26   :  { %3392 = vst.msk [vmem:[#allocation3 + $0x2f] sm:$0x1] %vm386_vm10, %v3383_v1  ;;  %3391 = vst.msk [vmem:[#allocation3 + $0x1f] sm:$0x1] %vm386_vm10, %v3381_v59 }
0x2c29   :  { %v3416_v37 = vpop.permute.xlu0 %3415 }
0x2c2a   :  { %3418 = vst.msk [vmem:[#allocation7] sm:$0xf] %vm3403_vm11, %v3416_v37  ;;  %v3401_v41 = vpop.permute.xlu1 %3400 }
0x2c2b   :  { %3404 = vst.msk [vmem:[#allocation5] sm:$0xf] %vm3403_vm11, %v3401_v41 }
0x2c2c   :  { %4051 = shalt.err (!%p4048_p4)
}
0x2c2d   :  { %3440 = dma.vmem_to_hbm [thread:$0]  %s3438_s22, 64, %s5552_s6, [#allocation6]  }
0x2c2e   :  { %s4060_s2 = scalar_lea.vmem %s3448_s0, 64  ;;  %p4065_p6 = scmp.lt.s32.totalorder %s3448_s0, %s3448_s0 }
0x2c2f   :  { %p4061_p5 = scmp.ne.s32.totalorder %s3448_s0, %s4060_s2  ;;  %p4066_p7 = scmp.lt.s32.totalorder %s4060_s2, %s4060_s2 }
0x2c31   :  { %p4067_p8 = por %p4066_p7, %p4065_p6 }
0x2c33   :  { %p4068_p9 = pnand %p4067_p8, %p4061_p5 }
0x2c35   :  { %4071 = shalt.err (!%p4068_p9)
}
0x2c36   :  { %3450 = dma.vmem_to_hbm [thread:$0]  %s3448_s0, 64, %s5553_s7, [#allocation6]   ;;  %v3385_v42 = vpop.permute.xlu1 %3384 }
0x2c37   :  { %3393 = vst.msk [vmem:[#allocation3 + $0x3f] sm:$0x1] %vm386_vm10, %v3385_v42  ;;  %s4080_s30 = scalar_lea.vmem %s5529_s24, 1024  ;;  %p4085_p11 = scmp.lt.s32.totalorder %s5529_s24, %s5529_s24 }
0x2c38   :  { %p4081_p10 = scmp.ne.s32.totalorder %s5529_s24, %s4080_s30  ;;  %p4086_p12 = scmp.lt.s32.totalorder %s4080_s30, %s4080_s30 }
0x2c3a   :  { %p4087_p13 = por %p4086_p12, %p4085_p11 }
0x2c3c   :  { %p4088_p0 = pnand %p4087_p13, %p4081_p10 }
0x2c3e   :  { %4091 = shalt.err (!%p4088_p0)
}
0x2c3f   :  { %s4113_s6 = smov 128   ;;  %s4114_s8 = smov 8  }
0x2c40   :  { %3430 = dma.vmem_to_hbm [thread:$0]  %s5529_s24, 1024, %s5551_s5, [#allocation4], %s4113_s6, %s4113_s6, %s4114_s8  }
0x2c41   :  { %4100 = dma.done.wait [#allocation4], 1024  }
0x2c42   :  { %4101 = vsyncadd [#allocation4], 4294966272 }
0x2c43   :  { %4102 = dma.done.wait [#allocation6], 128  }
0x2c44   :  { %4103 = vsyncadd [#allocation6], 4294967168 }
0x2c45   :  { %3460 = vsyncpa [#allocation4], 1 }
0x2c46   :  { %3461 = vsyncpa [#allocation6], 1 }

</bundles_post_ra>
